<compile_context>
chip_gen: v5e
topology: v5e:2x2
jax: 0.10.0
libtpu: 0.0.40
codegen_flags: <defaults>
</compile_context>

<pallas_src>
import jax
import jax.numpy as jnp
from jax import lax
from jax.experimental import pallas as pl
from jax.experimental.pallas import tpu as pltpu


# ----------------------------- fused kernel -------------------------------- #

def residual_block_kernel(x_ref, w1_ref, b1_ref, w2_ref, b2_ref, o_ref):
    # x_ref  : (1, H, W, C) bf16   activation block (lane-dense, C = 128k)
    # w*_ref : (9*C, C) bf16       im2col, tap-major, BN scale folded in
    # b*_ref : (1, C) f32          folded BatchNorm bias
    # o_ref  : (1, H, W, C) f32
    _, H, W, C = o_ref.shape

    def pad_hw1(v):
        # Zero-pad a (H, W, C) map by 1 on each side of H and W.
        # Column pad = sublane concat (cheap, small); row pad = leading-dim
        # concat (free).  Source is already bf16, so no per-window casts.
        zc = jnp.zeros((H, 1, C), v.dtype)
        vw = jnp.concatenate([zc, v, zc], axis=1)            # (H, W+2, C)
        zr = jnp.zeros((1, W + 2, C), v.dtype)
        return jnp.concatenate([zr, vw, zr], axis=0)         # (H+2, W+2, C)

    def conv3x3(vp, w_ref):
        # vp: (H+2, W+2, C) bf16, zero halo.  Build S once from 3 W-shifts,
        # then 3 accumulated per-kh MXU matmuls with K = 3C.
        s = jnp.concatenate([vp[:, kw:kw + W, :] for kw in range(3)],
                            axis=-1)                          # (H+2, W, 3C)
        y = None
        for kh in range(3):
            # Leading-dim slice is tile-aligned -> free; reshape merges a
            # sublane-tile-multiple inner dim -> no data movement.
            lhs = s[kh:kh + H].reshape(H * W, 3 * C)
            p = jnp.dot(lhs, w_ref[kh * 3 * C:(kh + 1) * 3 * C, :],
                        preferred_element_type=jnp.float32)   # MXU, f32 acc
            y = p if y is None else y + p
        return y                                              # (H*W, C) f32

    x = x_ref[0]                                              # (H, W, C) bf16

    # conv1 (+ folded bn1 scale) + bias + relu
    y1 = conv3x3(pad_hw1(x), w1_ref)
    y1 = jnp.maximum(y1 + b1_ref[...], 0.0)
    y1 = y1.reshape(H, W, C).astype(jnp.bfloat16)             # cast once

    # conv2 (+ folded bn2 scale) + bias + residual + relu
    y2 = conv3x3(pad_hw1(y1), w2_ref)
    res = x.reshape(H * W, C).astype(jnp.float32)
    out = jnp.maximum(y2 + b2_ref[...] + res, 0.0)
    o_ref[0] = out.reshape(H, W, C).astype(o_ref.dtype)


# ------------------------- one-time weight prep ----------------------------- #

def prepare_params(params, eps=1e-5):
    """im2col-transpose, fold BN scale into weights, cast to bf16. Call once."""
    def prep(w_oihw, gamma, beta, mean, var):
        co, ci, kh, kw = w_oihw.shape
        scale = gamma / jnp.sqrt(var + eps)
        bias = (beta - mean * scale).astype(jnp.float32)
        # tap-major rows: index = (kh*3 + kw)*Cin + ci   -> matches kernel slices
        w = jnp.transpose(w_oihw, (2, 3, 1, 0)).reshape(kh * kw * ci, co)
        w = (w * scale[None, :]).astype(jnp.bfloat16)
        return w, bias[None, :]
    w1, b1 = prep(params["w1"], params["bn1_gamma"], params["bn1_beta"],
                  params["bn1_mean"], params["bn1_var"])
    w2, b2 = prep(params["w2"], params["bn2_gamma"], params["bn2_beta"],
                  params["bn2_mean"], params["bn2_var"])
    return {"w1": w1, "b1": b1, "w2": w2, "b2": b2}


# ------------------------------- wrappers ------------------------------------ #

def residual_block_forward_nhwc(x_nhwc_bf16, prep):
    N, H, W, C = x_nhwc_bf16.shape
    assert W % 8 == 0, "W must be a multiple of 8 (pad the board in the caller)"
    assert C % 128 == 0, "C must be a multiple of 128 for lane-dense layout"

    return pl.pallas_call(
        residual_block_kernel,
        out_shape=jax.ShapeDtypeStruct((N, H, W, C), jnp.float32),
        grid=(N,),
        in_specs=[
            pl.BlockSpec((1, H, W, C), lambda n: (n, 0, 0, 0)),
            pl.BlockSpec((9 * C, C), lambda n: (0, 0)),
            pl.BlockSpec((1, C), lambda n: (0, 0)),
            pl.BlockSpec((9 * C, C), lambda n: (0, 0)),
            pl.BlockSpec((1, C), lambda n: (0, 0)),
        ],
        out_specs=pl.BlockSpec((1, H, W, C), lambda n: (n, 0, 0, 0)),
        compiler_params=pltpu.CompilerParams(
            dimension_semantics=("parallel",)),
    )(x_nhwc_bf16, prep["w1"], prep["b1"], prep["w2"], prep["b2"])


def residual_block_forward(x_nchw, prep):
    # PyTorch-style NCHW entry point; transpose + bf16 cast fuse into one XLA op.
    x_nhwc = jnp.transpose(x_nchw, (0, 2, 3, 1)).astype(jnp.bfloat16)
    out = residual_block_forward_nhwc(x_nhwc, prep)
    return jnp.transpose(out, (0, 3, 1, 2))


# --------------------------- pure-JAX reference ----------------------------- #

def reference_forward(x_nchw, params, eps=1e-5):
    def bn(z, g, b, m, v):
        g, b, m, v = (t[None, :, None, None] for t in (g, b, m, v))
        return (z - m) / jnp.sqrt(v + eps) * g + b

    def conv(z, w):
        return lax.conv_general_dilated(
            z, w, window_strides=(1, 1), padding="SAME",
            dimension_numbers=("NCHW", "OIHW", "NCHW"),
            precision=lax.Precision.HIGHEST)

    y = conv(x_nchw, params["w1"])
    y = jnp.maximum(bn(y, params["bn1_gamma"], params["bn1_beta"],
                       params["bn1_mean"], params["bn1_var"]), 0.0)
    y = conv(y, params["w2"])
    y = bn(y, params["bn2_gamma"], params["bn2_beta"],
           params["bn2_mean"], params["bn2_var"])
    return jnp.maximum(y + x_nchw, 0.0)


# ---------------------------------- main ------------------------------------ #

if __name__ == "__main__":
    # Module default filters=128; N=4 so each TensorCore gets >=2 grid steps.
    N, C, H, W = 4, 128, 16, 16
    key = jax.random.PRNGKey(0)
    ks = jax.random.split(key, 11)

    params = {
        "w1": 0.1 * jax.random.normal(ks[0], (C, C, 3, 3), jnp.float32),
        "w2": 0.1 * jax.random.normal(ks[1], (C, C, 3, 3), jnp.float32),
        "bn1_gamma": 1.0 + 0.1 * jax.random.normal(ks[2], (C,), jnp.float32),
        "bn1_beta":  0.1 * jax.random.normal(ks[3], (C,), jnp.float32),
        "bn1_mean":  0.1 * jax.random.normal(ks[4], (C,), jnp.float32),
        "bn1_var":   0.5 + jax.random.uniform(ks[5], (C,), jnp.float32),
        "bn2_gamma": 1.0 + 0.1 * jax.random.normal(ks[6], (C,), jnp.float32),
        "bn2_beta":  0.1 * jax.random.normal(ks[7], (C,), jnp.float32),
        "bn2_mean":  0.1 * jax.random.normal(ks[8], (C,), jnp.float32),
        "bn2_var":   0.5 + jax.random.uniform(ks[9], (C,), jnp.float32),
    }

    x = jax.random.normal(ks[10], (N, C, H, W), jnp.float32)

    prep = jax.block_until_ready(prepare_params(params))   # one-time weight prep
    fwd = jax.jit(residual_block_forward)

    out = jax.block_until_ready(fwd(x, prep))
    ref = jax.block_until_ready(reference_forward(x, params))

    assert out.shape == (N, C, H, W), out.shape
    # bf16-MXU appropriate check: max abs error relative to the output scale.
    max_err = float(jnp.max(jnp.abs(out - ref)))
    scale = float(jnp.maximum(jnp.max(jnp.abs(ref)), 1.0))
    if max_err > 2e-2 * scale:
        raise AssertionError(
            f"mismatch: max abs err = {max_err} (output scale = {scale})")

    print("KERNEL_OK")
</pallas_src>

<mosaic_0001>
module attributes {stable_mosaic.version = 11 : i64} {
  func.func @residual_block_kernel(%arg0: i32, %arg1: memref<1x16x16x128xbf16, #tpu.memory_space<vmem>>, %arg2: memref<1152x128xbf16, #tpu.memory_space<vmem>>, %arg3: memref<1x128xf32, #tpu.memory_space<vmem>>, %arg4: memref<1152x128xbf16, #tpu.memory_space<vmem>>, %arg5: memref<1x128xf32, #tpu.memory_space<vmem>>, %arg6: memref<1x16x16x128xf32, #tpu.memory_space<vmem>>) attributes {dimension_semantics = [#tpu.dimension_semantics<parallel>], iteration_bounds = array<i64: 4>, scalar_prefetch = 0 : i64, scratch_operands = 0 : i64, tpu.core_type = #tpu.core_type<tc>, window_params = [{transform_indices = @transform_0, window_bounds = array<i64: 1, 16, 16, 128>}, {pipeline_mode = #tpu.pipeline_mode<synchronous>, transform_indices = @transform_1, window_bounds = array<i64: 1152, 128>}, {pipeline_mode = #tpu.pipeline_mode<synchronous>, transform_indices = @transform_2, window_bounds = array<i64: 1, 128>}, {pipeline_mode = #tpu.pipeline_mode<synchronous>, transform_indices = @transform_3, window_bounds = array<i64: 1152, 128>}, {pipeline_mode = #tpu.pipeline_mode<synchronous>, transform_indices = @transform_4, window_bounds = array<i64: 1, 128>}, {transform_indices = @transform_5, window_bounds = array<i64: 1, 16, 16, 128>}]} {
    %c0 = arith.constant 0 : index
    %c0_0 = arith.constant 0 : index
    %c0_1 = arith.constant 0 : index
    %c0_2 = arith.constant 0 : index
    %0 = vector.load %arg1[%c0, %c0_0, %c0_1, %c0_2] : memref<1x16x16x128xbf16, #tpu.memory_space<vmem>>, vector<1x16x16x128xbf16>
    %1 = vector.shape_cast %0 : vector<1x16x16x128xbf16> to vector<16x16x128xbf16>
    %cst = arith.constant 0.000000e+00 : bf16
    %2 = vector.broadcast %cst : bf16 to vector<16x1x128xbf16>
    %3 = tpu.concatenate %2, %1, %2 in 1 : vector<16x1x128xbf16>, vector<16x16x128xbf16>, vector<16x1x128xbf16> -> vector<16x18x128xbf16>
    %cst_3 = arith.constant 0.000000e+00 : bf16
    %4 = vector.broadcast %cst_3 : bf16 to vector<1x18x128xbf16>
    %5 = tpu.concatenate %4, %3, %4 in 0 : vector<1x18x128xbf16>, vector<16x18x128xbf16>, vector<1x18x128xbf16> -> vector<18x18x128xbf16>
    %6 = vector.extract_strided_slice %5 {offsets = [0, 0, 0], sizes = [18, 16, 128], strides = [1, 1, 1]} : vector<18x18x128xbf16> to vector<18x16x128xbf16>
    %7 = vector.extract_strided_slice %5 {offsets = [0, 1, 0], sizes = [18, 16, 128], strides = [1, 1, 1]} : vector<18x18x128xbf16> to vector<18x16x128xbf16>
    %8 = vector.extract_strided_slice %5 {offsets = [0, 2, 0], sizes = [18, 16, 128], strides = [1, 1, 1]} : vector<18x18x128xbf16> to vector<18x16x128xbf16>
    %9 = tpu.concatenate %6, %7, %8 in 2 : vector<18x16x128xbf16>, vector<18x16x128xbf16>, vector<18x16x128xbf16> -> vector<18x16x384xbf16>
    %10 = vector.extract_strided_slice %9 {offsets = [0, 0, 0], sizes = [16, 16, 384], strides = [1, 1, 1]} : vector<18x16x384xbf16> to vector<16x16x384xbf16>
    %11 = vector.shape_cast %10 : vector<16x16x384xbf16> to vector<256x384xbf16>
    %c0_4 = arith.constant 0 : index
    %c0_5 = arith.constant 0 : index
    %12 = vector.load %arg2[%c0_4, %c0_5] : memref<1152x128xbf16, #tpu.memory_space<vmem>>, vector<384x128xbf16>
    %cst_6 = arith.constant dense<0.000000e+00> : vector<256x128xf32>
    %13 = tpu.matmul %11, %12, %cst_6 {dimension_numbers = #tpu.dot_dimension_numbers<[1], [0], [0], [1], [0, 0, 1, 1], [], []>} : vector<256x384xbf16>, vector<384x128xbf16>, vector<256x128xf32> -> vector<256x128xf32>
    %14 = vector.extract_strided_slice %9 {offsets = [1, 0, 0], sizes = [16, 16, 384], strides = [1, 1, 1]} : vector<18x16x384xbf16> to vector<16x16x384xbf16>
    %15 = vector.shape_cast %14 : vector<16x16x384xbf16> to vector<256x384xbf16>
    %c384 = arith.constant 384 : index
    %c0_7 = arith.constant 0 : index
    %16 = vector.load %arg2[%c384, %c0_7] : memref<1152x128xbf16, #tpu.memory_space<vmem>>, vector<384x128xbf16>
    %cst_8 = arith.constant dense<0.000000e+00> : vector<256x128xf32>
    %17 = tpu.matmul %15, %16, %cst_8 {dimension_numbers = #tpu.dot_dimension_numbers<[1], [0], [0], [1], [0, 0, 1, 1], [], []>} : vector<256x384xbf16>, vector<384x128xbf16>, vector<256x128xf32> -> vector<256x128xf32>
    %18 = arith.addf %13, %17 : vector<256x128xf32>
    %19 = vector.extract_strided_slice %9 {offsets = [2, 0, 0], sizes = [16, 16, 384], strides = [1, 1, 1]} : vector<18x16x384xbf16> to vector<16x16x384xbf16>
    %20 = vector.shape_cast %19 : vector<16x16x384xbf16> to vector<256x384xbf16>
    %c768 = arith.constant 768 : index
    %c0_9 = arith.constant 0 : index
    %21 = vector.load %arg2[%c768, %c0_9] : memref<1152x128xbf16, #tpu.memory_space<vmem>>, vector<384x128xbf16>
    %cst_10 = arith.constant dense<0.000000e+00> : vector<256x128xf32>
    %22 = tpu.matmul %20, %21, %cst_10 {dimension_numbers = #tpu.dot_dimension_numbers<[1], [0], [0], [1], [0, 0, 1, 1], [], []>} : vector<256x384xbf16>, vector<384x128xbf16>, vector<256x128xf32> -> vector<256x128xf32>
    %23 = arith.addf %18, %22 : vector<256x128xf32>
    %c0_11 = arith.constant 0 : index
    %c0_12 = arith.constant 0 : index
    %24 = vector.load %arg3[%c0_11, %c0_12] : memref<1x128xf32, #tpu.memory_space<vmem>>, vector<1x128xf32>
    %25 = vector.broadcast %24 : vector<1x128xf32> to vector<256x128xf32>
    %26 = arith.addf %23, %25 : vector<256x128xf32>
    %cst_13 = arith.constant 0.000000e+00 : f32
    %27 = vector.broadcast %cst_13 : f32 to vector<256x128xf32>
    %28 = arith.maximumf %26, %27 : vector<256x128xf32>
    %29 = vector.shape_cast %28 : vector<256x128xf32> to vector<16x16x128xf32>
    %30 = arith.truncf %29 : vector<16x16x128xf32> to vector<16x16x128xbf16>
    %cst_14 = arith.constant 0.000000e+00 : bf16
    %31 = vector.broadcast %cst_14 : bf16 to vector<16x1x128xbf16>
    %32 = tpu.concatenate %31, %30, %31 in 1 : vector<16x1x128xbf16>, vector<16x16x128xbf16>, vector<16x1x128xbf16> -> vector<16x18x128xbf16>
    %cst_15 = arith.constant 0.000000e+00 : bf16
    %33 = vector.broadcast %cst_15 : bf16 to vector<1x18x128xbf16>
    %34 = tpu.concatenate %33, %32, %33 in 0 : vector<1x18x128xbf16>, vector<16x18x128xbf16>, vector<1x18x128xbf16> -> vector<18x18x128xbf16>
    %35 = vector.extract_strided_slice %34 {offsets = [0, 0, 0], sizes = [18, 16, 128], strides = [1, 1, 1]} : vector<18x18x128xbf16> to vector<18x16x128xbf16>
    %36 = vector.extract_strided_slice %34 {offsets = [0, 1, 0], sizes = [18, 16, 128], strides = [1, 1, 1]} : vector<18x18x128xbf16> to vector<18x16x128xbf16>
    %37 = vector.extract_strided_slice %34 {offsets = [0, 2, 0], sizes = [18, 16, 128], strides = [1, 1, 1]} : vector<18x18x128xbf16> to vector<18x16x128xbf16>
    %38 = tpu.concatenate %35, %36, %37 in 2 : vector<18x16x128xbf16>, vector<18x16x128xbf16>, vector<18x16x128xbf16> -> vector<18x16x384xbf16>
    %39 = vector.extract_strided_slice %38 {offsets = [0, 0, 0], sizes = [16, 16, 384], strides = [1, 1, 1]} : vector<18x16x384xbf16> to vector<16x16x384xbf16>
    %40 = vector.shape_cast %39 : vector<16x16x384xbf16> to vector<256x384xbf16>
    %c0_16 = arith.constant 0 : index
    %c0_17 = arith.constant 0 : index
    %41 = vector.load %arg4[%c0_16, %c0_17] : memref<1152x128xbf16, #tpu.memory_space<vmem>>, vector<384x128xbf16>
    %cst_18 = arith.constant dense<0.000000e+00> : vector<256x128xf32>
    %42 = tpu.matmul %40, %41, %cst_18 {dimension_numbers = #tpu.dot_dimension_numbers<[1], [0], [0], [1], [0, 0, 1, 1], [], []>} : vector<256x384xbf16>, vector<384x128xbf16>, vector<256x128xf32> -> vector<256x128xf32>
    %43 = vector.extract_strided_slice %38 {offsets = [1, 0, 0], sizes = [16, 16, 384], strides = [1, 1, 1]} : vector<18x16x384xbf16> to vector<16x16x384xbf16>
    %44 = vector.shape_cast %43 : vector<16x16x384xbf16> to vector<256x384xbf16>
    %c384_19 = arith.constant 384 : index
    %c0_20 = arith.constant 0 : index
    %45 = vector.load %arg4[%c384_19, %c0_20] : memref<1152x128xbf16, #tpu.memory_space<vmem>>, vector<384x128xbf16>
    %cst_21 = arith.constant dense<0.000000e+00> : vector<256x128xf32>
    %46 = tpu.matmul %44, %45, %cst_21 {dimension_numbers = #tpu.dot_dimension_numbers<[1], [0], [0], [1], [0, 0, 1, 1], [], []>} : vector<256x384xbf16>, vector<384x128xbf16>, vector<256x128xf32> -> vector<256x128xf32>
    %47 = arith.addf %42, %46 : vector<256x128xf32>
    %48 = vector.extract_strided_slice %38 {offsets = [2, 0, 0], sizes = [16, 16, 384], strides = [1, 1, 1]} : vector<18x16x384xbf16> to vector<16x16x384xbf16>
    %49 = vector.shape_cast %48 : vector<16x16x384xbf16> to vector<256x384xbf16>
    %c768_22 = arith.constant 768 : index
    %c0_23 = arith.constant 0 : index
    %50 = vector.load %arg4[%c768_22, %c0_23] : memref<1152x128xbf16, #tpu.memory_space<vmem>>, vector<384x128xbf16>
    %cst_24 = arith.constant dense<0.000000e+00> : vector<256x128xf32>
    %51 = tpu.matmul %49, %50, %cst_24 {dimension_numbers = #tpu.dot_dimension_numbers<[1], [0], [0], [1], [0, 0, 1, 1], [], []>} : vector<256x384xbf16>, vector<384x128xbf16>, vector<256x128xf32> -> vector<256x128xf32>
    %52 = arith.addf %47, %51 : vector<256x128xf32>
    %53 = vector.shape_cast %1 : vector<16x16x128xbf16> to vector<256x128xbf16>
    %54 = arith.extf %53 : vector<256x128xbf16> to vector<256x128xf32>
    %c0_25 = arith.constant 0 : index
    %c0_26 = arith.constant 0 : index
    %55 = vector.load %arg5[%c0_25, %c0_26] : memref<1x128xf32, #tpu.memory_space<vmem>>, vector<1x128xf32>
    %56 = vector.broadcast %55 : vector<1x128xf32> to vector<256x128xf32>
    %57 = arith.addf %52, %56 : vector<256x128xf32>
    %58 = arith.addf %57, %54 : vector<256x128xf32>
    %cst_27 = arith.constant 0.000000e+00 : f32
    %59 = vector.broadcast %cst_27 : f32 to vector<256x128xf32>
    %60 = arith.maximumf %58, %59 : vector<256x128xf32>
    %61 = vector.shape_cast %60 : vector<256x128xf32> to vector<16x16x128xf32>
    %c0_28 = arith.constant 0 : index
    %c0_29 = arith.constant 0 : index
    %c0_30 = arith.constant 0 : index
    %c0_31 = arith.constant 0 : index
    %62 = vector.load %arg6[%c0_28, %c0_29, %c0_30, %c0_31] : memref<1x16x16x128xf32, #tpu.memory_space<vmem>>, vector<1x16x16x128xf32>
    %63 = vector.shape_cast %62 : vector<1x16x16x128xf32> to vector<16x16x128xf32>
    %64 = vector.shape_cast %61 : vector<16x16x128xf32> to vector<1x16x16x128xf32>
    tpu.vector_store %arg6[%c0_28, %c0_29, %c0_30, %c0_31], %64 {strides = array<i32>} : memref<1x16x16x128xf32, #tpu.memory_space<vmem>>, vector<1x16x16x128xf32>,
    return
  }
  func.func @transform_0(%arg0: i32) -> (i32, i32, i32, i32) {
    %c0_i32 = arith.constant 0 : i32
    %c0_i32_0 = arith.constant 0 : i32
    %c0_i32_1 = arith.constant 0 : i32
    %c0_i32_2 = arith.constant 0 : i32
    return %arg0, %c0_i32, %c0_i32_0, %c0_i32_1 : i32, i32, i32, i32
  }
  func.func @transform_1(%arg0: i32) -> (i32, i32) {
    %c0_i32 = arith.constant 0 : i32
    %c0_i32_0 = arith.constant 0 : i32
    %c0_i32_1 = arith.constant 0 : i32
    return %c0_i32, %c0_i32_0 : i32, i32
  }
  func.func @transform_2(%arg0: i32) -> (i32, i32) {
    %c0_i32 = arith.constant 0 : i32
    %c0_i32_0 = arith.constant 0 : i32
    %c0_i32_1 = arith.constant 0 : i32
    return %c0_i32, %c0_i32_0 : i32, i32
  }
  func.func @transform_3(%arg0: i32) -> (i32, i32) {
    %c0_i32 = arith.constant 0 : i32
    %c0_i32_0 = arith.constant 0 : i32
    %c0_i32_1 = arith.constant 0 : i32
    return %c0_i32, %c0_i32_0 : i32, i32
  }
  func.func @transform_4(%arg0: i32) -> (i32, i32) {
    %c0_i32 = arith.constant 0 : i32
    %c0_i32_0 = arith.constant 0 : i32
    %c0_i32_1 = arith.constant 0 : i32
    return %c0_i32, %c0_i32_0 : i32, i32
  }
  func.func @transform_5(%arg0: i32) -> (i32, i32, i32, i32) {
    %c0_i32 = arith.constant 0 : i32
    %c0_i32_0 = arith.constant 0 : i32
    %c0_i32_1 = arith.constant 0 : i32
    %c0_i32_2 = arith.constant 0 : i32
    return %arg0, %c0_i32, %c0_i32_0, %c0_i32_1 : i32, i32, i32, i32
  }
}

</mosaic_0001>

<bundles_post_ra>
// kernel: residual_block_forward.1
= control target key start
LH: loop header
LB: loop body
LE: loop exit
PB: predicated region body
PF: predicated region fallthrough
CT: control target
= control target key end

     0   :  { %10 = vsyncpa [#allocation3], 0  ;;  %s7706_s0 = inlined_call_operand.vmem [shape: bf16[4,16,16,128], index: 0, kind: input, shape index: {}]   ;;  %s7707_s1 = inlined_call_operand.vmem [shape: bf16[1152,128], index: 1, kind: input, shape index: {}]   ;;  %s7708_s2 = inlined_call_operand.vmem [shape: f32[1,128], index: 2, kind: input, shape index: {}]   ;;  %s7709_s3 = inlined_call_operand.vmem [shape: bf16[1152,128], index: 3, kind: input, shape index: {}]   ;;  %s7710_s4 = inlined_call_operand.vmem [shape: f32[1,128], index: 4, kind: input, shape index: {}]   ;;  %s7711_s5 = inlined_call_operand.hbm [shape: f32[4,16,16,128], index: 5, kind: output, shape index: {}]  }
   0x1   :  { %12 = vsyncpa [#allocation3 + $0x1], 0  ;;  %s5526_s18 = smov 0   ;;  %s5528_s19 = smov 0  }
   0x2   :  { %s5530_s20 = smov 0   ;;  %s5532_s21 = smov 0  }
   0x3 LB: > { %s5547_s22 = sadd.s32 4294967295, %s5491_s21   ;;  %s4554_s23 = sadd.s32 4294967294, %s5491_s21   ;;  %s5491_s21 = sphi %s5532_s21, %s7937_s21   ;;  %s5487_s20 = sphi %s5530_s20, %s7936_s20   ;;  %s5483_s19 = sphi %s5528_s19, %s7935_s19   ;;  %s5479_s18 = sphi %s5526_s18, %s7934_s18  }
   0x4   : > { %s5551_s24 = sadd.s32 1, %s5491_s21   ;;  %s135_s25 = sadd.s32 1, %s5487_s20 }
   0x5   : > { %s132_s26 = ssub.s32 %s5491_s21, %s5551_s24  ;;  %p145_p0 = scmp.ne.s32.totalorder %s5487_s20, %s5483_s19 }
   0x6   : > { %p133_p1 = scmp.eq.s32.totalorder %s132_s26, 0  ;;  %p146_p2 = scmp.eq.s32.totalorder %s5547_s22, 3 }
   0x7   : > { %p151_p3 = scmp.ne.s32.totalorder %s5483_s19, %s5479_s18  ;;  %p152_p4 = scmp.eq.s32.totalorder %s4554_s23, 3 }
   0x8   : > { %s5562_s27 = scalar_select %p133_p1, %s5487_s20, %s135_s25  }
   0x9   : > { %p5564_p5 = por %p146_p2, %p145_p0  ;;  %p5568_p6 = por %p152_p4, %p151_p3 }
   0xa   : > { %p4557_p7 = scmp.ge.s32.totalorder %s5491_s21, 1  ;;  %p190_p8 = scmp.lt.s32.totalorder %s5491_s21, 5 }
   0xc   : > { %p191_p9 = pnand %p4557_p7, %p190_p8 }
   0xe   : > { %194 = sbr.rel (%p191_p9) target bundleno = 1501 (0x5dd), region = 40 }
  0x13   : > { %v5254_v0 = vld [vmem:[%s7707_s1 + $0xf8] sm:$0xff]  ;;  %p218_p10 = scmp.lt.s32.totalorder %s5547_s22, 3  ;;  %v5253_v2 = vld [vmem:[%s7707_s1 + $0xf0] sm:$0xff]  ;;  %v5252_v4 = vld [vmem:[%s7707_s1 + $0xe8] sm:$0xff]  ;;  %vm480_vm0 = vcmask 1040384   ;;  %v7778_v18 = vmov 0 }
  0x14   : > { %v5262_v1 = vld [vmem:[%s7707_s1 + $0x138] sm:$0xff]  ;;  %1074 = vmatpush.bf16.msra.mxu0 %v5254_v0  ;;  %5368 = vmatpush.bf16.msra.mxu2 %v5254_v0  ;;  %v5261_v3 = vld [vmem:[%s7707_s1 + $0x130] sm:$0xff]  ;;  %v5260_v7 = vld [vmem:[%s7707_s1 + $0x128] sm:$0xff]  ;;  %vm481_vm1 = vsmask.f32 256  ;;  %vm766_vm4 = vcmask 1046528  }
  0x15   : > { %s219_s11 = scalar_select %p218_p10, %s5547_s22, 3  ;;  %1163 = vmatpush.bf16.msra.mxu1 %v5262_v1  ;;  %5376 = vmatpush.bf16.msra.mxu3 %v5262_v1  ;;  %v5251_v12 = vld [vmem:[%s7707_s1 + $0xe0] sm:$0xff]  ;;  %vm5607_vm2 = vmand %vm480_vm0, %vm481_vm1  ;;  %v5250_v19 = vld [vmem:[%s7707_s1 + $0xd8] sm:$0xff]  ;;  %vm515_vm3 = vsmask.f32 7424 }
  0x16   : > { %v5259_v15 = vld [vmem:[%s7707_s1 + $0x120] sm:$0xff]  ;;  %v7779_v18 = vsel %vm5607_vm2, 4294967295, %v7778_v18  ;;  %v5258_v20 = vld [vmem:[%s7707_s1 + $0x118] sm:$0xff]  ;;  %v5249_v25 = vld [vmem:[%s7707_s1 + $0xd0] sm:$0xff]  ;;  %s215_s25 = sand.u32 1, %s5483_s19   ;;  %s5367_s6 = sshll.u32 %s5547_s22, 8 }
  0x17   : > { %s5206_s14 = sshll.u32 %s219_s11, 7  ;;  %7780 = vst [vmem:[#allocation5_spill] sm:$0xff] %v7779_v18  ;;  %v5257_v26 = vld [vmem:[%s7707_s1 + $0x110] sm:$0xff]  ;;  %v5248_v33 = vld [vmem:[%s7707_s1 + $0xc8] sm:$0xff]  ;;  %v5247_v45 = vld [vmem:[%s7707_s1 + $0xc0] sm:$0xff]  ;;  %s4558_s26 = sshll.u32 %s215_s25, 8 }
  0x18   : > { %s5591_s17 = scalar_lea.vmem %s7706_s0, %s5206_s14  ;;  %1075 = vmatpush.bf16.msra.mxu0 %v5253_v2  ;;  %5369 = vmatpush.bf16.msra.mxu2 %v5253_v2  ;;  %v5256_v36 = vld [vmem:[%s7707_s1 + $0x108] sm:$0xff]  ;;  %v5255_v46 = vld [vmem:[%s7707_s1 + $0x100] sm:$0xff]  ;;  %v5270_v51 = vld [vmem:[%s7707_s1 + $0x178] sm:$0xff]  ;;  %s7500_s30 = scalar_lea.vmem [#allocation2], %s4558_s26 }
  0x19   : > { %v5207_v5 = vld [vmem:[%s5591_s17] sm:$0xff]  ;;  %1164 = vmatpush.bf16.msra.mxu1 %v5261_v3  ;;  %5377 = vmatpush.bf16.msra.mxu3 %v5261_v3  ;;  %v5208_v23 = vld [vmem:[%s5591_s17 + $0x8] sm:$0xff]  ;;  %v5230_v52 = vld [vmem:[%s7707_s1 + $0x38] sm:$0xff]  ;;  %s4488_s8 = scalar_lea.hbm %s7711_s5, %s5367_s6  ;;  %s4489_s9 = sshll.u32 %s7500_s30, 4  ;;  %s4490_s9 = int_to_ptr.vmem [resolvable:$true] %s4489_s9 }
  0x1a   : > { %v5215_v6 = vld [vmem:[%s5591_s17 + $0x40] sm:$0xff]  ;;  %v337_v8 = vshrl.u32 %v5207_v5, 16  ;;  %v340_v9 = vshll.u32 %v5207_v5, 16  ;;  %v5216_v24 = vld [vmem:[%s5591_s17 + $0x48] sm:$0xff]  ;;  %v344_v31 = vshrl.u32 %v5208_v23, 16  ;;  %v347_v42 = vshll.u32 %v5208_v23, 16 }
  0x1b   : > { %v393_v10 = vshrl.u32 %v5215_v6, 16  ;;  %v396_v11 = vshll.u32 %v5215_v6, 16  ;;  %v400_v32 = vshrl.u32 %v5216_v24, 16  ;;  %v403_v44 = vshll.u32 %v5216_v24, 16  ;;  %v5238_v57 = vld [vmem:[%s7707_s1 + $0x78] sm:$0xff]  ;;  %v5269_v58 = vld [vmem:[%s7707_s1 + $0x170] sm:$0xff] }
  0x1c   : > { %1076 = vmatpush.bf16.msra.mxu0 %v5252_v4  ;;  %5370 = vmatpush.bf16.msra.mxu2 %v5252_v4  ;;  %v339_v13 = vrot.slane %v337_v8, 7  ;;  %v346_v41 = vrot.slane %v344_v31, 7  ;;  %v5229_v61 = vld [vmem:[%s7707_s1 + $0x30] sm:$0xff]  ;;  %v5228_v8 = vld [vmem:[%s7707_s1 + $0x28] sm:$0xff]  ;;  %s4491_s10 = sshll.u32 %s4488_s8, 4  ;;  %s4477_s22 = scalar_lea.sflag [#allocation3], %s215_s25  ;;  %s4492_s10 = int_to_ptr.hbm [resolvable:$true] %s4491_s10 }
  0x1d   : > { %v395_v14 = vrot.slane %v393_v10, 7  ;;  %1165 = vmatpush.bf16.msra.mxu1 %v5260_v7  ;;  %5378 = vmatpush.bf16.msra.mxu3 %v5260_v7  ;;  %v402_v43 = vrot.slane %v400_v32, 7  ;;  %v5209_v62 = vld [vmem:[%s5591_s17 + $0x10] sm:$0xff]  ;;  %v5268_v7 = vld [vmem:[%s7707_s1 + $0x168] sm:$0xff]  ;;  %s5443_s11 = sshra.s32 %s4492_s10, 4  ;;  %s5449_s15 = scalar_lea.hbm %s7711_s5, 1024  ;;  %s5444_s11 = int_to_ptr.hbm [resolvable:$true] %s5443_s11 }
  0x1e   : > { %v342_v16 = vor.u32 %v340_v9, %v339_v13  ;;  %v5635_v27 = vsel %vm5607_vm2, %v339_v13, 0  ;;  %v349_v53 = vor.u32 %v347_v42, %v346_v41  ;;  %v5217_v63 = vld [vmem:[%s5591_s17 + $0x50] sm:$0xff]  ;;  %v5696_v0 = vsel %vm5607_vm2, %v346_v41, 0  ;;  %s5445_s12 = scalar_lea.hbm %s5444_s11, 256  ;;  %p5450_p0 = scmp.lt.s32.totalorder %s5444_s11, %s7711_s5 }
  0x1f   : > { %v398_v17 = vor.u32 %v396_v11, %v395_v14  ;;  %v5640_v29 = vsel %vm5607_vm2, %v395_v14, 0  ;;  %v532_v34 = vshll.u32 %v5635_v27, 16  ;;  %v405_v54 = vor.u32 %v403_v44, %v402_v43  ;;  %v5237_v3 = vld [vmem:[%s7707_s1 + $0x70] sm:$0xff]  ;;  %p5446_p11 = scmp.ne.s32.totalorder %s5444_s11, %s5445_s12  ;;  %p5451_p1 = scmp.lt.s32.totalorder %s5449_s15, %s5445_s12 }
  0x20   : > { %1077 = vmatpush.bf16.msra.mxu0 %v5251_v12  ;;  %5371 = vmatpush.bf16.msra.mxu2 %v5251_v12  ;;  %v5619_v21 = vsel %vm5607_vm2, 0, %v342_v16  ;;  %v628_v35 = vshll.u32 %v5640_v29, 16  ;;  %v5679_v59 = vsel %vm5607_vm2, 0, %v349_v53  ;;  %v5705_v4 = vsel %vm5607_vm2, %v402_v43, 0 }
  0x21   : > { %1166 = vmatpush.bf16.msra.mxu1 %v5259_v15  ;;  %5379 = vmatpush.bf16.msra.mxu3 %v5259_v15  ;;  %v5623_v22 = vsel %vm5607_vm2, 0, %v398_v17  ;;  %v527_v28 = vshll.u32 %v5619_v21, 16  ;;  %v525_v37 = vshrl.u32 %v5619_v21, 16  ;;  %v534_v48 = vrot.slane %v532_v34, 1  ;;  %v5236_v15 = vld [vmem:[%s7707_s1 + $0x68] sm:$0xff]  ;;  %p5447_p12 = pnand %p5446_p11, %p5564_p5  ;;  %p5452_p2 = por %p5451_p1, %p5450_p0 }
  0x22   : > { %v623_v30 = vshll.u32 %v5623_v22, 16  ;;  %v621_v39 = vshrl.u32 %v5623_v22, 16  ;;  %v630_v50 = vrot.slane %v628_v35, 1  ;;  %v5683_v60 = vsel %vm5607_vm2, 0, %v405_v54  ;;  %v5210_v35 = vld [vmem:[%s5591_s17 + $0x18] sm:$0xff] }
  0x23   : > { %v529_v38 = vrot.slane %v527_v28, 1  ;;  %v539_v1 = vshll.u32 %v5679_v59, 16  ;;  %v635_v2 = vshll.u32 %v5683_v60, 16  ;;  %v351_v5 = vshrl.u32 %v5209_v62, 16  ;;  %p5448_p13 = pneg %p5447_p12 }
  0x24   : > { %1078 = vmatpush.bf16.msra.mxu0 %v5250_v19  ;;  %5372 = vmatpush.bf16.msra.mxu2 %v5250_v19  ;;  %v625_v40 = vrot.slane %v623_v30, 1  ;;  %v407_v6 = vshrl.u32 %v5217_v63, 16  ;;  %v537_v9 = vshrl.u32 %v5679_v59, 16  ;;  %v544_v10 = vshll.u32 %v5696_v0, 16 }
  0x25   : > { %1167 = vmatpush.bf16.msra.mxu1 %v5258_v20  ;;  %5380 = vmatpush.bf16.msra.mxu3 %v5258_v20  ;;  %v530_v47 = vor.u32 %v529_v38, %v525_v37  ;;  %v541_v11 = vrot.slane %v539_v1, 1  ;;  %v633_v12 = vshrl.u32 %v5683_v60, 16  ;;  %v637_v13 = vrot.slane %v635_v2, 1  ;;  %v5267_v37 = vld [vmem:[%s7707_s1 + $0x160] sm:$0xff]  ;;  %p5453_p3 = pnand %p5452_p2, %p5448_p13 }
  0x26   : > { %v626_v49 = vor.u32 %v625_v40, %v621_v39  ;;  %v640_v14 = vshll.u32 %v5705_v4, 16  ;;  %v353_v16 = vrot.slane %v351_v5, 7  ;;  %v354_v17 = vshll.u32 %v5209_v62, 16  ;;  %v5227_v38 = vld [vmem:[%s7707_s1 + $0x20] sm:$0xff] }
  0x27   : > { %v5666_v55 = vsel %vm515_vm3, %v530_v47, %v534_v48  ;;  %v409_v19 = vrot.slane %v407_v6, 7  ;;  %v410_v20 = vshll.u32 %v5217_v63, 16  ;;  %v542_v23 = vor.u32 %v541_v11, %v537_v9  ;;  %v5235_v39 = vld [vmem:[%s7707_s1 + $0x60] sm:$0xff]  ;;  %v5226_v11 = vld [vmem:[%s7707_s1 + $0x18] sm:$0xff] }
  0x28   : > { %1079 = vmatpush.bf16.msra.mxu0 %v5249_v25  ;;  %5373 = vmatpush.bf16.msra.mxu2 %v5249_v25  ;;  %v5669_v56 = vsel %vm515_vm3, %v626_v49, %v630_v50  ;;  %v546_v24 = vrot.slane %v544_v10, 1  ;;  %v638_v25 = vor.u32 %v637_v13, %v633_v12  ;;  %v356_v28 = vor.u32 %v354_v17, %v353_v16  ;;  %v5219_v9 = vld [vmem:[%s5591_s17 + $0x60] sm:$0xff]  ;;  %v5266_v10 = vld [vmem:[%s7707_s1 + $0x158] sm:$0xff] }
  0x29   : > { %1168 = vmatpush.bf16.msra.mxu1 %v5257_v26  ;;  %5381 = vmatpush.bf16.msra.mxu3 %v5257_v26  ;;  %v642_v26 = vrot.slane %v640_v14, 1  ;;  %v412_v30 = vor.u32 %v410_v20, %v409_v19  ;;  %v5751_v40 = vsel %vm5607_vm2, %v353_v16, 0  ;;  %v5757_v43 = vsel %vm5607_vm2, %v409_v19, 0  ;;  %v5234_v12 = vld [vmem:[%s7707_s1 + $0x58] sm:$0xff] }
  0x2a   : > { %v5721_v31 = vsel %vm515_vm3, %v542_v23, %v546_v24  ;;  %v358_v44 = vshrl.u32 %v5210_v35, 16  ;;  %v556_v47 = vshll.u32 %v5751_v40, 16  ;;  %v361_v53 = vshll.u32 %v5210_v35, 16 }
  0x2b   : > { %v5724_v32 = vsel %vm515_vm3, %v638_v25, %v642_v26  ;;  %v5732_v34 = vsel %vm5607_vm2, 0, %v412_v30  ;;  %v421_v19 = vshrl.u32 %v5219_v9, 16 }
  0x2c   : > { %1080 = vmatpush.bf16.msra.mxu0 %v5248_v33  ;;  %5374 = vmatpush.bf16.msra.mxu2 %v5248_v33  ;;  %v5728_v33 = vsel %vm5607_vm2, 0, %v356_v28  ;;  %v647_v42 = vshll.u32 %v5732_v34, 16  ;;  %v645_v49 = vshrl.u32 %v5732_v34, 16 }
  0x2d   : > { %1169 = vmatpush.bf16.msra.mxu1 %v5256_v36  ;;  %5382 = vmatpush.bf16.msra.mxu3 %v5256_v36  ;;  %7781 = vst [vmem:[#allocation6_spill] sm:$0xff] %v5728_v33  ;;  %v5218_v36 = vld [vmem:[%s5591_s17 + $0x58] sm:$0xff]  ;;  %v551_v41 = vshll.u32 %v5728_v33, 16 }
  0x2e   : > { %v649_v50 = vrot.slane %v647_v42, 1 }
  0x2f   : > { %v553_v48 = vrot.slane %v551_v41, 1 }
  0x30   : > { %1081 = vmatpush.bf16.msra.mxu0 %v5247_v45  ;;  %5375 = vmatpush.bf16.msra.mxu2 %v5247_v45  ;;  %v414_v45 = vshrl.u32 %v5218_v36, 16  ;;  %v650_v62 = vor.u32 %v649_v50, %v645_v49  ;;  %v5212_v50 = vld [vmem:[%s5591_s17 + $0x28] sm:$0xff] }
  0x31   : > { %1170 = vmatpush.bf16.msra.mxu1 %v5255_v46  ;;  %5383 = vmatpush.bf16.msra.mxu3 %v5255_v46  ;;  %v549_v46 = vshrl.u32 %v5728_v33, 16 }
  0x32   : > { %v416_v54 = vrot.slane %v414_v45, 7 }
  0x33   : > { %1082 = vmatmul.bf16.vlgmr.msra.gmra.mxu0 %v5619_v21  ;;  %1122 = vmatmul.bf16.vlgmr.msra.gmra.mxu2 %v5623_v22 }
  0x34   : > { %1252 = vmatpush.bf16.msrb.mxu2 %v5270_v51  ;;  %1171 = vmatmul.bf16.vlgmr.msra.gmra.mxu1 %v5666_v55  ;;  %v652_v51 = vshll.u32 %v5757_v43, 16  ;;  %v5800_v16 = vsel %vm5607_vm2, %v416_v54, 0 }
  0x35   : > { %1485 = vmatpush.bf16.msrb.mxu3 %v5230_v52  ;;  %1574 = vmatpush.bf16.msrb.mxu0 %v5238_v57  ;;  %v360_v52 = vrot.slane %v358_v44, 7  ;;  %v417_v57 = vshll.u32 %v5218_v36, 16  ;;  %v664_v28 = vshll.u32 %v5800_v16, 16  ;;  %v423_v36 = vrot.slane %v421_v19, 7 }
  0x36   : > { %1211 = vmatmul.bf16.vlgmr.msra.gmra.mxu3 %v5669_v56  ;;  %v654_v63 = vrot.slane %v652_v51, 1  ;;  %v5220_v51 = vld [vmem:[%s5591_s17 + $0x68] sm:$0xff] }
  0x37   : > { %v363_v1 = vor.u32 %v361_v53, %v360_v52  ;;  %v419_v2 = vor.u32 %v417_v57, %v416_v54  ;;  %v5794_v13 = vsel %vm5607_vm2, %v360_v52, 0  ;;  %v666_v42 = vrot.slane %v664_v28, 1  ;;  %v5265_v52 = vld [vmem:[%s7707_s1 + $0x150] sm:$0xff] }
  0x38   : > { %1253 = vmatpush.bf16.msrb.mxu2 %v5269_v58  ;;  %v554_v58 = vor.u32 %v553_v48, %v549_v46  ;;  %v5767_v5 = vsel %vm515_vm3, %v650_v62, %v654_v63  ;;  %v568_v23 = vshll.u32 %v5794_v13, 16  ;;  %v5225_v53 = vld [vmem:[%s7707_s1 + $0x10] sm:$0xff]  ;;  %v5843_v62 = vsel %vm5607_vm2, %v423_v36, 0 }
  0x39   : > { %1486 = vmatpush.bf16.msrb.mxu3 %v5229_v61  ;;  %1575 = vmatpush.bf16.msrb.mxu0 %v5237_v3  ;;  %v558_v61 = vrot.slane %v556_v47, 1  ;;  %v5771_v6 = vsel %vm5607_vm2, 0, %v363_v1  ;;  %v5233_v54 = vld [vmem:[%s7707_s1 + $0x50] sm:$0xff]  ;;  %v372_v63 = vshrl.u32 %v5212_v50, 16  ;;  %v428_v1 = vshrl.u32 %v5220_v51, 16 }
  0x3a   : > { %v563_v14 = vshll.u32 %v5771_v6, 16  ;;  %v561_v20 = vshrl.u32 %v5771_v6, 16  ;;  %v431_v19 = vshll.u32 %v5220_v51, 16 }
  0x3b   : > { %v5764_v3 = vsel %vm515_vm3, %v554_v58, %v558_v61 }
  0x3c   : > { %1254 = vmatpush.bf16.msrb.mxu2 %v5268_v7  ;;  %7782 = vst [vmem:[#allocation7_spill] sm:$0xff] %v5764_v3  ;;  %v5775_v7 = vsel %vm5607_vm2, 0, %v419_v2  ;;  %v565_v24 = vrot.slane %v563_v14, 1  ;;  %v374_v14 = vrot.slane %v372_v63, 7 }
  0x3d   : > { %1487 = vmatpush.bf16.msrb.mxu3 %v5228_v8  ;;  %1576 = vmatpush.bf16.msrb.mxu0 %v5236_v15  ;;  %v5211_v8 = vld [vmem:[%s5591_s17 + $0x20] sm:$0xff]  ;;  %v659_v15 = vshll.u32 %v5775_v7, 16  ;;  %v657_v25 = vshrl.u32 %v5775_v7, 16 }
  0x3e   : > { %v365_v17 = vshrl.u32 %v5211_v8, 16  ;;  %v368_v35 = vshll.u32 %v5211_v8, 16 }
  0x3f   : > { %v661_v26 = vrot.slane %v659_v15, 1  ;;  %v375_v15 = vshll.u32 %v5212_v50, 16 }
  0x40   : > { %1255 = vmatpush.bf16.msrb.mxu2 %v5267_v37  ;;  %v367_v30 = vrot.slane %v365_v17, 7  ;;  %v424_v37 = vshll.u32 %v5219_v9, 16  ;;  %v430_v17 = vrot.slane %v428_v1, 7 }
  0x41   : > { %1488 = vmatpush.bf16.msrb.mxu3 %v5227_v38  ;;  %1577 = vmatpush.bf16.msrb.mxu0 %v5235_v39  ;;  %v566_v38 = vor.u32 %v565_v24, %v561_v20  ;;  %v570_v39 = vrot.slane %v568_v23, 1  ;;  %v662_v41 = vor.u32 %v661_v26, %v657_v25  ;;  %v377_v26 = vor.u32 %v375_v15, %v374_v14 }
  0x42   : > { %v370_v44 = vor.u32 %v368_v35, %v367_v30  ;;  %v426_v45 = vor.u32 %v424_v37, %v423_v36  ;;  %v5837_v57 = vsel %vm5607_vm2, %v367_v30, 0  ;;  %v433_v28 = vor.u32 %v431_v19, %v430_v17 }
  0x43   : > { %1087 = vmatmul.bf16.gmra.mxu0 %v5679_v59  ;;  %1127 = vmatmul.bf16.gmra.mxu2 %v5683_v60  ;;  %v5807_v46 = vsel %vm515_vm3, %v566_v38, %v570_v39  ;;  %v5810_v47 = vsel %vm515_vm3, %v662_v41, %v666_v42  ;;  %v580_v8 = vshll.u32 %v5837_v57, 16  ;;  %v5857_v36 = vsel %vm5607_vm2, 0, %v377_v26  ;;  %v5213_v38 = vld [vmem:[%s5591_s17 + $0x30] sm:$0xff]  ;;  %v5264_v41 = vld [vmem:[%s7707_s1 + $0x148] sm:$0xff] }
  0x44   : > { %1176 = vmatmul.bf16.gmra.mxu1 %v5721_v31  ;;  %1256 = vmatpush.bf16.msrb.mxu2 %v5266_v10  ;;  %7783 = vst [vmem:[#allocation8_spill] sm:$0xff] %v5807_v46  ;;  %v5814_v48 = vsel %vm5607_vm2, 0, %v370_v44  ;;  %v5818_v49 = vsel %vm5607_vm2, 0, %v426_v45  ;;  %v5861_v37 = vsel %vm5607_vm2, 0, %v433_v28  ;;  %v5221_v39 = vld [vmem:[%s5591_s17 + $0x70] sm:$0xff]  ;;  %v5224_v42 = vld [vmem:[%s7707_s1 + $0x8] sm:$0xff] }
  0x45   : > { %1489 = vmatpush.bf16.msrb.mxu3 %v5226_v11  ;;  %1578 = vmatpush.bf16.msrb.mxu0 %v5234_v12  ;;  %7784 = vst [vmem:[#allocation9_spill] sm:$0xff] %v5814_v48  ;;  %v575_v58 = vshll.u32 %v5814_v48, 16  ;;  %v671_v61 = vshll.u32 %v5818_v49, 16  ;;  %v573_v2 = vshrl.u32 %v5814_v48, 16  ;;  %v669_v10 = vshrl.u32 %v5818_v49, 16  ;;  %v5232_v44 = vld [vmem:[%s7707_s1 + $0x48] sm:$0xff] }
  0x46   : > { %1216 = vmatmul.bf16.gmra.mxu3 %v5724_v32  ;;  %v676_v12 = vshll.u32 %v5843_v62, 16  ;;  %v582_v23 = vrot.slane %v580_v8, 1  ;;  %v5880_v45 = vsel %vm5607_vm2, %v374_v14, 0  ;;  %v587_v50 = vshll.u32 %v5857_v36, 16 }
  0x47   : > { %v577_v9 = vrot.slane %v575_v58, 1  ;;  %v673_v11 = vrot.slane %v671_v61, 1  ;;  %v683_v51 = vshll.u32 %v5861_v37, 16  ;;  %v435_v58 = vshrl.u32 %v5221_v39, 16 }
  0x48   : > { %1257 = vmatpush.bf16.msrb.mxu2 %v5265_v52  ;;  %v678_v25 = vrot.slane %v676_v12, 1  ;;  %v5246_v52 = vld [vmem:[%s7707_s1 + $0xb8] sm:$0xff]  ;;  %v585_v61 = vshrl.u32 %v5857_v36, 16  ;;  %v592_v63 = vshll.u32 %v5880_v45, 16  ;;  %v589_v1 = vrot.slane %v587_v50, 1  ;;  %v5223_v50 = vld [vmem:[%s7707_s1] sm:$0xff] }
  0x49   : > { %1490 = vmatpush.bf16.msrb.mxu3 %v5225_v53  ;;  %1579 = vmatpush.bf16.msrb.mxu0 %v5233_v54  ;;  %v578_v20 = vor.u32 %v577_v9, %v573_v2  ;;  %v674_v24 = vor.u32 %v673_v11, %v669_v10  ;;  %v5889_v53 = vsel %vm5607_vm2, %v430_v17, 0  ;;  %v379_v54 = vshrl.u32 %v5213_v38, 16 }
  0x4a   : > { %1663 = vmatpush.bf16.msrb.mxu1 %v5246_v52  ;;  %v681_v2 = vshrl.u32 %v5861_v37, 16  ;;  %v685_v8 = vrot.slane %v683_v51, 1  ;;  %v688_v9 = vshll.u32 %v5889_v53, 16  ;;  %v382_v11 = vshll.u32 %v5213_v38, 16 }
  0x4b   : > { %v5850_v30 = vsel %vm515_vm3, %v578_v20, %v582_v23  ;;  %v5853_v35 = vsel %vm515_vm3, %v674_v24, %v678_v25  ;;  %v381_v10 = vrot.slane %v379_v54, 7  ;;  %v437_v12 = vrot.slane %v435_v58, 7  ;;  %v5244_v58 = vld [vmem:[%s7707_s1 + $0xa8] sm:$0xff] }
  0x4c   : > { %7785 = vst [vmem:[#allocation10_spill] sm:$0xff] %v5850_v30  ;;  %1258 = vmatpush.bf16.msrb.mxu2 %v5264_v41  ;;  %v438_v14 = vshll.u32 %v5221_v39, 16  ;;  %v590_v15 = vor.u32 %v589_v1, %v585_v61  ;;  %v594_v17 = vrot.slane %v592_v63, 1  ;;  %v686_v19 = vor.u32 %v685_v8, %v681_v2  ;;  %v5214_v39 = vld [vmem:[%s5591_s17 + $0x38] sm:$0xff]  ;;  %v5231_v61 = vld [vmem:[%s7707_s1 + $0x40] sm:$0xff] }
  0x4d   : > { %1491 = vmatpush.bf16.msrb.mxu3 %v5224_v42  ;;  %1580 = vmatpush.bf16.msrb.mxu0 %v5232_v44  ;;  %v690_v20 = vrot.slane %v688_v9, 1  ;;  %v384_v23 = vor.u32 %v382_v11, %v381_v10  ;;  %v5222_v41 = vld [vmem:[%s5591_s17 + $0x78] sm:$0xff]  ;;  %v5245_v42 = vld [vmem:[%s7707_s1 + $0xb0] sm:$0xff]  ;;  %v5263_v44 = vld [vmem:[%s7707_s1 + $0x140] sm:$0xff]  ;;  %v5926_v51 = vsel %vm5607_vm2, %v381_v10, 0  ;;  %v5938_v63 = vsel %vm5607_vm2, %v437_v12, 0 }
  0x4e   : > { %v440_v24 = vor.u32 %v438_v14, %v437_v12  ;;  %v5896_v25 = vsel %vm515_vm3, %v590_v15, %v594_v17  ;;  %1664 = vmatpush.bf16.msrb.mxu1 %v5245_v42  ;;  %v386_v1 = vshrl.u32 %v5214_v39, 16  ;;  %v442_v2 = vshrl.u32 %v5222_v41, 16  ;;  %v5243_v12 = vld [vmem:[%s7707_s1 + $0xa0] sm:$0xff] }
  0x4f   : > { %7786 = vst [vmem:[#allocation11_spill] sm:$0xff] %v5896_v25  ;;  %v5899_v26 = vsel %vm515_vm3, %v686_v19, %v690_v20  ;;  %v5903_v28 = vsel %vm5607_vm2, 0, %v384_v23  ;;  %v604_v9 = vshll.u32 %v5926_v51, 16  ;;  %v700_v15 = vshll.u32 %v5938_v63, 16 }
  0x50   : > { %7787 = vst [vmem:[#allocation12_spill] sm:$0xff] %v5899_v26  ;;  %v5907_v38 = vsel %vm5607_vm2, 0, %v440_v24  ;;  %v599_v52 = vshll.u32 %v5903_v28, 16  ;;  %1259 = vmatpush.bf16.msrb.mxu2 %v5263_v44  ;;  %v597_v8 = vshrl.u32 %v5903_v28, 16  ;;  %v388_v17 = vrot.slane %v386_v1, 7  ;;  %v5241_v1 = vld [vmem:[%s7707_s1 + $0x90] sm:$0xff] }
  0x51   : > { %7788 = vst [vmem:[#allocation13_spill] sm:$0xff] %v5903_v28  ;;  %v695_v54 = vshll.u32 %v5907_v38, 16  ;;  %1492 = vmatpush.bf16.msrb.mxu3 %v5223_v50  ;;  %1581 = vmatpush.bf16.msrb.mxu0 %v5231_v61  ;;  %v693_v11 = vshrl.u32 %v5907_v38, 16  ;;  %v389_v19 = vshll.u32 %v5214_v39, 16  ;;  %v444_v20 = vrot.slane %v442_v2, 7  ;;  %v5278_v2 = vld [vmem:[%s7707_s1 + $0x1b8] sm:$0xff] }
  0x52   : > { %v601_v10 = vrot.slane %v599_v52, 1  ;;  %1665 = vmatpush.bf16.msrb.mxu1 %v5244_v58  ;;  %v445_v23 = vshll.u32 %v5222_v41, 16  ;;  %v606_v42 = vrot.slane %v604_v9, 1  ;;  %v702_v50 = vrot.slane %v700_v15, 1  ;;  %v5240_v15 = vld [vmem:[%s7707_s1 + $0x88] sm:$0xff] }
  0x53   : > { %1092 = vmatmul.bf16.gmra.mxu0 %v5728_v33  ;;  %1132 = vmatmul.bf16.gmra.mxu2 %v5732_v34  ;;  %v697_v14 = vrot.slane %v695_v54, 1  ;;  %v391_v52 = vor.u32 %v389_v19, %v388_v17  ;;  %v5242_v54 = vld [vmem:[%s7707_s1 + $0x98] sm:$0xff]  ;;  %v5979_v9 = vsel %vm5607_vm2, %v388_v17, 0 }
  0x54   : > { %1181 = vmatmul.bf16.gmra.mxu1 %v5764_v3  ;;  %v602_v24 = vor.u32 %v601_v10, %v597_v8  ;;  %v447_v61 = vor.u32 %v445_v23, %v444_v20  ;;  %v5286_v8 = vld [vmem:[%s7707_s1 + $0x1f8] sm:$0xff]  ;;  %1944 = vmatpush.bf16.msra.mxu2 %v5278_v2  ;;  %v616_v17 = vshll.u32 %v5979_v9, 16 }
  0x55   : > { %v698_v44 = vor.u32 %v697_v14, %v693_v11  ;;  %v5958_v39 = vsel %vm5607_vm2, 0, %v391_v52  ;;  %v5985_v14 = vsel %vm5607_vm2, %v444_v20, 0  ;;  %2033 = vmatpush.bf16.msra.mxu3 %v5286_v8  ;;  %v5294_v20 = vld [vmem:[%s7707_s1 + $0x238] sm:$0xff]  ;;  %v769_v8 = vrot.slane %v5619_v21, 1 }
  0x56   : > { %1221 = vmatmul.bf16.gmra.mxu3 %v5767_v5  ;;  %1666 = vmatpush.bf16.msrb.mxu1 %v5243_v12  ;;  %v5951_v58 = vsel %vm515_vm3, %v602_v24, %v606_v42  ;;  %7790 = vst [vmem:[#allocation15_spill] sm:$0xff] %v5958_v39  ;;  %v5962_v41 = vsel %vm5607_vm2, 0, %v447_v61  ;;  %v611_v10 = vshll.u32 %v5958_v39, 16  ;;  %v609_v12 = vshrl.u32 %v5958_v39, 16 }
  0x57   : > { %7789 = vst [vmem:[#allocation14_spill] sm:$0xff] %v5951_v58  ;;  %v707_v11 = vshll.u32 %v5962_v41, 16  ;;  %v705_v23 = vshrl.u32 %v5962_v41, 16  ;;  %v712_v42 = vshll.u32 %v5985_v14, 16  ;;  %2122 = vmatpush.bf16.msra.mxu0 %v5294_v20  ;;  %v618_v52 = vrot.slane %v616_v17, 1 }
  0x58   : > { %v613_v19 = vrot.slane %v611_v10, 1  ;;  %v770_v10 = vrot.slane %v5635_v27, 1  ;;  %v5277_v27 = vld [vmem:[%s7707_s1 + $0x1b0] sm:$0xff] }
  0x59   : > { %v709_v24 = vrot.slane %v707_v11, 1  ;;  %v7714_v11 = vmov 0   ;;  %1945 = vmatpush.bf16.msra.mxu2 %v5277_v27 }
  0x5a   : > { %1667 = vmatpush.bf16.msrb.mxu1 %v5242_v54  ;;  %v714_v54 = vrot.slane %v712_v42, 1  ;;  %v771_v17 = vsel %vm766_vm4, %v769_v8, %v770_v10  ;;  %v772_v8 = vrot.slane %v5679_v59, 1  ;;  %v773_v10 = vrot.slane %v5696_v0, 1 }
  0x5b   : > { %v710_v61 = vor.u32 %v709_v24, %v705_v23  ;;  %v5285_v24 = vld [vmem:[%s7707_s1 + $0x1f0] sm:$0xff] }
  0x5c   : > { %2034 = vmatpush.bf16.msra.mxu3 %v5285_v24 }
  0x5d   : > { %v6004_v2 = vsel %vm515_vm3, %v710_v61, %v714_v54  ;;  %v5293_v54 = vld [vmem:[%s7707_s1 + $0x230] sm:$0xff] }
  0x5e   : > { %1668 = vmatpush.bf16.msrb.mxu1 %v5241_v1  ;;  %7792 = vst [vmem:[#allocation17_spill] sm:$0xff] %v6004_v2  ;;  %2123 = vmatpush.bf16.msra.mxu0 %v5293_v54 }
  0x62   : > { %1669 = vmatpush.bf16.msrb.mxu1 %v5240_v15  ;;  %v6013_v15 = vrot.slane %v7714_v11, 1 }
  0x63   : > { %1097 = vmatmul.bf16.gmra.mxu0 %v5771_v6  ;;  %1137 = vmatmul.bf16.gmra.mxu2 %v5775_v7 }
  0x64   : > { %1186 = vmatmul.bf16.gmra.mxu1 %v5807_v46  ;;  %7793 = vst [vmem:[#allocation18_spill] sm:$0xff] %v6013_v15 }
  0x66   : > { %1226 = vmatmul.bf16.gmra.mxu3 %v5810_v47 }
  0x73   : > { %1102 = vmatmul.bf16.gmra.mxu0 %v5814_v48  ;;  %1142 = vmatmul.bf16.gmra.mxu2 %v5818_v49 }
  0x74   : > { %1191 = vmatmul.bf16.gmra.mxu1 %v5850_v30 }
  0x76   : > { %1231 = vmatmul.bf16.gmra.mxu3 %v5853_v35 }
  0x83   : > { %1107 = vmatmul.bf16.gmra.mxu0 %v5857_v36  ;;  %1147 = vmatmul.bf16.gmra.mxu2 %v5861_v37 }
  0x84   : > { %1196 = vmatmul.bf16.gmra.mxu1 %v5896_v25 }
  0x86   : > { %1236 = vmatmul.bf16.gmra.mxu3 %v5899_v26  ;;  %v5954_v26 = vsel %vm515_vm3, %v698_v44, %v702_v50  ;;  %v5239_v44 = vld [vmem:[%s7707_s1 + $0x80] sm:$0xff]  ;;  %v614_v50 = vor.u32 %v613_v19, %v609_v12 }
  0x87   : > { %1670 = vmatpush.bf16.msrb.mxu1 %v5239_v44 }
  0x88   : > { %v6001_v1 = vsel %vm515_vm3, %v614_v50, %v618_v52 }
  0x89   : > { %7791 = vst [vmem:[#allocation16_spill] sm:$0xff] %v6001_v1 }
  0x93   : > { %1112 = vmatmul.bf16.gmra.mxu0 %v5903_v28  ;;  %1152 = vmatmul.bf16.gmra.mxu2 %v5907_v38 }
  0x94   : > { %1201 = vmatmul.bf16.gmra.mxu1 %v5951_v58 }
  0x96   : > { %1241 = vmatmul.bf16.gmra.mxu3 %v5954_v26 }
  0xa3   : > { %1117 = vmatmul.bf16.gmra.mxu0 %v5958_v39  ;;  %1157 = vmatmul.bf16.gmra.mxu2 %v5962_v41 }
  0xa4   : > { %1206 = vmatmul.bf16.gmra.mxu1 %v6001_v1 }
  0xa6   : > { %1246 = vmatmul.bf16.gmra.mxu3 %v6004_v2 }
  0xb0   : > { %v1083_v12 = vpop.f32.mrf.mxu0 }
  0xb1   : > { %v1172_v19 = vpop.f32.mrf.mxu1 }
  0xb2   : > { %v6016_v23 = vadd.f32 %v1172_v19, %v1083_v12 }
  0xb3   : > { %1260 = vmatmul.bf16.vlgmr.msrb.gmra.mxu2 %v771_v17  ;;  %1582 = vmatmul.bf16.vlgmr.msrb.gmra.mxu0 %v6013_v15 }
  0xb4   : > { %1671 = vmatmul.bf16.vlgmr.msrb.gmra.mxu1 %v6013_v15 }
  0xb6   : > { %1493 = vmatmul.bf16.vlgmr.msrb.gmra.mxu3 %v7714_v11  ;;  %v1123_v42 = vpop.f32.mrf.mxu2 }
  0xb8   : > { %v1085_v50 = vpop.f32.mrf.mxu0 }
  0xb9   : > { %v1212_v20 = vpop.f32.mrf.mxu3  ;;  %v1174_v52 = vpop.f32.mrf.mxu1 }
  0xba   : > { %v6027_v44 = vadd.f32 %v1212_v20, %v1123_v42  ;;  %v6029_v61 = vadd.f32 %v1174_v52, %v1085_v50  ;;  %v6039_v42 = vsel %vm766_vm4, %v772_v8, %v773_v10  ;;  %v775_v8 = vrot.slane %v5728_v33, 1 }
  0xbb   : > { %v776_v10 = vrot.slane %v5751_v40, 1  ;;  %v5276_v40 = vld [vmem:[%s7707_s1 + $0x1a8] sm:$0xff] }
  0xbc   : > { %1946 = vmatpush.bf16.msra.mxu2 %v5276_v40 }
  0xbe   : > { %v1125_v12 = vpop.f32.mrf.mxu2 }
  0xc0   : > { %v1088_v24 = vpop.f32.mrf.mxu0 }
  0xc1   : > { %v1214_v19 = vpop.f32.mrf.mxu3  ;;  %v1177_v20 = vpop.f32.mrf.mxu1 }
  0xc2   : > { %v6036_v27 = vadd.f32 %v1214_v19, %v1125_v12  ;;  %v6041_v50 = vadd.f32 %v1177_v20, %v1088_v24 }
  0xc3   : > { %1265 = vmatmul.bf16.gmra.mxu2 %v6039_v42  ;;  %1587 = vmatmul.bf16.gmra.mxu0 %v5666_v55 }
  0xc4   : > { %1676 = vmatmul.bf16.gmra.mxu1 %v771_v17 }
  0xc6   : > { %1498 = vmatmul.bf16.gmra.mxu3 %v5619_v21  ;;  %v1128_v0 = vpop.f32.mrf.mxu2  ;;  %v6055_v21 = vsel %vm766_vm4, %v775_v8, %v776_v10 }
  0xc7   : > { %7796 = vst [vmem:[#allocation21_spill] sm:$0xff] %v6055_v21 }
  0xc8   : > { %v1090_v12 = vpop.f32.mrf.mxu0 }
  0xc9   : > { %v1217_v52 = vpop.f32.mrf.mxu3  ;;  %v1179_v19 = vpop.f32.mrf.mxu1 }
  0xca   : > { %v6046_v54 = vadd.f32 %v1217_v52, %v1128_v0  ;;  %v6048_v11 = vadd.f32 %v1179_v19, %v1090_v12  ;;  %v5284_v0 = vld [vmem:[%s7707_s1 + $0x1e8] sm:$0xff] }
  0xcb   : > { %2035 = vmatpush.bf16.msra.mxu3 %v5284_v0 }
  0xcc   : > { %7794 = vst [vmem:[#allocation19_spill] sm:$0xff] %v6046_v54 }
  0xce   : > { %v1130_v24 = vpop.f32.mrf.mxu2 }
  0xd0   : > { %v1093_v55 = vpop.f32.mrf.mxu0 }
  0xd1   : > { %v1219_v20 = vpop.f32.mrf.mxu3  ;;  %v1182_v17 = vpop.f32.mrf.mxu1 }
  0xd2   : > { %v6052_v15 = vadd.f32 %v1219_v20, %v1130_v24  ;;  %v6057_v2 = vadd.f32 %v1182_v17, %v1093_v55  ;;  %v5292_v20 = vld [vmem:[%s7707_s1 + $0x228] sm:$0xff]  ;;  %v778_v55 = vrot.slane %v5771_v6, 1  ;;  %v779_v17 = vrot.slane %v5794_v13, 1 }
  0xd3   : > { %1270 = vmatmul.bf16.gmra.mxu2 %v6055_v21  ;;  %1592 = vmatmul.bf16.gmra.mxu0 %v5721_v31 }
  0xd4   : > { %7795 = vst [vmem:[#allocation20_spill] sm:$0xff] %v6052_v15  ;;  %1681 = vmatmul.bf16.gmra.mxu1 %v6039_v42  ;;  %2124 = vmatpush.bf16.msra.mxu0 %v5292_v20 }
  0xd6   : > { %1503 = vmatmul.bf16.gmra.mxu3 %v5679_v59  ;;  %v1133_v52 = vpop.f32.mrf.mxu2 }
  0xd8   : > { %v1095_v8 = vpop.f32.mrf.mxu0 }
  0xd9   : > { %v1222_v12 = vpop.f32.mrf.mxu3  ;;  %v1184_v10 = vpop.f32.mrf.mxu1 }
  0xda   : > { %v6069_v19 = vadd.f32 %v1222_v12, %v1133_v52  ;;  %v6071_v24 = vadd.f32 %v1184_v10, %v1095_v8  ;;  %v6081_v52 = vsel %vm766_vm4, %v778_v55, %v779_v17  ;;  %v781_v55 = vrot.slane %v5814_v48, 1 }
  0xdb   : > { %v782_v17 = vrot.slane %v5837_v57, 1  ;;  %v5275_v57 = vld [vmem:[%s7707_s1 + $0x1a0] sm:$0xff] }
  0xdc   : > { %7797 = vst [vmem:[#allocation22_spill] sm:$0xff] %v6069_v19  ;;  %1947 = vmatpush.bf16.msra.mxu2 %v5275_v57 }
  0xde   : > { %v1135_v18 = vpop.f32.mrf.mxu2 }
  0xe0   : > { %v1098_v0 = vpop.f32.mrf.mxu0 }
  0xe1   : > { %v1224_v15 = vpop.f32.mrf.mxu3  ;;  %v1187_v12 = vpop.f32.mrf.mxu1 }
  0xe2   : > { %v6078_v40 = vadd.f32 %v1224_v15, %v1135_v18  ;;  %v6083_v8 = vadd.f32 %v1187_v12, %v1098_v0 }
  0xe3   : > { %1275 = vmatmul.bf16.gmra.mxu2 %v6081_v52  ;;  %1597 = vmatmul.bf16.gmra.mxu0 %v5764_v3  ;;  %v6098_v3 = vsel %vm766_vm4, %v781_v55, %v782_v17  ;;  %v5291_v17 = vld [vmem:[%s7707_s1 + $0x220] sm:$0xff] }
  0xe4   : > { %7798 = vst [vmem:[#allocation23_spill] sm:$0xff] %v6078_v40  ;;  %1686 = vmatmul.bf16.gmra.mxu1 %v6055_v21  ;;  %2125 = vmatpush.bf16.msra.mxu0 %v5291_v17 }
  0xe5   : > { %7801 = vst [vmem:[#allocation26_spill] sm:$0xff] %v6098_v3 }
  0xe6   : > { %1508 = vmatmul.bf16.gmra.mxu3 %v5728_v33  ;;  %v1138_v13 = vpop.f32.mrf.mxu2 }
  0xe8   : > { %v1100_v18 = vpop.f32.mrf.mxu0 }
  0xe9   : > { %v1227_v10 = vpop.f32.mrf.mxu3  ;;  %v1189_v15 = vpop.f32.mrf.mxu1 }
  0xea   : > { %v6089_v20 = vadd.f32 %v1227_v10, %v1138_v13  ;;  %v6091_v40 = vadd.f32 %v1189_v15, %v1100_v18  ;;  %v5283_v13 = vld [vmem:[%s7707_s1 + $0x1e0] sm:$0xff] }
  0xeb   : > { %2036 = vmatpush.bf16.msra.mxu3 %v5283_v13 }
  0xec   : > { %7799 = vst [vmem:[#allocation24_spill] sm:$0xff] %v6089_v20 }
  0xee   : > { %v1140_v0 = vpop.f32.mrf.mxu2 }
  0xf0   : > { %v1103_v54 = vpop.f32.mrf.mxu0 }
  0xf1   : > { %v1229_v12 = vpop.f32.mrf.mxu3  ;;  %v1192_v21 = vpop.f32.mrf.mxu1 }
  0xf2   : > { %v6095_v19 = vadd.f32 %v1229_v12, %v1140_v0  ;;  %v6100_v33 = vadd.f32 %v1192_v21, %v1103_v54  ;;  %v784_v0 = vrot.slane %v5857_v36, 1  ;;  %v785_v12 = vrot.slane %v5880_v45, 1 }
  0xf3   : > { %1280 = vmatmul.bf16.gmra.mxu2 %v6098_v3  ;;  %1602 = vmatmul.bf16.gmra.mxu0 %v5807_v46 }
  0xf4   : > { %7800 = vst [vmem:[#allocation25_spill] sm:$0xff] %v6095_v19  ;;  %1691 = vmatmul.bf16.gmra.mxu1 %v6081_v52 }
  0xf6   : > { %1513 = vmatmul.bf16.gmra.mxu3 %v5771_v6  ;;  %v1143_v10 = vpop.f32.mrf.mxu2 }
  0xf8   : > { %v1105_v18 = vpop.f32.mrf.mxu0 }
  0xf9   : > { %v1232_v54 = vpop.f32.mrf.mxu3  ;;  %v1194_v15 = vpop.f32.mrf.mxu1 }
  0xfa   : > { %v6112_v21 = vadd.f32 %v1232_v54, %v1143_v10  ;;  %v6114_v55 = vadd.f32 %v1194_v15, %v1105_v18  ;;  %v6124_v10 = vsel %vm766_vm4, %v784_v0, %v785_v12  ;;  %v787_v0 = vrot.slane %v5903_v28, 1 }
  0xfb   : > { %v788_v12 = vrot.slane %v5926_v51, 1  ;;  %v5274_v51 = vld [vmem:[%s7707_s1 + $0x198] sm:$0xff] }
  0xfc   : > { %7802 = vst [vmem:[#allocation27_spill] sm:$0xff] %v6112_v21  ;;  %1948 = vmatpush.bf16.msra.mxu2 %v5274_v51 }
  0xfe   : > { %v1145_v19 = vpop.f32.mrf.mxu2 }
 0x100   : > { %v1108_v13 = vpop.f32.mrf.mxu0 }
 0x101   : > { %v1234_v20 = vpop.f32.mrf.mxu3  ;;  %v1197_v54 = vpop.f32.mrf.mxu1 }
 0x102   : > { %v6121_v57 = vadd.f32 %v1234_v20, %v1145_v19  ;;  %v6126_v18 = vadd.f32 %v1197_v54, %v1108_v13 }
 0x103   : > { %1285 = vmatmul.bf16.gmra.mxu2 %v6124_v10  ;;  %1607 = vmatmul.bf16.gmra.mxu0 %v5850_v30 }
 0x104   : > { %7803 = vst [vmem:[#allocation28_spill] sm:$0xff] %v6121_v57  ;;  %1696 = vmatmul.bf16.gmra.mxu1 %v6098_v3 }
 0x106   : > { %1518 = vmatmul.bf16.gmra.mxu3 %v5814_v48  ;;  %v1148_v45 = vpop.f32.mrf.mxu2  ;;  %v6141_v48 = vsel %vm766_vm4, %v787_v0, %v788_v12  ;;  %v5290_v0 = vld [vmem:[%s7707_s1 + $0x218] sm:$0xff] }
 0x107   : > { %7806 = vst [vmem:[#allocation31_spill] sm:$0xff] %v6141_v48  ;;  %2126 = vmatpush.bf16.msra.mxu0 %v5290_v0 }
 0x108   : > { %v1110_v19 = vpop.f32.mrf.mxu0 }
 0x109   : > { %v1237_v15 = vpop.f32.mrf.mxu3  ;;  %v1199_v20 = vpop.f32.mrf.mxu1 }
 0x10a   : > { %v6132_v17 = vadd.f32 %v1237_v15, %v1148_v45  ;;  %v6134_v57 = vadd.f32 %v1199_v20, %v1110_v19  ;;  %v5282_v45 = vld [vmem:[%s7707_s1 + $0x1d8] sm:$0xff] }
 0x10b   : > { %2037 = vmatpush.bf16.msra.mxu3 %v5282_v45 }
 0x10c   : > { %7804 = vst [vmem:[#allocation29_spill] sm:$0xff] %v6132_v17 }
 0x10e   : > { %v1150_v13 = vpop.f32.mrf.mxu2 }
 0x110   : > { %v1113_v30 = vpop.f32.mrf.mxu0 }
 0x111   : > { %v1239_v54 = vpop.f32.mrf.mxu3  ;;  %v1202_v3 = vpop.f32.mrf.mxu1 }
 0x112   : > { %v6138_v21 = vadd.f32 %v1239_v54, %v1150_v13  ;;  %v6143_v46 = vadd.f32 %v1202_v3, %v1113_v30  ;;  %v790_v13 = vrot.slane %v5958_v39, 1  ;;  %v791_v54 = vrot.slane %v5979_v9, 1 }
 0x113   : > { %1290 = vmatmul.bf16.gmra.mxu2 %v6141_v48  ;;  %1612 = vmatmul.bf16.gmra.mxu0 %v5896_v25 }
 0x114   : > { %7805 = vst [vmem:[#allocation30_spill] sm:$0xff] %v6138_v21  ;;  %1701 = vmatmul.bf16.gmra.mxu1 %v6124_v10 }
 0x116   : > { %1523 = vmatmul.bf16.gmra.mxu3 %v5857_v36  ;;  %v1153_v15 = vpop.f32.mrf.mxu2 }
 0x118   : > { %v1115_v19 = vpop.f32.mrf.mxu0 }
 0x119   : > { %v1242_v3 = vpop.f32.mrf.mxu3  ;;  %v1204_v20 = vpop.f32.mrf.mxu1 }
 0x11a   : > { %v6155_v30 = vadd.f32 %v1242_v3, %v1153_v15  ;;  %v6160_v12 = vadd.f32 %v1204_v20, %v1115_v19  ;;  %v6167_v15 = vsel %vm766_vm4, %v790_v13, %v791_v54  ;;  %v793_v13 = vrot.slane %v5623_v22, 1 }
 0x11b   : > { %7809 = vst [vmem:[#allocation34_spill] sm:$0xff] %v6167_v15  ;;  %v794_v54 = vrot.slane %v5640_v29, 1  ;;  %v5273_v29 = vld [vmem:[%s7707_s1 + $0x190] sm:$0xff] }
 0x11c   : > { %7807 = vst [vmem:[#allocation32_spill] sm:$0xff] %v6155_v30  ;;  %1949 = vmatpush.bf16.msra.mxu2 %v5273_v29  ;;  %v796_v29 = vrot.slane %v5683_v60, 1 }
 0x11e   : > { %v1155_v21 = vpop.f32.mrf.mxu2 }
 0x120   : > { %v1118_v45 = vpop.f32.mrf.mxu0 }
 0x121   : > { %v1244_v17 = vpop.f32.mrf.mxu3  ;;  %v1207_v3 = vpop.f32.mrf.mxu1 }
 0x122   : > { %v6164_v51 = vadd.f32 %v1244_v17, %v1155_v21  ;;  %v6169_v30 = vadd.f32 %v1207_v3, %v1118_v45 }
 0x123   : > { %1295 = vmatmul.bf16.gmra.mxu2 %v6167_v15  ;;  %1617 = vmatmul.bf16.gmra.mxu0 %v5951_v58 }
 0x124   : > { %7808 = vst [vmem:[#allocation33_spill] sm:$0xff] %v6164_v51  ;;  %1706 = vmatmul.bf16.gmra.mxu1 %v6141_v48 }
 0x126   : > { %1528 = vmatmul.bf16.gmra.mxu3 %v5903_v28  ;;  %v1158_v9 = vpop.f32.mrf.mxu2  ;;  %v6184_v28 = vsel %vm766_vm4, %v793_v13, %v794_v54 }
 0x128   : > { %v1120_v21 = vpop.f32.mrf.mxu0 }
 0x129   : > { %v1247_v19 = vpop.f32.mrf.mxu3  ;;  %v1209_v17 = vpop.f32.mrf.mxu1 }
 0x12a   : > { %v6175_v20 = vadd.f32 %v1247_v19, %v1158_v9  ;;  %v6177_v0 = vadd.f32 %v1209_v17, %v1120_v21  ;;  %v5281_v9 = vld [vmem:[%s7707_s1 + $0x1d0] sm:$0xff] }
 0x12b   : > { %2038 = vmatpush.bf16.msra.mxu3 %v5281_v9  ;;  %v797_v9 = vrot.slane %v5705_v4, 1 }
 0x12c   : > { %7810 = vst [vmem:[#allocation35_spill] sm:$0xff] %v6175_v20 }
 0x12e   : > { %v1160_v45 = vpop.f32.mrf.mxu2 }
 0x130   : > { %v1583_v58 = vpop.f32.mrf.mxu0 }
 0x131   : > { %v1249_v3 = vpop.f32.mrf.mxu3  ;;  %v1672_v48 = vpop.f32.mrf.mxu1 }
 0x132   : > { %v6181_v51 = vadd.f32 %v1249_v3, %v1160_v45  ;;  %v5326_v3 = vld [vmem:[%s7709_s3 + $0xf8] sm:$0xff] }
 0x133   : > { %1300 = vmatmul.bf16.gmra.mxu2 %v6184_v28  ;;  %1622 = vmatmul.bf16.gmra.mxu0 %v6001_v1 }
 0x134   : > { %7811 = vst [vmem:[#allocation36_spill] sm:$0xff] %v6181_v51  ;;  %1711 = vmatmul.bf16.gmra.mxu1 %v6167_v15  ;;  %v5289_v51 = vld [vmem:[%s7707_s1 + $0x210] sm:$0xff]  ;;  %v6209_v15 = vsel %vm766_vm4, %v796_v29, %v797_v9  ;;  %v799_v9 = vrot.slane %v5732_v34, 1 }
 0x135   : > { %3143 = vmatpush.bf16.msra.mxu1 %v5326_v3  ;;  %2127 = vmatpush.bf16.msra.mxu0 %v5289_v51 }
 0x136   : > { %1533 = vmatmul.bf16.gmra.mxu3 %v5958_v39  ;;  %v1261_v19 = vpop.f32.mrf.mxu2 }
 0x137   : > { %v1262_v21 = vadd.f32 %v1261_v19, %v6016_v23 }
 0x138   : > { %v1585_v13 = vpop.f32.mrf.mxu0 }
 0x139   : > { %v1494_v17 = vpop.f32.mrf.mxu3  ;;  %v1674_v45 = vpop.f32.mrf.mxu1 }
 0x13a   : > { %v1495_v54 = vadd.f32 %v1494_v17, %v1262_v21 }
 0x13c   : > { %v1584_v20 = vadd.f32 %v1583_v58, %v1495_v54 }
 0x13e   : > { %v6205_v23 = vadd.f32 %v1672_v48, %v1584_v20  ;;  %v1263_v19 = vpop.f32.mrf.mxu2 }
 0x13f   : > { %v1264_v21 = vadd.f32 %v1263_v19, %v6029_v61  ;;  %v800_v19 = vrot.slane %v5757_v43, 1  ;;  %v5272_v43 = vld [vmem:[%s7707_s1 + $0x188] sm:$0xff] }
 0x140   : > { %v1588_v1 = vpop.f32.mrf.mxu0  ;;  %1950 = vmatpush.bf16.msra.mxu2 %v5272_v43 }
 0x141   : > { %v1496_v17 = vpop.f32.mrf.mxu3  ;;  %v1677_v25 = vpop.f32.mrf.mxu1 }
 0x142   : > { %v1497_v39 = vadd.f32 %v1496_v17, %v1264_v21 }
 0x143   : > { %1305 = vmatmul.bf16.gmra.mxu2 %v6209_v15  ;;  %1627 = vmatmul.bf16.gmra.mxu0 %v5669_v56 }
 0x144   : > { %v1586_v58 = vadd.f32 %v1585_v13, %v1497_v39  ;;  %1716 = vmatmul.bf16.gmra.mxu1 %v6184_v28 }
 0x146   : > { %1538 = vmatmul.bf16.gmra.mxu3 %v5623_v22  ;;  %v6215_v4 = vadd.f32 %v1674_v45, %v1586_v58  ;;  %v1266_v48 = vpop.f32.mrf.mxu2  ;;  %v6224_v58 = vsel %vm766_vm4, %v799_v9, %v800_v19  ;;  %v5325_v19 = vld [vmem:[%s7709_s3 + $0xf0] sm:$0xff] }
 0x147   : > { %v1267_v61 = vadd.f32 %v1266_v48, %v6041_v50  ;;  %3144 = vmatpush.bf16.msra.mxu1 %v5325_v19 }
 0x148   : > { %v1590_v20 = vpop.f32.mrf.mxu0 }
 0x149   : > { %v1499_v51 = vpop.f32.mrf.mxu3  ;;  %v1679_v3 = vpop.f32.mrf.mxu1 }
 0x14a   : > { %v1500_v54 = vadd.f32 %v1499_v51, %v1267_v61 }
 0x14c   : > { %v1589_v29 = vadd.f32 %v1588_v1, %v1500_v54 }
 0x14e   : > { %v6220_v21 = vadd.f32 %v1677_v25, %v1589_v29  ;;  %v1268_v39 = vpop.f32.mrf.mxu2  ;;  %v5280_v25 = vld [vmem:[%s7707_s1 + $0x1c8] sm:$0xff] }
 0x14f   : > { %v1269_v13 = vadd.f32 %v1268_v39, %v6048_v11  ;;  %2039 = vmatpush.bf16.msra.mxu3 %v5280_v25  ;;  %v5288_v39 = vld [vmem:[%s7707_s1 + $0x208] sm:$0xff] }
 0x150   : > { %v1593_v45 = vpop.f32.mrf.mxu0  ;;  %2128 = vmatpush.bf16.msra.mxu0 %v5288_v39 }
 0x151   : > { %v1501_v17 = vpop.f32.mrf.mxu3  ;;  %v1682_v48 = vpop.f32.mrf.mxu1 }
 0x152   : > { %v1502_v50 = vadd.f32 %v1501_v17, %v1269_v13  ;;  %v803_v17 = vrot.slane %v5800_v16, 1 }
 0x153   : > { %1310 = vmatmul.bf16.gmra.mxu2 %v6224_v58  ;;  %1632 = vmatmul.bf16.gmra.mxu0 %v5724_v32 }
 0x154   : > { %v1591_v1 = vadd.f32 %v1590_v20, %v1502_v50  ;;  %1721 = vmatmul.bf16.gmra.mxu1 %v6209_v15 }
 0x156   : > { %1543 = vmatmul.bf16.gmra.mxu3 %v5683_v60  ;;  %v6236_v11 = vadd.f32 %v1679_v3, %v1591_v1  ;;  %v1271_v61 = vpop.f32.mrf.mxu2  ;;  %v802_v3 = vrot.slane %v5775_v7, 1 }
 0x157   : > { %v1272_v51 = vadd.f32 %v1271_v61, %v6057_v2 }
 0x158   : > { %v1595_v54 = vpop.f32.mrf.mxu0  ;;  %v6251_v61 = vsel %vm766_vm4, %v802_v3, %v803_v17  ;;  %v805_v17 = vrot.slane %v5818_v49, 1 }
 0x159   : > { %v1504_v20 = vpop.f32.mrf.mxu3  ;;  %v1684_v9 = vpop.f32.mrf.mxu1 }
 0x15a   : > { %v1505_v29 = vadd.f32 %v1504_v20, %v1272_v51 }
 0x15c   : > { %v1594_v13 = vadd.f32 %v1593_v45, %v1505_v29 }
 0x15e   : > { %v6247_v2 = vadd.f32 %v1682_v48, %v1594_v13  ;;  %v1273_v50 = vpop.f32.mrf.mxu2 }
 0x15f   : > { %v1274_v1 = vadd.f32 %v1273_v50, %v6071_v24  ;;  %v806_v50 = vrot.slane %v5843_v62, 1  ;;  %v5271_v62 = vld [vmem:[%s7707_s1 + $0x180] sm:$0xff] }
 0x160   : > { %v1598_v25 = vpop.f32.mrf.mxu0  ;;  %1951 = vmatpush.bf16.msra.mxu2 %v5271_v62 }
 0x161   : > { %v1506_v43 = vpop.f32.mrf.mxu3  ;;  %v1687_v20 = vpop.f32.mrf.mxu1 }
 0x162   : > { %v1507_v51 = vadd.f32 %v1506_v43, %v1274_v1 }
 0x163   : > { %1315 = vmatmul.bf16.gmra.mxu2 %v6251_v61  ;;  %1637 = vmatmul.bf16.gmra.mxu0 %v5767_v5 }
 0x164   : > { %v1596_v45 = vadd.f32 %v1595_v54, %v1507_v51  ;;  %1726 = vmatmul.bf16.gmra.mxu1 %v6224_v58 }
 0x166   : > { %1548 = vmatmul.bf16.gmra.mxu3 %v5732_v34  ;;  %v6257_v16 = vadd.f32 %v1684_v9, %v1596_v45  ;;  %v1276_v48 = vpop.f32.mrf.mxu2  ;;  %v6266_v45 = vsel %vm766_vm4, %v805_v17, %v806_v50  ;;  %v5324_v50 = vld [vmem:[%s7709_s3 + $0xe8] sm:$0xff] }
 0x167   : > { %v1277_v24 = vadd.f32 %v1276_v48, %v6083_v8  ;;  %3145 = vmatpush.bf16.msra.mxu1 %v5324_v50 }
 0x168   : > { %v1600_v19 = vpop.f32.mrf.mxu0 }
 0x169   : > { %v1509_v29 = vpop.f32.mrf.mxu3  ;;  %v1689_v13 = vpop.f32.mrf.mxu1 }
 0x16a   : > { %v1510_v39 = vadd.f32 %v1509_v29, %v1277_v24 }
 0x16c   : > { %v1599_v3 = vadd.f32 %v1598_v25, %v1510_v39 }
 0x16e   : > { %v6262_v1 = vadd.f32 %v1687_v20, %v1599_v3  ;;  %v1278_v54 = vpop.f32.mrf.mxu2 }
 0x16f   : > { %v1279_v43 = vadd.f32 %v1278_v54, %v6091_v40  ;;  %v5279_v40 = vld [vmem:[%s7707_s1 + $0x1c0] sm:$0xff] }
 0x170   : > { %v1603_v9 = vpop.f32.mrf.mxu0  ;;  %2040 = vmatpush.bf16.msra.mxu3 %v5279_v40  ;;  %v5287_v54 = vld [vmem:[%s7707_s1 + $0x200] sm:$0xff] }
 0x171   : > { %v1511_v51 = vpop.f32.mrf.mxu3  ;;  %v1692_v48 = vpop.f32.mrf.mxu1  ;;  %2129 = vmatpush.bf16.msra.mxu0 %v5287_v54 }
 0x172   : > { %v1512_v8 = vadd.f32 %v1511_v51, %v1279_v43  ;;  %v808_v43 = vrot.slane %v5861_v37, 1 }
 0x173   : > { %1320 = vmatmul.bf16.gmra.mxu2 %v6266_v45  ;;  %1642 = vmatmul.bf16.gmra.mxu0 %v5810_v47 }
 0x174   : > { %v1601_v25 = vadd.f32 %v1600_v19, %v1512_v8  ;;  %1731 = vmatmul.bf16.gmra.mxu1 %v6251_v61 }
 0x176   : > { %1553 = vmatmul.bf16.gmra.mxu3 %v5775_v7  ;;  %v6278_v20 = vadd.f32 %v1689_v13, %v1601_v25  ;;  %v1281_v24 = vpop.f32.mrf.mxu2 }
 0x177   : > { %v1282_v29 = vadd.f32 %v1281_v24, %v6100_v33  ;;  %v809_v33 = vrot.slane %v5889_v53, 1 }
 0x178   : > { %v1605_v39 = vpop.f32.mrf.mxu0 }
 0x179   : > { %v1514_v19 = vpop.f32.mrf.mxu3  ;;  %v6281_v17 = vpop.f32.mrf.mxu1  ;;  %v6295_v24 = vsel %vm766_vm4, %v808_v43, %v809_v33  ;;  %v811_v43 = vrot.slane %v5907_v38, 1  ;;  %v812_v33 = vrot.slane %v5938_v63, 1 }
 0x17a   : > { %v1515_v3 = vadd.f32 %v1514_v19, %v1282_v29  ;;  %7812 = vst [vmem:[#allocation37_spill] sm:$0xff] %v6281_v17 }
 0x17b   : > { %v6312_v17 = vsel %vm766_vm4, %v811_v43, %v812_v33  ;;  %v5323_v43 = vld [vmem:[%s7709_s3 + $0xe0] sm:$0xff] }
 0x17c   : > { %v1604_v13 = vadd.f32 %v1603_v9, %v1515_v3  ;;  %3146 = vmatpush.bf16.msra.mxu1 %v5323_v43 }
 0x17e   : > { %v6291_v51 = vadd.f32 %v1692_v48, %v1604_v13  ;;  %v1283_v8 = vpop.f32.mrf.mxu2 }
 0x17f   : > { %v1284_v25 = vadd.f32 %v1283_v8, %v6114_v55 }
 0x180   : > { %v1608_v40 = vpop.f32.mrf.mxu0 }
 0x181   : > { %v1516_v62 = vpop.f32.mrf.mxu3  ;;  %v1697_v19 = vpop.f32.mrf.mxu1 }
 0x182   : > { %v1517_v29 = vadd.f32 %v1516_v62, %v1284_v25 }
 0x183   : > { %1325 = vmatmul.bf16.gmra.mxu2 %v6295_v24  ;;  %1647 = vmatmul.bf16.gmra.mxu0 %v5853_v35 }
 0x184   : > { %v6299_v9 = vadd.f32 %v1605_v39, %v1517_v29  ;;  %1736 = vmatmul.bf16.gmra.mxu1 %v6266_v45 }
 0x186   : > { %1558 = vmatmul.bf16.gmra.mxu3 %v5818_v49  ;;  %v1286_v53 = vpop.f32.mrf.mxu2 }
 0x187   : > { %v1287_v55 = vadd.f32 %v1286_v53, %v6126_v18 }
 0x188   : > { %v1610_v3 = vpop.f32.mrf.mxu0 }
 0x189   : > { %v1519_v48 = vpop.f32.mrf.mxu3  ;;  %v6304_v54 = vpop.f32.mrf.mxu1 }
 0x18a   : > { %v1520_v50 = vadd.f32 %v1519_v48, %v1287_v55  ;;  %v7813_v55 = vld [vmem:[#allocation12_spill] sm:$0xff] }
 0x18c   : > { %v1609_v13 = vadd.f32 %v1608_v40, %v1520_v50 }
 0x18e   : > { %v6308_v8 = vadd.f32 %v1697_v19, %v1609_v13  ;;  %v1288_v39 = vpop.f32.mrf.mxu2 }
 0x18f   : > { %v1289_v25 = vadd.f32 %v1288_v39, %v6134_v57  ;;  %v815_v39 = vrot.slane %v5985_v14, 1 }
 0x190   : > { %v1613_v29 = vpop.f32.mrf.mxu0 }
 0x191   : > { %v1521_v62 = vpop.f32.mrf.mxu3  ;;  %v1702_v53 = vpop.f32.mrf.mxu1 }
 0x192   : > { %v1522_v18 = vadd.f32 %v1521_v62, %v1289_v25 }
 0x193   : > { %1330 = vmatmul.bf16.gmra.mxu2 %v6312_v17  ;;  %1652 = vmatmul.bf16.gmra.mxu0 %v7813_v55 }
 0x194   : > { %v6316_v40 = vadd.f32 %v1610_v3, %v1522_v18  ;;  %1741 = vmatmul.bf16.gmra.mxu1 %v6295_v24  ;;  %v814_v3 = vrot.slane %v5962_v41, 1 }
 0x196   : > { %1563 = vmatmul.bf16.gmra.mxu3 %v5861_v37  ;;  %v1291_v63 = vpop.f32.mrf.mxu2 }
 0x197   : > { %v1292_v57 = vadd.f32 %v1291_v63, %v6143_v46 }
 0x198   : > { %v1615_v48 = vpop.f32.mrf.mxu0 }
 0x199   : > { %v1524_v19 = vpop.f32.mrf.mxu3  ;;  %v6321_v13 = vpop.f32.mrf.mxu1 }
 0x19a   : > { %v1525_v50 = vadd.f32 %v1524_v19, %v1292_v57  ;;  %7814 = vst [vmem:[#allocation12_spill] sm:$0xff] %v6321_v13  ;;  %v6332_v57 = vsel %vm766_vm4, %v814_v3, %v815_v39 }
 0x19c   : > { %v1614_v33 = vadd.f32 %v1613_v29, %v1525_v50 }
 0x19e   : > { %v6328_v25 = vadd.f32 %v1702_v53, %v1614_v33  ;;  %v1293_v62 = vpop.f32.mrf.mxu2 }
 0x19f   : > { %v1294_v46 = vadd.f32 %v1293_v62, %v6160_v12 }
 0x1a0   : > { %v1618_v63 = vpop.f32.mrf.mxu0 }
 0x1a1   : > { %v1526_v18 = vpop.f32.mrf.mxu3  ;;  %v1707_v13 = vpop.f32.mrf.mxu1 }
 0x1a2   : > { %v1527_v19 = vadd.f32 %v1526_v18, %v1294_v46 }
 0x1a3   : > { %1335 = vmatmul.bf16.gmra.mxu2 %v6332_v57  ;;  %1657 = vmatmul.bf16.gmra.mxu0 %v5954_v26 }
 0x1a4   : > { %v6336_v29 = vadd.f32 %v1615_v48, %v1527_v19  ;;  %1746 = vmatmul.bf16.gmra.mxu1 %v6312_v17 }
 0x1a6   : > { %7815 = vst [vmem:[#allocation38_spill] sm:$0xff] %v6336_v29  ;;  %1568 = vmatmul.bf16.gmra.mxu3 %v5907_v38  ;;  %v1296_v14 = vpop.f32.mrf.mxu2 }
 0x1a7   : > { %v1297_v12 = vadd.f32 %v1296_v14, %v6169_v30 }
 0x1a8   : > { %v1620_v50 = vpop.f32.mrf.mxu0 }
 0x1a9   : > { %v1529_v53 = vpop.f32.mrf.mxu3  ;;  %v6341_v33 = vpop.f32.mrf.mxu1 }
 0x1aa   : > { %v1530_v43 = vadd.f32 %v1529_v53, %v1297_v12 }
 0x1ac   : > { %v1619_v3 = vadd.f32 %v1618_v63, %v1530_v43 }
 0x1ae   : > { %v6343_v39 = vadd.f32 %v1707_v13, %v1619_v3  ;;  %v1298_v62 = vpop.f32.mrf.mxu2 }
 0x1af   : > { %v1299_v46 = vadd.f32 %v1298_v62, %v6177_v0  ;;  %v5322_v0 = vld [vmem:[%s7709_s3 + $0xd8] sm:$0xff] }
 0x1b0   : > { %v1623_v18 = vpop.f32.mrf.mxu0  ;;  %3147 = vmatpush.bf16.msra.mxu1 %v5322_v0 }
 0x1b1   : > { %v1531_v48 = vpop.f32.mrf.mxu3  ;;  %v1712_v29 = vpop.f32.mrf.mxu1 }
 0x1b2   : > { %v1532_v19 = vadd.f32 %v1531_v48, %v1299_v46  ;;  %v7818_v48 = vld [vmem:[#allocation6_spill] sm:$0xff] }
 0x1b3   : > { %1952 = vmatmul.bf16.vlgmr.msra.gmra.mxu2 %v5679_v59  ;;  %2130 = vmatmul.bf16.vlgmr.msra.gmra.mxu0 %v6039_v42 }
 0x1b4   : > { %v6348_v30 = vadd.f32 %v1620_v50, %v1532_v19  ;;  %v7819_v19 = vld [vmem:[#allocation21_spill] sm:$0xff] }
 0x1b6   : > { %2041 = vmatmul.bf16.vlgmr.msra.gmra.mxu3 %v5721_v31  ;;  %v1301_v14 = vpop.f32.mrf.mxu2 }
 0x1b7   : > { %v1302_v63 = vadd.f32 %v1301_v14, %v6027_v44 }
 0x1b8   : > { %v1625_v12 = vpop.f32.mrf.mxu0 }
 0x1b9   : > { %v1534_v13 = vpop.f32.mrf.mxu3  ;;  %v6352_v43 = vpop.f32.mrf.mxu1 }
 0x1ba   : > { %v1535_v53 = vadd.f32 %v1534_v13, %v1302_v63  ;;  %7816 = vst [vmem:[#allocation39_spill] sm:$0xff] %v6352_v43  ;;  %v7820_v63 = vld [vmem:[#allocation7_spill] sm:$0xff] }
 0x1bc   : > { %v1624_v3 = vadd.f32 %v1623_v18, %v1535_v53  ;;  %v7821_v18 = vld [vmem:[#allocation19_spill] sm:$0xff] }
 0x1be   : > { %v6357_v59 = vadd.f32 %v1712_v29, %v1624_v3  ;;  %v1303_v42 = vpop.f32.mrf.mxu2 }
 0x1bf   : > { %v1304_v50 = vadd.f32 %v1303_v42, %v6036_v27 }
 0x1c0   : > { %7817 = vst [vmem:[#allocation40_spill] sm:$0xff] %v6357_v59  ;;  %v1628_v62 = vpop.f32.mrf.mxu0 }
 0x1c1   : > { %v1536_v31 = vpop.f32.mrf.mxu3  ;;  %v1717_v44 = vpop.f32.mrf.mxu1 }
 0x1c2   : > { %v1537_v46 = vadd.f32 %v1536_v31, %v1304_v50  ;;  %v7823_v31 = vld [vmem:[#allocation20_spill] sm:$0xff] }
 0x1c3   : > { %1957 = vmatmul.bf16.gmra.mxu2 %v7818_v48  ;;  %2135 = vmatmul.bf16.gmra.mxu0 %v7819_v19 }
 0x1c4   : > { %v6362_v14 = vadd.f32 %v1625_v12, %v1537_v46 }
 0x1c6   : > { %2046 = vmatmul.bf16.gmra.mxu3 %v7820_v63  ;;  %v1306_v13 = vpop.f32.mrf.mxu2 }
 0x1c7   : > { %v1307_v53 = vadd.f32 %v1306_v13, %v7821_v18  ;;  %v7825_v13 = vld [vmem:[#allocation8_spill] sm:$0xff] }
 0x1c8   : > { %v1630_v0 = vpop.f32.mrf.mxu0 }
 0x1c9   : > { %v1539_v29 = vpop.f32.mrf.mxu3  ;;  %v6366_v43 = vpop.f32.mrf.mxu1 }
 0x1ca   : > { %v1540_v3 = vadd.f32 %v1539_v29, %v1307_v53  ;;  %7822 = vst [vmem:[#allocation6_spill] sm:$0xff] %v6366_v43  ;;  %v7826_v53 = vld [vmem:[#allocation22_spill] sm:$0xff] }
 0x1cc   : > { %v1629_v27 = vadd.f32 %v1628_v62, %v1540_v3 }
 0x1ce   : > { %v6368_v42 = vadd.f32 %v1717_v44, %v1629_v27  ;;  %v1308_v50 = vpop.f32.mrf.mxu2 }
 0x1cf   : > { %v1309_v48 = vadd.f32 %v1308_v50, %v7823_v31 }
 0x1d0   : > { %v1633_v19 = vpop.f32.mrf.mxu0 }
 0x1d1   : > { %v1541_v59 = vpop.f32.mrf.mxu3  ;;  %v1722_v46 = vpop.f32.mrf.mxu1 }
 0x1d2   : > { %v1542_v12 = vadd.f32 %v1541_v59, %v1309_v48  ;;  %v5321_v59 = vld [vmem:[%s7709_s3 + $0xd0] sm:$0xff] }
 0x1d3   : > { %1962 = vmatmul.bf16.gmra.mxu2 %v5771_v6  ;;  %2140 = vmatmul.bf16.gmra.mxu0 %v6081_v52 }
 0x1d4   : > { %v6373_v63 = vadd.f32 %v1630_v0, %v1542_v12  ;;  %3148 = vmatpush.bf16.msra.mxu1 %v5321_v59  ;;  %v7829_v0 = vld [vmem:[#allocation23_spill] sm:$0xff] }
 0x1d6   : > { %7824 = vst [vmem:[#allocation21_spill] sm:$0xff] %v6373_v63  ;;  %2051 = vmatmul.bf16.gmra.mxu3 %v7825_v13  ;;  %v1311_v18 = vpop.f32.mrf.mxu2 }
 0x1d7   : > { %v1312_v62 = vadd.f32 %v1311_v18, %v7826_v53  ;;  %v7830_v53 = vld [vmem:[#allocation9_spill] sm:$0xff] }
 0x1d8   : > { %v1635_v29 = vpop.f32.mrf.mxu0 }
 0x1d9   : > { %v1544_v44 = vpop.f32.mrf.mxu3  ;;  %v6377_v27 = vpop.f32.mrf.mxu1 }
 0x1da   : > { %v1545_v3 = vadd.f32 %v1544_v44, %v1312_v62  ;;  %7827 = vst [vmem:[#allocation7_spill] sm:$0xff] %v6377_v27  ;;  %v7831_v62 = vld [vmem:[#allocation26_spill] sm:$0xff] }
 0x1db   : > { %v7832_v27 = vld [vmem:[#allocation10_spill] sm:$0xff] }
 0x1dc   : > { %v1634_v50 = vadd.f32 %v1633_v19, %v1545_v3  ;;  %v7833_v19 = vld [vmem:[#allocation24_spill] sm:$0xff] }
 0x1de   : > { %v6382_v6 = vadd.f32 %v1722_v46, %v1634_v50  ;;  %v1313_v52 = vpop.f32.mrf.mxu2 }
 0x1df   : > { %v1314_v31 = vadd.f32 %v1313_v52, %v7829_v0 }
 0x1e0   : > { %7828 = vst [vmem:[#allocation19_spill] sm:$0xff] %v6382_v6  ;;  %v1638_v12 = vpop.f32.mrf.mxu0 }
 0x1e1   : > { %v1546_v48 = vpop.f32.mrf.mxu3  ;;  %v1727_v18 = vpop.f32.mrf.mxu1 }
 0x1e2   : > { %v1547_v13 = vadd.f32 %v1546_v48, %v1314_v31  ;;  %v7835_v48 = vld [vmem:[#allocation25_spill] sm:$0xff] }
 0x1e3   : > { %1967 = vmatmul.bf16.gmra.mxu2 %v7830_v53  ;;  %2145 = vmatmul.bf16.gmra.mxu0 %v7831_v62 }
 0x1e4   : > { %v6387_v44 = vadd.f32 %v1635_v29, %v1547_v13 }
 0x1e6   : > { %2056 = vmatmul.bf16.gmra.mxu3 %v7832_v27  ;;  %v1316_v43 = vpop.f32.mrf.mxu2  ;;  %v7837_v27 = vld [vmem:[#allocation11_spill] sm:$0xff] }
 0x1e7   : > { %v1317_v3 = vadd.f32 %v1316_v43, %v7833_v19 }
 0x1e8   : > { %v1640_v59 = vpop.f32.mrf.mxu0 }
 0x1e9   : > { %v1549_v46 = vpop.f32.mrf.mxu3  ;;  %v6391_v6 = vpop.f32.mrf.mxu1 }
 0x1ea   : > { %v1550_v50 = vadd.f32 %v1549_v46, %v1317_v3  ;;  %7834 = vst [vmem:[#allocation20_spill] sm:$0xff] %v6391_v6  ;;  %v7838_v3 = vld [vmem:[#allocation27_spill] sm:$0xff] }
 0x1ec   : > { %v1639_v52 = vadd.f32 %v1638_v12, %v1550_v50 }
 0x1ee   : > { %v6393_v0 = vadd.f32 %v1727_v18, %v1639_v52  ;;  %v1318_v31 = vpop.f32.mrf.mxu2 }
 0x1ef   : > { %v1319_v53 = vadd.f32 %v1318_v31, %v7835_v48 }
 0x1f0   : > { %v1643_v62 = vpop.f32.mrf.mxu0 }
 0x1f1   : > { %v1551_v63 = vpop.f32.mrf.mxu3  ;;  %v1732_v13 = vpop.f32.mrf.mxu1 }
 0x1f2   : > { %v1552_v29 = vadd.f32 %v1551_v63, %v1319_v53  ;;  %v5320_v63 = vld [vmem:[%s7709_s3 + $0xc8] sm:$0xff] }
 0x1f3   : > { %1972 = vmatmul.bf16.gmra.mxu2 %v5857_v36  ;;  %2150 = vmatmul.bf16.gmra.mxu0 %v6124_v10 }
 0x1f4   : > { %v6398_v43 = vadd.f32 %v1640_v59, %v1552_v29  ;;  %3149 = vmatpush.bf16.msra.mxu1 %v5320_v63  ;;  %v7841_v59 = vld [vmem:[#allocation28_spill] sm:$0xff] }
 0x1f6   : > { %7836 = vst [vmem:[#allocation8_spill] sm:$0xff] %v6398_v43  ;;  %2061 = vmatmul.bf16.gmra.mxu3 %v7837_v27  ;;  %v1321_v19 = vpop.f32.mrf.mxu2 }
 0x1f7   : > { %v1322_v12 = vadd.f32 %v1321_v19, %v7838_v3  ;;  %v7842_v3 = vld [vmem:[#allocation13_spill] sm:$0xff] }
 0x1f8   : > { %v1645_v46 = vpop.f32.mrf.mxu0 }
 0x1f9   : > { %v1554_v18 = vpop.f32.mrf.mxu3  ;;  %v6402_v52 = vpop.f32.mrf.mxu1 }
 0x1fa   : > { %v1555_v50 = vadd.f32 %v1554_v18, %v1322_v12  ;;  %7839 = vst [vmem:[#allocation22_spill] sm:$0xff] %v6402_v52  ;;  %v7843_v12 = vld [vmem:[#allocation31_spill] sm:$0xff]  ;;  %v7845_v52 = vld [vmem:[#allocation14_spill] sm:$0xff] }
 0x1fc   : > { %v1644_v31 = vadd.f32 %v1643_v62, %v1555_v50  ;;  %v7846_v62 = vld [vmem:[#allocation29_spill] sm:$0xff] }
 0x1fe   : > { %v6407_v36 = vadd.f32 %v1732_v13, %v1644_v31  ;;  %v1323_v10 = vpop.f32.mrf.mxu2 }
 0x1ff   : > { %v1324_v48 = vadd.f32 %v1323_v10, %v7841_v59 }
 0x200   : > { %7840 = vst [vmem:[#allocation23_spill] sm:$0xff] %v6407_v36  ;;  %v1648_v29 = vpop.f32.mrf.mxu0 }
 0x201   : > { %v1556_v53 = vpop.f32.mrf.mxu3  ;;  %v1737_v19 = vpop.f32.mrf.mxu1 }
 0x202   : > { %v1557_v27 = vadd.f32 %v1556_v53, %v1324_v48  ;;  %v7849_v53 = vld [vmem:[#allocation30_spill] sm:$0xff] }
 0x203   : > { %1977 = vmatmul.bf16.gmra.mxu2 %v7842_v3  ;;  %2155 = vmatmul.bf16.gmra.mxu0 %v7843_v12 }
 0x204   : > { %v6412_v18 = vadd.f32 %v1645_v46, %v1557_v27  ;;  %v7850_v27 = vld [vmem:[#allocation15_spill] sm:$0xff] }
 0x206   : > { %7844 = vst [vmem:[#allocation9_spill] sm:$0xff] %v6412_v18  ;;  %2066 = vmatmul.bf16.gmra.mxu3 %v7845_v52  ;;  %v1326_v6 = vpop.f32.mrf.mxu2  ;;  %v7851_v52 = vld [vmem:[#allocation34_spill] sm:$0xff] }
 0x207   : > { %v1327_v50 = vadd.f32 %v1326_v6, %v7846_v62  ;;  %v7852_v6 = vld [vmem:[#allocation16_spill] sm:$0xff] }
 0x208   : > { %v1650_v63 = vpop.f32.mrf.mxu0 }
 0x209   : > { %v1559_v13 = vpop.f32.mrf.mxu3  ;;  %v6416_v10 = vpop.f32.mrf.mxu1 }
 0x20a   : > { %v1560_v31 = vadd.f32 %v1559_v13, %v1327_v50  ;;  %7847 = vst [vmem:[#allocation26_spill] sm:$0xff] %v6416_v10  ;;  %v7853_v50 = vld [vmem:[#allocation32_spill] sm:$0xff] }
 0x20c   : > { %v1649_v36 = vadd.f32 %v1648_v29, %v1560_v31 }
 0x20e   : > { %v6418_v59 = vadd.f32 %v1737_v19, %v1649_v36  ;;  %v1328_v48 = vpop.f32.mrf.mxu2 }
 0x20f   : > { %v1329_v3 = vadd.f32 %v1328_v48, %v7849_v53 }
 0x210   : > { %7848 = vst [vmem:[#allocation10_spill] sm:$0xff] %v6418_v59  ;;  %v1653_v12 = vpop.f32.mrf.mxu0 }
 0x211   : > { %v1561_v43 = vpop.f32.mrf.mxu3  ;;  %v1742_v29 = vpop.f32.mrf.mxu1 }
 0x212   : > { %v1562_v46 = vadd.f32 %v1561_v43, %v1329_v3  ;;  %v7854_v43 = vld [vmem:[#allocation33_spill] sm:$0xff] }
 0x213   : > { %1982 = vmatmul.bf16.gmra.mxu2 %v7850_v27  ;;  %2160 = vmatmul.bf16.gmra.mxu0 %v7851_v52 }
 0x214   : > { %v6423_v18 = vadd.f32 %v1650_v63, %v1562_v46 }
 0x216   : > { %2071 = vmatmul.bf16.gmra.mxu3 %v7852_v6  ;;  %v1331_v62 = vpop.f32.mrf.mxu2  ;;  %v7855_v6 = vld [vmem:[#allocation35_spill] sm:$0xff] }
 0x217   : > { %v1332_v13 = vadd.f32 %v1331_v62, %v7853_v50 }
 0x218   : > { %v1655_v19 = vpop.f32.mrf.mxu0 }
 0x219   : > { %v1564_v36 = vpop.f32.mrf.mxu3  ;;  %v6430_v52 = vpop.f32.mrf.mxu1 }
 0x21a   : > { %v1565_v31 = vadd.f32 %v1564_v36, %v1332_v13 }
 0x21c   : > { %v1654_v10 = vadd.f32 %v1653_v12, %v1565_v31 }
 0x21e   : > { %v6427_v48 = vadd.f32 %v1742_v29, %v1654_v10  ;;  %v1333_v53 = vpop.f32.mrf.mxu2  ;;  %v5319_v10 = vld [vmem:[%s7709_s3 + $0xc0] sm:$0xff] }
 0x21f   : > { %v1334_v3 = vadd.f32 %v1333_v53, %v7854_v43  ;;  %3150 = vmatpush.bf16.msra.mxu1 %v5319_v10 }
 0x220   : > { %v1658_v59 = vpop.f32.mrf.mxu0 }
 0x221   : > { %v1566_v27 = vpop.f32.mrf.mxu3  ;;  %v1747_v36 = vpop.f32.mrf.mxu1 }
 0x222   : > { %v1567_v63 = vadd.f32 %v1566_v27, %v1334_v3 }
 0x223   : > { %1987 = vmatmul.bf16.gmra.mxu2 %v5623_v22  ;;  %2165 = vmatmul.bf16.gmra.mxu0 %v6184_v28 }
 0x224   : > { %v6434_v46 = vadd.f32 %v1655_v19, %v1567_v63  ;;  %v7856_v19 = vld [vmem:[#allocation36_spill] sm:$0xff] }
 0x226   : > { %2076 = vmatmul.bf16.gmra.mxu3 %v5669_v56  ;;  %v1336_v12 = vpop.f32.mrf.mxu2 }
 0x227   : > { %v1337_v62 = vadd.f32 %v1336_v12, %v7855_v6 }
 0x228   : > { %v1660_v50 = vpop.f32.mrf.mxu0 }
 0x229   : > { %v1569_v29 = vpop.f32.mrf.mxu3 }
 0x22a   : > { %v1570_v13 = vadd.f32 %v1569_v29, %v1337_v62  ;;  %v6453_v29 = vld [vmem:[%s7708_s2] ss:$0 sm:$0xff] }
 0x22c   : > { %v1659_v31 = vadd.f32 %v1658_v59, %v1570_v13 }
 0x22e   : > { %v6441_v22 = vadd.f32 %v1747_v36, %v1659_v31  ;;  %v1338_v28 = vpop.f32.mrf.mxu2 }
 0x22f   : > { %v1339_v53 = vadd.f32 %v1338_v28, %v7856_v19 }
 0x230   : > { %v2131_v56 = vpop.f32.mrf.mxu0 }
 0x231   : > { %v1571_v43 = vpop.f32.mrf.mxu3 }
 0x232   : > { %v1572_v3 = vadd.f32 %v1571_v43, %v1339_v53  ;;  %v5310_v43 = vld [vmem:[%s7709_s3 + $0x78] sm:$0xff] }
 0x233   : > { %1992 = vmatmul.bf16.gmra.mxu2 %v5683_v60  ;;  %2170 = vmatmul.bf16.gmra.mxu0 %v6209_v15  ;;  %v5342_v60 = vld [vmem:[%s7709_s3 + $0x178] sm:$0xff] }
 0x234   : > { %v6446_v27 = vadd.f32 %v1660_v50, %v1572_v3  ;;  %v5302_v15 = vld [vmem:[%s7709_s3 + $0x38] sm:$0xff]  ;;  %3321 = vmatpush.bf16.msrb.mxu3 %v5342_v60  ;;  %3643 = vmatpush.bf16.msrb.mxu1 %v5310_v43 }
 0x235   : > { %3554 = vmatpush.bf16.msrb.mxu0 %v5302_v15 }
 0x236   : > { %2081 = vmatmul.bf16.gmra.mxu3 %v5724_v32  ;;  %v1953_v63 = vpop.f32.mrf.mxu2  ;;  %v5334_v32 = vld [vmem:[%s7709_s3 + $0x138] sm:$0xff] }
 0x237   : > { %3232 = vmatpush.bf16.msrb.mxu2 %v5334_v32 }
 0x238   : > { %v2133_v59 = vpop.f32.mrf.mxu0 }
 0x239   : > { %v2042_v10 = vpop.f32.mrf.mxu3 }
 0x23a   : > { %v2043_v12 = vadd.f32 %v2042_v10, %v1953_v63 }
 0x23c   : > { %v2132_v6 = vadd.f32 %v2131_v56, %v2043_v12 }
 0x23e   : > { %v2211_v62 = vadd.f32 %v2132_v6, %v6205_v23  ;;  %v1955_v13 = vpop.f32.mrf.mxu2 }
 0x240   : > { %v2247_v23 = vadd.f32 %v6453_v29, %v2211_v62  ;;  %v2136_v31 = vpop.f32.mrf.mxu0 }
 0x241   : > { %v2044_v50 = vpop.f32.mrf.mxu3 }
 0x242   : > { %v2045_v36 = vadd.f32 %v2044_v50, %v1955_v13  ;;  %v2279_v19 = vmax.f32 %v2247_v23, 0.0 }
 0x243   : > { %1997 = vmatmul.bf16.gmra.mxu2 %v5732_v34  ;;  %2175 = vmatmul.bf16.gmra.mxu0 %v6224_v58 }
 0x244   : > { %v2134_v28 = vadd.f32 %v2133_v59, %v2045_v36  ;;  %v2311_v10 = vpack.c.bf16 %v2279_v19, %v2279_v19 }
 0x246   : > { %v2212_v53 = vadd.f32 %v2134_v28, %v6215_v4  ;;  %2086 = vmatmul.bf16.gmra.mxu3 %v5767_v5  ;;  %v1958_v3 = vpop.f32.mrf.mxu2  ;;  %v2375_v62 = vunpack.c.l.b16 %v2311_v10 }
 0x248   : > { %v2248_v56 = vadd.f32 %v6453_v29, %v2212_v53  ;;  %v2138_v34 = vpop.f32.mrf.mxu0 }
 0x249   : > { %v2047_v63 = vpop.f32.mrf.mxu3 }
 0x24a   : > { %v2280_v12 = vmax.f32 %v2248_v56, 0.0  ;;  %v2048_v59 = vadd.f32 %v2047_v63, %v1958_v3 }
 0x24c   : > { %v2312_v6 = vpack.c.bf16 %v2280_v12, %v2280_v12  ;;  %v2137_v58 = vadd.f32 %v2136_v31, %v2048_v59 }
 0x24e   : > { %v2376_v13 = vunpack.c.l.b16 %v2312_v6  ;;  %v2213_v4 = vadd.f32 %v2137_v58, %v6220_v21  ;;  %v1960_v60 = vpop.f32.mrf.mxu2 }
 0x250   : > { %v2407_v5 = vpack.c.b16 %v2376_v13, %v2375_v62  ;;  %v2249_v15 = vadd.f32 %v6453_v29, %v2213_v4  ;;  %v2141_v23 = vpop.f32.mrf.mxu0 }
 0x251   : > { %v2049_v32 = vpop.f32.mrf.mxu3 }
 0x252   : > { %v2050_v50 = vadd.f32 %v2049_v32, %v1960_v60  ;;  %v2424_v36 = vshrl.u32 %v2407_v5, 16  ;;  %v2427_v19 = vshll.u32 %v2407_v5, 16  ;;  %v2281_v31 = vmax.f32 %v2249_v15, 0.0  ;;  %v5341_v5 = vld [vmem:[%s7709_s3 + $0x170] sm:$0xff] }
 0x253   : > { %2002 = vmatmul.bf16.gmra.mxu2 %v5775_v7  ;;  %2180 = vmatmul.bf16.gmra.mxu0 %v6251_v61  ;;  %v5333_v60 = vld [vmem:[%s7709_s3 + $0x130] sm:$0xff] }
 0x254   : > { %v2139_v28 = vadd.f32 %v2138_v34, %v2050_v50  ;;  %v6475_v53 = vrot.slane %v2424_v36, 7  ;;  %v2313_v7 = vpack.c.bf16 %v2281_v31, %v2281_v31  ;;  %v5301_v32 = vld [vmem:[%s7709_s3 + $0x30] sm:$0xff]  ;;  %3322 = vmatpush.bf16.msrb.mxu3 %v5341_v5  ;;  %3233 = vmatpush.bf16.msrb.mxu2 %v5333_v60 }
 0x255   : > { %3555 = vmatpush.bf16.msrb.mxu0 %v5301_v32 }
 0x256   : > { %v2214_v43 = vadd.f32 %v2139_v28, %v6236_v11  ;;  %2091 = vmatmul.bf16.gmra.mxu3 %v5810_v47  ;;  %v2429_v21 = vor.u32 %v2427_v19, %v6475_v53  ;;  %v1963_v3 = vpop.f32.mrf.mxu2  ;;  %v2377_v58 = vunpack.c.l.b16 %v2313_v7 }
 0x258   : > { %v2250_v56 = vadd.f32 %v6453_v29, %v2214_v43  ;;  %v6485_v10 = vsel %vm5607_vm2, 0, %v2429_v21  ;;  %v2143_v34 = vpop.f32.mrf.mxu0 }
 0x259   : > { %v2052_v12 = vpop.f32.mrf.mxu3  ;;  %3151 = vmatmul.bf16.vlgmr.msra.gmra.mxu1 %v6485_v10 }
 0x25a   : > { %v2282_v59 = vmax.f32 %v2250_v56, 0.0  ;;  %v2053_v61 = vadd.f32 %v2052_v12, %v1963_v3  ;;  %v5309_v3 = vld [vmem:[%s7709_s3 + $0x70] sm:$0xff] }
 0x25b   : > { %3644 = vmatpush.bf16.msrb.mxu1 %v5309_v3 }
 0x25c   : > { %v2314_v6 = vpack.c.bf16 %v2282_v59, %v2282_v59  ;;  %v2142_v11 = vadd.f32 %v2141_v23, %v2053_v61 }
 0x25e   : > { %v2378_v47 = vunpack.c.l.b16 %v2314_v6  ;;  %v2215_v62 = vadd.f32 %v2142_v11, %v6247_v2  ;;  %v1965_v4 = vpop.f32.mrf.mxu2 }
 0x260   : > { %v2408_v13 = vpack.c.b16 %v2378_v47, %v2377_v58  ;;  %v2251_v50 = vadd.f32 %v6453_v29, %v2215_v62  ;;  %v2146_v36 = vpop.f32.mrf.mxu0 }
 0x261   : > { %v2054_v15 = vpop.f32.mrf.mxu3 }
 0x262   : > { %v2055_v23 = vadd.f32 %v2054_v15, %v1965_v4  ;;  %v2431_v2 = vshrl.u32 %v2408_v13, 16  ;;  %v2434_v31 = vshll.u32 %v2408_v13, 16  ;;  %v2283_v43 = vmax.f32 %v2251_v50, 0.0 }
 0x263   : > { %2007 = vmatmul.bf16.gmra.mxu2 %v5818_v49  ;;  %2185 = vmatmul.bf16.gmra.mxu0 %v6266_v45 }
 0x264   : > { %v2144_v28 = vadd.f32 %v2143_v34, %v2055_v23  ;;  %v6499_v19 = vrot.slane %v2431_v2, 7 }
 0x266   : > { %v2216_v21 = vadd.f32 %v2144_v28, %v6257_v16  ;;  %2096 = vmatmul.bf16.gmra.mxu3 %v5853_v35  ;;  %v2436_v56 = vor.u32 %v2434_v31, %v6499_v19  ;;  %v1968_v7 = vpop.f32.mrf.mxu2  ;;  %v2315_v16 = vpack.c.bf16 %v2283_v43, %v2283_v43 }
 0x268   : > { %v2252_v12 = vadd.f32 %v6453_v29, %v2216_v21  ;;  %v6512_v59 = vsel %vm5607_vm2, 0, %v2436_v56  ;;  %v2148_v61 = vpop.f32.mrf.mxu0  ;;  %v2379_v11 = vunpack.c.l.b16 %v2315_v16  ;;  %v5300_v16 = vld [vmem:[%s7709_s3 + $0x28] sm:$0xff] }
 0x269   : > { %v2057_v49 = vpop.f32.mrf.mxu3  ;;  %3156 = vmatmul.bf16.gmra.mxu1 %v6512_v59  ;;  %3556 = vmatpush.bf16.msrb.mxu0 %v5300_v16 }
 0x26a   : > { %v2284_v45 = vmax.f32 %v2252_v12, 0.0  ;;  %v2058_v35 = vadd.f32 %v2057_v49, %v1968_v7  ;;  %v5332_v49 = vld [vmem:[%s7709_s3 + $0x128] sm:$0xff] }
 0x26b   : > { %3234 = vmatpush.bf16.msrb.mxu2 %v5332_v49 }
 0x26c   : > { %v2316_v34 = vpack.c.bf16 %v2284_v45, %v2284_v45  ;;  %v2147_v6 = vadd.f32 %v2146_v36, %v2058_v35 }
 0x26e   : > { %v2380_v58 = vunpack.c.l.b16 %v2316_v34  ;;  %v2217_v47 = vadd.f32 %v2147_v6, %v6262_v1  ;;  %v1970_v13 = vpop.f32.mrf.mxu2 }
 0x270   : > { %v2409_v62 = vpack.c.b16 %v2380_v58, %v2379_v11  ;;  %v2253_v5 = vadd.f32 %v6453_v29, %v2217_v47  ;;  %v2151_v32 = vpop.f32.mrf.mxu0  ;;  %v5331_v58 = vld [vmem:[%s7709_s3 + $0x120] sm:$0xff] }
 0x271   : > { %v2059_v4 = vpop.f32.mrf.mxu3  ;;  %v5339_v47 = vld [vmem:[%s7709_s3 + $0x160] sm:$0xff]  ;;  %3235 = vmatpush.bf16.msrb.mxu2 %v5331_v58 }
 0x272   : > { %v2060_v60 = vadd.f32 %v2059_v4, %v1970_v13  ;;  %v2438_v15 = vshrl.u32 %v2409_v62, 16  ;;  %v2441_v2 = vshll.u32 %v2409_v62, 16  ;;  %v2285_v36 = vmax.f32 %v2253_v5, 0.0  ;;  %v5299_v62 = vld [vmem:[%s7709_s3 + $0x20] sm:$0xff] }
 0x273   : > { %2012 = vmatmul.bf16.gmra.mxu2 %v5861_v37  ;;  %2190 = vmatmul.bf16.gmra.mxu0 %v6295_v24 }
 0x274   : > { %v2149_v50 = vadd.f32 %v2148_v61, %v2060_v60  ;;  %v6517_v23 = vrot.slane %v2438_v15, 7  ;;  %v2317_v37 = vpack.c.bf16 %v2285_v36, %v2285_v36  ;;  %v7858_v60 = vld [vmem:[#allocation37_spill] sm:$0xff]  ;;  %3557 = vmatpush.bf16.msrb.mxu0 %v5299_v62  ;;  %v5330_v36 = vld [vmem:[%s7709_s3 + $0x118] sm:$0xff] }
 0x275   : > { %3236 = vmatpush.bf16.msrb.mxu2 %v5330_v36 }
 0x276   : > { %v2218_v28 = vadd.f32 %v2149_v50, %v6278_v20  ;;  %2101 = vmatmul.bf16.gmra.mxu3 %v7813_v55  ;;  %v2443_v1 = vor.u32 %v2441_v2, %v6517_v23  ;;  %v1973_v43 = vpop.f32.mrf.mxu2  ;;  %v5340_v55 = vld [vmem:[%s7709_s3 + $0x168] sm:$0xff]  ;;  %v2381_v45 = vunpack.c.l.b16 %v2317_v37 }
 0x277   : > { %3323 = vmatpush.bf16.msrb.mxu3 %v5340_v55 }
 0x278   : > { %v2254_v31 = vadd.f32 %v6453_v29, %v2218_v28  ;;  %v6527_v21 = vsel %vm5607_vm2, 0, %v2443_v1  ;;  %v2153_v12 = vpop.f32.mrf.mxu0  ;;  %v5338_v28 = vld [vmem:[%s7709_s3 + $0x158] sm:$0xff] }
 0x279   : > { %v2062_v56 = vpop.f32.mrf.mxu3  ;;  %3161 = vmatmul.bf16.gmra.mxu1 %v6527_v21 }
 0x27a   : > { %v2286_v3 = vmax.f32 %v2254_v31, 0.0  ;;  %v2063_v24 = vadd.f32 %v2062_v56, %v1973_v43 }
 0x27b   : > { %3324 = vmatpush.bf16.msrb.mxu3 %v5339_v47 }
 0x27c   : > { %v2318_v7 = vpack.c.bf16 %v2286_v3, %v2286_v3  ;;  %v2152_v20 = vadd.f32 %v2151_v32, %v2063_v24  ;;  %v1695_v32 = vadd.f32 %v7858_v60, %v6299_v9  ;;  %v5298_v9 = vld [vmem:[%s7709_s3 + $0x18] sm:$0xff]  ;;  %v5337_v24 = vld [vmem:[%s7709_s3 + $0x150] sm:$0xff] }
 0x27d   : > { %3558 = vmatpush.bf16.msrb.mxu0 %v5298_v9 }
 0x27e   : > { %v2382_v35 = vunpack.c.l.b16 %v2318_v7  ;;  %v2219_v61 = vadd.f32 %v2152_v20, %v6291_v51  ;;  %v1975_v6 = vpop.f32.mrf.mxu2 }
 0x27f   : > { %3325 = vmatpush.bf16.msrb.mxu3 %v5338_v28 }
 0x280   : > { %v2410_v34 = vpack.c.b16 %v2382_v35, %v2381_v45  ;;  %v2255_v51 = vadd.f32 %v6453_v29, %v2219_v61  ;;  %v2156_v4 = vpop.f32.mrf.mxu0  ;;  %v5328_v35 = vld [vmem:[%s7709_s3 + $0x108] sm:$0xff] }
 0x281   : > { %v2064_v11 = vpop.f32.mrf.mxu3  ;;  %v5336_v61 = vld [vmem:[%s7709_s3 + $0x148] sm:$0xff] }
 0x282   : > { %v2065_v13 = vadd.f32 %v2064_v11, %v1975_v6  ;;  %v2445_v5 = vshrl.u32 %v2410_v34, 16  ;;  %v2448_v2 = vshll.u32 %v2410_v34, 16  ;;  %v2287_v1 = vmax.f32 %v2255_v51, 0.0  ;;  %v5296_v34 = vld [vmem:[%s7709_s3 + $0x8] sm:$0xff] }
 0x283   : > { %2017 = vmatmul.bf16.gmra.mxu2 %v5907_v38  ;;  %2195 = vmatmul.bf16.gmra.mxu0 %v6312_v17  ;;  %v5308_v17 = vld [vmem:[%s7709_s3 + $0x68] sm:$0xff] }
 0x284   : > { %v2154_v15 = vadd.f32 %v2153_v12, %v2065_v13  ;;  %v6552_v50 = vrot.slane %v2445_v5, 7  ;;  %3645 = vmatpush.bf16.msrb.mxu1 %v5308_v17  ;;  %v5297_v12 = vld [vmem:[%s7709_s3 + $0x10] sm:$0xff]  ;;  %v2319_v7 = vpack.c.bf16 %v2287_v1, %v2287_v1  ;;  %3326 = vmatpush.bf16.msrb.mxu3 %v5337_v24  ;;  %v5327_v13 = vld [vmem:[%s7709_s3 + $0x100] sm:$0xff] }
 0x285   : > { %3559 = vmatpush.bf16.msrb.mxu0 %v5297_v12  ;;  %v5295_v5 = vld [vmem:[%s7709_s3] sm:$0xff] }
 0x286   : > { %v2220_v31 = vadd.f32 %v2154_v15, %v1695_v32  ;;  %2106 = vmatmul.bf16.gmra.mxu3 %v5954_v26  ;;  %v2450_v38 = vor.u32 %v2448_v2, %v6552_v50  ;;  %v1978_v56 = vpop.f32.mrf.mxu2  ;;  %v5329_v26 = vld [vmem:[%s7709_s3 + $0x110] sm:$0xff]  ;;  %v2383_v6 = vunpack.c.l.b16 %v2319_v7  ;;  %v1700_v2 = vadd.f32 %v6304_v54, %v6316_v40 }
 0x287   : > { %3237 = vmatpush.bf16.msrb.mxu2 %v5329_v26 }
 0x288   : > { %v2256_v43 = vadd.f32 %v6453_v29, %v2220_v31  ;;  %v6573_v37 = vsel %vm5607_vm2, 0, %v2450_v38  ;;  %v2158_v49 = vpop.f32.mrf.mxu0  ;;  %3327 = vmatpush.bf16.msrb.mxu3 %v5336_v61  ;;  %v7859_v38 = vld [vmem:[#allocation17_spill] sm:$0xff] }
 0x289   : > { %v2067_v3 = vpop.f32.mrf.mxu3  ;;  %3166 = vmatmul.bf16.gmra.mxu1 %v6573_v37  ;;  %3560 = vmatpush.bf16.msrb.mxu0 %v5296_v34 }
 0x28a   : > { %v2288_v20 = vmax.f32 %v2256_v43, 0.0  ;;  %v2068_v55 = vadd.f32 %v2067_v3, %v1978_v56 }
 0x28b   : > { %3238 = vmatpush.bf16.msrb.mxu2 %v5328_v35 }
 0x28c   : > { %v2320_v16 = vpack.c.bf16 %v2288_v20, %v2288_v20  ;;  %v2157_v45 = vadd.f32 %v2156_v4, %v2068_v55  ;;  %v5335_v4 = vld [vmem:[%s7709_s3 + $0x140] sm:$0xff] }
 0x28d   : > { %3328 = vmatpush.bf16.msrb.mxu3 %v5335_v4  ;;  %3561 = vmatpush.bf16.msrb.mxu0 %v5295_v5  ;;  %v7863_v4 = vmov 0   ;;  %v7864_v5 = vld [vmem:[#allocation18_spill] sm:$0xff] }
 0x28e   : > { %v2384_v11 = vunpack.c.l.b16 %v2320_v16  ;;  %v2221_v58 = vadd.f32 %v2157_v45, %v6308_v8  ;;  %v1980_v62 = vpop.f32.mrf.mxu2 }
 0x28f   : > { %3239 = vmatpush.bf16.msrb.mxu2 %v5327_v13 }
 0x290   : > { %v2411_v47 = vpack.c.b16 %v2384_v11, %v2383_v6  ;;  %v2257_v8 = vadd.f32 %v6453_v29, %v2221_v58  ;;  %v2161_v32 = vpop.f32.mrf.mxu0  ;;  %v7861_v11 = vld [vmem:[#allocation38_spill] sm:$0xff]  ;;  %v7862_v58 = vld [vmem:[#allocation12_spill] sm:$0xff] }
 0x291   : > { %v2069_v51 = vpop.f32.mrf.mxu3 }
 0x292   : > { %v2070_v60 = vadd.f32 %v2069_v51, %v1980_v62  ;;  %v2452_v15 = vshrl.u32 %v2411_v47, 16  ;;  %v2455_v9 = vshll.u32 %v2411_v47, 16  ;;  %v2289_v1 = vmax.f32 %v2257_v8, 0.0 }
 0x293   : > { %2022 = vmatmul.bf16.gmra.mxu2 %v5962_v41  ;;  %2200 = vmatmul.bf16.gmra.mxu0 %v6332_v57  ;;  %v1705_v47 = vadd.f32 %v7862_v58, %v7861_v11  ;;  %v1710_v11 = vadd.f32 %v6341_v33, %v6348_v30 }
 0x294   : > { %v2159_v36 = vadd.f32 %v2158_v49, %v2070_v60  ;;  %v6607_v28 = vrot.slane %v2452_v15, 7  ;;  %v2321_v3 = vpack.c.bf16 %v2289_v1, %v2289_v1  ;;  %v2602_v15 = vshll.u32 %v6485_v10, 16 }
 0x296   : > { %v2222_v31 = vadd.f32 %v2159_v36, %v1700_v2  ;;  %2111 = vmatmul.bf16.gmra.mxu3 %v7859_v38  ;;  %v2457_v17 = vor.u32 %v2455_v9, %v6607_v28  ;;  %v1983_v56 = vpop.f32.mrf.mxu2  ;;  %v2385_v7 = vunpack.c.l.b16 %v2321_v3 }
 0x298   : > { %v2258_v43 = vadd.f32 %v6453_v29, %v2222_v31  ;;  %v6616_v54 = vsel %vm5607_vm2, 0, %v2457_v17  ;;  %v2163_v57 = vpop.f32.mrf.mxu0 }
 0x299   : > { %7860 = vst [vmem:[#allocation24_spill] sm:$0xff] %v6616_v54  ;;  %v2072_v40 = vpop.f32.mrf.mxu3  ;;  %3171 = vmatmul.bf16.gmra.mxu1 %v6616_v54 }
 0x29a   : > { %v2290_v41 = vmax.f32 %v2258_v43, 0.0  ;;  %v2073_v26 = vadd.f32 %v2072_v40, %v1983_v56  ;;  %v2583_v56 = vsel %vm5607_vm2, %v6475_v53, 0 }
 0x29b   : > { %v2840_v58 = vrot.slane %v2583_v56, 1 }
 0x29c   : > { %v2322_v24 = vpack.c.bf16 %v2290_v41, %v2290_v41  ;;  %v2162_v12 = vadd.f32 %v2161_v32, %v2073_v26  ;;  %v5307_v32 = vld [vmem:[%s7709_s3 + $0x60] sm:$0xff]  ;;  %v2604_v41 = vrot.slane %v2602_v15, 1  ;;  %v2607_v26 = vshll.u32 %v2583_v56, 16 }
 0x29d   : > { %3646 = vmatpush.bf16.msrb.mxu1 %v5307_v32 }
 0x29e   : > { %v2386_v20 = vunpack.c.l.b16 %v2322_v24  ;;  %v2223_v55 = vadd.f32 %v2162_v12, %v6328_v25  ;;  %v1985_v16 = vpop.f32.mrf.mxu2 }
 0x2a0   : > { %v2412_v49 = vpack.c.b16 %v2386_v20, %v2385_v7  ;;  %v2259_v35 = vadd.f32 %v6453_v29, %v2223_v55  ;;  %v2166_v34 = vpop.f32.mrf.mxu0 }
 0x2a1   : > { %v2074_v45 = vpop.f32.mrf.mxu3 }
 0x2a2   : > { %v2075_v61 = vadd.f32 %v2074_v45, %v1985_v16  ;;  %v2459_v6 = vshrl.u32 %v2412_v49, 16  ;;  %v2462_v13 = vshll.u32 %v2412_v49, 16  ;;  %v2291_v25 = vmax.f32 %v2259_v35, 0.0 }
 0x2a3   : > { %2027 = vmatmul.bf16.gmra.mxu2 %v7863_v4  ;;  %2205 = vmatmul.bf16.gmra.mxu0 %v7864_v5  ;;  %v2839_v45 = vrot.slane %v6485_v10, 1 }
 0x2a4   : > { %v2164_v62 = vadd.f32 %v2163_v57, %v2075_v61  ;;  %v6623_v51 = vrot.slane %v2459_v6, 7  ;;  %v2323_v31 = vpack.c.bf16 %v2291_v25, %v2291_v25  ;;  %v2600_v57 = vshrl.u32 %v6485_v10, 16 }
 0x2a5   : > { %v2609_v6 = vrot.slane %v2607_v26, 1  ;;  %v6655_v25 = vsel %vm766_vm4, %v2839_v45, %v2840_v58  ;;  %v2842_v45 = vrot.slane %v6512_v59, 1 }
 0x2a6   : > { %v2224_v8 = vadd.f32 %v2164_v62, %v1705_v47  ;;  %2116 = vmatmul.bf16.gmra.mxu3 %v7864_v5  ;;  %v2464_v60 = vor.u32 %v2462_v13, %v6623_v51  ;;  %v1988_v36 = vpop.f32.mrf.mxu2  ;;  %v2387_v24 = vunpack.c.l.b16 %v2323_v31  ;;  %v2605_v49 = vor.u32 %v2604_v41, %v2600_v57 }
 0x2a8   : > { %v2260_v2 = vadd.f32 %v6453_v29, %v2224_v8  ;;  %v6636_v9 = vsel %vm5607_vm2, 0, %v2464_v60  ;;  %v2168_v43 = vpop.f32.mrf.mxu0  ;;  %v6649_v62 = vsel %vm515_vm3, %v2605_v49, %v2609_v6 }
 0x2a9   : > { %7865 = vst [vmem:[#allocation25_spill] sm:$0xff] %v6636_v9  ;;  %v2077_v1 = vpop.f32.mrf.mxu3  ;;  %3176 = vmatmul.bf16.gmra.mxu1 %v6636_v9 }
 0x2aa   : > { %v2292_v38 = vmax.f32 %v2260_v2, 0.0  ;;  %v2078_v17 = vadd.f32 %v2077_v1, %v1988_v36  ;;  %v2614_v2 = vshll.u32 %v6512_v59, 16 }
 0x2ac   : > { %v2324_v40 = vpack.c.bf16 %v2292_v38, %v2292_v38  ;;  %v2167_v3 = vadd.f32 %v2166_v34, %v2078_v17 }
 0x2ae   : > { %v2388_v12 = vunpack.c.l.b16 %v2324_v40  ;;  %v2225_v7 = vadd.f32 %v2167_v3, %v6343_v39  ;;  %v1990_v55 = vpop.f32.mrf.mxu2  ;;  %v2616_v3 = vrot.slane %v2614_v2, 1  ;;  %v5306_v2 = vld [vmem:[%s7709_s3 + $0x58] sm:$0xff] }
 0x2af   : > { %3647 = vmatpush.bf16.msrb.mxu1 %v5306_v2 }
 0x2b0   : > { %v2413_v20 = vpack.c.b16 %v2388_v12, %v2387_v24  ;;  %v2261_v35 = vadd.f32 %v6453_v29, %v2225_v7  ;;  %v2171_v53 = vpop.f32.mrf.mxu0  ;;  %v7867_v24 = vld [vmem:[#allocation40_spill] sm:$0xff]  ;;  %v2612_v7 = vshrl.u32 %v6512_v59, 16 }
 0x2b1   : > { %v2079_v16 = vpop.f32.mrf.mxu3 }
 0x2b2   : > { %v2080_v61 = vadd.f32 %v2079_v16, %v1990_v55  ;;  %v2466_v34 = vshrl.u32 %v2413_v20, 16  ;;  %v2469_v13 = vshll.u32 %v2413_v20, 16  ;;  %v2293_v8 = vmax.f32 %v2261_v35, 0.0 }
 0x2b3   : > { %3240 = vmatmul.bf16.vlgmr.msrb.gmra.mxu2 %v6649_v62  ;;  %3562 = vmatmul.bf16.vlgmr.msrb.gmra.mxu0 %v7863_v4  ;;  %v2617_v49 = vor.u32 %v2616_v3, %v2612_v7  ;;  %v2585_v3 = vsel %vm5607_vm2, %v6517_v23, 0 }
 0x2b4   : > { %v2169_v47 = vadd.f32 %v2168_v43, %v2080_v61  ;;  %v6651_v39 = vrot.slane %v2466_v34, 7  ;;  %v2325_v1 = vpack.c.bf16 %v2293_v8, %v2293_v8  ;;  %v2584_v43 = vsel %vm5607_vm2, %v6499_v19, 0  ;;  %v7868_v34 = vld [vmem:[#allocation39_spill] sm:$0xff] }
 0x2b5   : > { %v2619_v41 = vshll.u32 %v2584_v43, 16  ;;  %v2843_v58 = vrot.slane %v2584_v43, 1 }
 0x2b6   : > { %v2226_v60 = vadd.f32 %v2169_v47, %v1710_v11  ;;  %3329 = vmatmul.bf16.vlgmr.msrb.gmra.mxu3 %v6655_v25  ;;  %v2471_v33 = vor.u32 %v2469_v13, %v6651_v39  ;;  %v1993_v32 = vpop.f32.mrf.mxu2  ;;  %v2389_v26 = vunpack.c.l.b16 %v2325_v1  ;;  %v1715_v11 = vadd.f32 %v7868_v34, %v6362_v14 }
 0x2b7   : > { %v2621_v6 = vrot.slane %v2619_v41, 1 }
 0x2b8   : > { %v2262_v30 = vadd.f32 %v6453_v29, %v2226_v60  ;;  %v6663_v15 = vsel %vm5607_vm2, 0, %v2471_v33  ;;  %v2173_v17 = vpop.f32.mrf.mxu0  ;;  %v6683_v33 = vsel %vm766_vm4, %v2842_v45, %v2843_v58  ;;  %v7870_v58 = vld [vmem:[#allocation21_spill] sm:$0xff] }
 0x2b9   : > { %7866 = vst [vmem:[#allocation11_spill] sm:$0xff] %v6663_v15  ;;  %v2082_v36 = vpop.f32.mrf.mxu3  ;;  %3181 = vmatmul.bf16.gmra.mxu1 %v6663_v15  ;;  %v6677_v13 = vsel %vm515_vm3, %v2617_v49, %v2621_v6  ;;  %v2624_v49 = vshrl.u32 %v6527_v21, 16  ;;  %v2845_v6 = vrot.slane %v6527_v21, 1 }
 0x2ba   : > { %v2294_v31 = vmax.f32 %v2262_v30, 0.0  ;;  %v2083_v38 = vadd.f32 %v2082_v36, %v1993_v32 }
 0x2bc   : > { %v2326_v56 = vpack.c.bf16 %v2294_v31, %v2294_v31  ;;  %v2172_v40 = vadd.f32 %v2171_v53, %v2083_v38  ;;  %v2626_v38 = vshll.u32 %v6527_v21, 16 }
 0x2be   : > { %v2390_v57 = vunpack.c.l.b16 %v2326_v56  ;;  %v2227_v12 = vadd.f32 %v2172_v40, %v7867_v24  ;;  %v1995_v55 = vpop.f32.mrf.mxu2  ;;  %v2631_v24 = vshll.u32 %v2585_v3, 16 }
 0x2c0   : > { %v2414_v20 = vpack.c.b16 %v2390_v57, %v2389_v26  ;;  %v2263_v35 = vadd.f32 %v6453_v29, %v2227_v12  ;;  %v2176_v19 = vpop.f32.mrf.mxu0  ;;  %v2628_v57 = vrot.slane %v2626_v38, 1  ;;  %v6701_v12 = vpop.f32.mrf.mxu1  ;;  %v2633_v34 = vrot.slane %v2631_v24, 1 }
 0x2c1   : > { %v2084_v16 = vpop.f32.mrf.mxu3 }
 0x2c2   : > { %v2085_v61 = vadd.f32 %v2084_v16, %v1995_v55  ;;  %v2473_v53 = vshrl.u32 %v2414_v20, 16  ;;  %v2476_v60 = vshll.u32 %v2414_v20, 16  ;;  %v2295_v30 = vmax.f32 %v2263_v35, 0.0 }
 0x2c3   : > { %3245 = vmatmul.bf16.gmra.mxu2 %v6677_v13  ;;  %3567 = vmatmul.bf16.gmra.mxu0 %v6485_v10  ;;  %v2629_v35 = vor.u32 %v2628_v57, %v2624_v49 }
 0x2c4   : > { %v2174_v47 = vadd.f32 %v2173_v17, %v2085_v61  ;;  %v6679_v8 = vrot.slane %v2473_v53, 7  ;;  %v2327_v17 = vpack.c.bf16 %v2295_v30, %v2295_v30  ;;  %v2846_v30 = vrot.slane %v2585_v3, 1 }
 0x2c5   : > { %v2638_v3 = vshll.u32 %v6573_v37, 16 }
 0x2c6   : > { %v2228_v32 = vadd.f32 %v2174_v47, %v1715_v11  ;;  %3334 = vmatmul.bf16.gmra.mxu3 %v6683_v33  ;;  %v2478_v14 = vor.u32 %v2476_v60, %v6679_v8  ;;  %v1998_v1 = vpop.f32.mrf.mxu2  ;;  %v2391_v7 = vunpack.c.l.b16 %v2327_v17  ;;  %v7871_v47 = vld [vmem:[#allocation6_spill] sm:$0xff] }
 0x2c7   : > { %v1720_v60 = vadd.f32 %v7871_v47, %v7870_v58 }
 0x2c8   : > { %v2264_v36 = vadd.f32 %v6453_v29, %v2228_v32  ;;  %v6694_v31 = vsel %vm5607_vm2, 0, %v2478_v14  ;;  %v2178_v40 = vpop.f32.mrf.mxu0 }
 0x2c9   : > { %7869 = vst [vmem:[#allocation27_spill] sm:$0xff] %v6694_v31  ;;  %v2087_v10 = vpop.f32.mrf.mxu3  ;;  %3186 = vmatmul.bf16.gmra.mxu1 %v6694_v31 }
 0x2ca   : > { %v2296_v43 = vmax.f32 %v2264_v36, 0.0  ;;  %v2088_v56 = vadd.f32 %v2087_v10, %v1998_v1  ;;  %v6716_v36 = vsel %vm766_vm4, %v2845_v6, %v2846_v30  ;;  %v7874_v6 = vld [vmem:[#allocation19_spill] sm:$0xff]  ;;  %v2848_v30 = vrot.slane %v6573_v37, 1 }
 0x2cb   : > { %7872 = vst [vmem:[#allocation28_spill] sm:$0xff] %v6716_v36 }
 0x2cc   : > { %v2328_v41 = vpack.c.bf16 %v2296_v43, %v2296_v43  ;;  %v2177_v26 = vadd.f32 %v2176_v19, %v2088_v56 }
 0x2ce   : > { %v2392_v20 = vunpack.c.l.b16 %v2328_v41  ;;  %v2229_v55 = vadd.f32 %v2177_v26, %v6368_v42  ;;  %v2000_v45 = vpop.f32.mrf.mxu2  ;;  %v6710_v42 = vsel %vm515_vm3, %v2629_v35, %v2633_v34  ;;  %v2636_v34 = vshrl.u32 %v6573_v37, 16 }
 0x2d0   : > { %v2415_v16 = vpack.c.b16 %v2392_v20, %v2391_v7  ;;  %v2265_v23 = vadd.f32 %v6453_v29, %v2229_v55  ;;  %v2181_v19 = vpop.f32.mrf.mxu0  ;;  %v2586_v20 = vsel %vm5607_vm2, %v6552_v50, 0 }
 0x2d1   : > { %v2089_v61 = vpop.f32.mrf.mxu3 }
 0x2d2   : > { %v2090_v53 = vadd.f32 %v2089_v61, %v2000_v45  ;;  %v2480_v11 = vshrl.u32 %v2415_v16, 16  ;;  %v2483_v2 = vshll.u32 %v2415_v16, 16  ;;  %v2297_v1 = vmax.f32 %v2265_v23, 0.0 }
 0x2d3   : > { %3250 = vmatmul.bf16.gmra.mxu2 %v6710_v42  ;;  %3572 = vmatmul.bf16.gmra.mxu0 %v6512_v59  ;;  %v2640_v16 = vrot.slane %v2638_v3, 1  ;;  %v2643_v45 = vshll.u32 %v2586_v20, 16 }
 0x2d4   : > { %v2179_v32 = vadd.f32 %v2178_v40, %v2090_v53  ;;  %v6712_v14 = vrot.slane %v2480_v11, 7  ;;  %v2329_v26 = vpack.c.bf16 %v2297_v1, %v2297_v1 }
 0x2d5   : > { %v2641_v47 = vor.u32 %v2640_v16, %v2636_v34 }
 0x2d6   : > { %v2230_v38 = vadd.f32 %v2179_v32, %v1720_v60  ;;  %v6719_v10 = vpop.f32.mrf.mxu1  ;;  %3339 = vmatmul.bf16.gmra.mxu3 %v6716_v36  ;;  %v2485_v17 = vor.u32 %v2483_v2, %v6712_v14  ;;  %v2003_v56 = vpop.f32.mrf.mxu2  ;;  %v2393_v35 = vunpack.c.l.b16 %v2329_v26  ;;  %v2645_v2 = vrot.slane %v2643_v45, 1 }
 0x2d8   : > { %v2266_v43 = vadd.f32 %v6453_v29, %v2230_v38  ;;  %v6726_v40 = vsel %vm5607_vm2, 0, %v2485_v17  ;;  %v2183_v7 = vpop.f32.mrf.mxu0  ;;  %v7875_v38 = vld [vmem:[#allocation7_spill] sm:$0xff]  ;;  %v6742_v3 = vsel %vm515_vm3, %v2641_v47, %v2645_v2 }
 0x2d9   : > { %7873 = vst [vmem:[#allocation13_spill] sm:$0xff] %v6726_v40  ;;  %v2092_v41 = vpop.f32.mrf.mxu3  ;;  %3191 = vmatmul.bf16.gmra.mxu1 %v6726_v40  ;;  %v1725_v17 = vadd.f32 %v7875_v38, %v6387_v44 }
 0x2da   : > { %v2298_v57 = vmax.f32 %v2266_v43, 0.0  ;;  %v2093_v24 = vadd.f32 %v2092_v41, %v2003_v56  ;;  %v2849_v43 = vrot.slane %v2586_v20, 1 }
 0x2dc   : > { %v2330_v55 = vpack.c.bf16 %v2298_v57, %v2298_v57  ;;  %v2182_v49 = vadd.f32 %v2181_v19, %v2093_v24  ;;  %v6748_v57 = vsel %vm766_vm4, %v2848_v30, %v2849_v43 }
 0x2dd   : > { %7876 = vst [vmem:[#allocation31_spill] sm:$0xff] %v6748_v57 }
 0x2de   : > { %v2394_v61 = vunpack.c.l.b16 %v2330_v55  ;;  %v2231_v23 = vadd.f32 %v2182_v49, %v7874_v6  ;;  %v6734_v53 = vpop.f32.mrf.mxu1  ;;  %v2005_v58 = vpop.f32.mrf.mxu2 }
 0x2e0   : > { %v2416_v11 = vpack.c.b16 %v2394_v61, %v2393_v35  ;;  %v2267_v50 = vadd.f32 %v6453_v29, %v2231_v23  ;;  %v2186_v19 = vpop.f32.mrf.mxu0  ;;  %v2650_v35 = vshll.u32 %v6616_v54, 16 }
 0x2e1   : > { %v2094_v60 = vpop.f32.mrf.mxu3 }
 0x2e2   : > { %v2095_v32 = vadd.f32 %v2094_v60, %v2005_v58  ;;  %v2487_v1 = vshrl.u32 %v2416_v11, 16  ;;  %v2490_v26 = vshll.u32 %v2416_v11, 16  ;;  %v2299_v24 = vmax.f32 %v2267_v50, 0.0 }
 0x2e3   : > { %3255 = vmatmul.bf16.gmra.mxu2 %v6742_v3  ;;  %3577 = vmatmul.bf16.gmra.mxu0 %v6527_v21  ;;  %v2587_v58 = vsel %vm5607_vm2, %v6607_v28, 0  ;;  %v2652_v30 = vrot.slane %v2650_v35, 1  ;;  %v7879_v35 = vld [vmem:[#allocation20_spill] sm:$0xff] }
 0x2e4   : > { %v2184_v56 = vadd.f32 %v2183_v7, %v2095_v32  ;;  %v6744_v41 = vrot.slane %v2487_v1, 7  ;;  %v5305_v7 = vld [vmem:[%s7709_s3 + $0x50] sm:$0xff]  ;;  %v2331_v6 = vpack.c.bf16 %v2299_v24, %v2299_v24  ;;  %v2655_v50 = vshll.u32 %v2587_v58, 16 }
 0x2e5   : > { %3648 = vmatpush.bf16.msrb.mxu1 %v5305_v7 }
 0x2e6   : > { %v2232_v55 = vadd.f32 %v2184_v56, %v1725_v17  ;;  %v6751_v49 = vpop.f32.mrf.mxu1  ;;  %3344 = vmatmul.bf16.gmra.mxu3 %v6748_v57  ;;  %v2492_v44 = vor.u32 %v2490_v26, %v6744_v41  ;;  %v2008_v16 = vpop.f32.mrf.mxu2  ;;  %v2395_v32 = vunpack.c.l.b16 %v2331_v6  ;;  %v2648_v17 = vshrl.u32 %v6616_v54, 16 }
 0x2e7   : > { %v2657_v7 = vrot.slane %v2655_v50, 1  ;;  %v2672_v57 = vshrl.u32 %v6663_v15, 16 }
 0x2e8   : > { %v2268_v20 = vadd.f32 %v6453_v29, %v2232_v55  ;;  %v6761_v45 = vsel %vm5607_vm2, 0, %v2492_v44  ;;  %v2188_v11 = vpop.f32.mrf.mxu0  ;;  %v2653_v26 = vor.u32 %v2652_v30, %v2648_v17  ;;  %v2851_v55 = vrot.slane %v6616_v54, 1 }
 0x2e9   : > { %7877 = vst [vmem:[#allocation14_spill] sm:$0xff] %v6761_v45  ;;  %v2097_v61 = vpop.f32.mrf.mxu3  ;;  %3196 = vmatmul.bf16.gmra.mxu1 %v6761_v45  ;;  %v2662_v17 = vshll.u32 %v6636_v9, 16 }
 0x2ea   : > { %v2300_v23 = vmax.f32 %v2268_v20, 0.0  ;;  %v2098_v34 = vadd.f32 %v2097_v61, %v2008_v16  ;;  %v7878_v16 = vld [vmem:[#allocation8_spill] sm:$0xff] }
 0x2eb   : > { %v1730_v61 = vadd.f32 %v7879_v35, %v7878_v16 }
 0x2ec   : > { %v2332_v47 = vpack.c.bf16 %v2300_v23, %v2300_v23  ;;  %v2187_v60 = vadd.f32 %v2186_v19, %v2098_v34  ;;  %v6777_v23 = vsel %vm515_vm3, %v2653_v26, %v2657_v7 }
 0x2ee   : > { %v2396_v2 = vunpack.c.l.b16 %v2332_v47  ;;  %v2233_v1 = vadd.f32 %v2187_v60, %v6393_v0  ;;  %v6769_v38 = vpop.f32.mrf.mxu1  ;;  %v2010_v56 = vpop.f32.mrf.mxu2  ;;  %v2852_v0 = vrot.slane %v2587_v58, 1 }
 0x2f0   : > { %v2417_v43 = vpack.c.b16 %v2396_v2, %v2395_v32  ;;  %v2269_v28 = vadd.f32 %v6453_v29, %v2233_v1  ;;  %v2191_v19 = vpop.f32.mrf.mxu0  ;;  %v6783_v60 = vsel %vm766_vm4, %v2851_v55, %v2852_v0  ;;  %v7882_v0 = vld [vmem:[#allocation23_spill] sm:$0xff] }
 0x2f1   : > { %v2099_v24 = vpop.f32.mrf.mxu3  ;;  %7880 = vst [vmem:[#allocation29_spill] sm:$0xff] %v6783_v60 }
 0x2f2   : > { %v2100_v44 = vadd.f32 %v2099_v24, %v2010_v56  ;;  %v2494_v20 = vshrl.u32 %v2417_v43, 16  ;;  %v2497_v47 = vshll.u32 %v2417_v43, 16  ;;  %v2301_v30 = vmax.f32 %v2269_v28, 0.0 }
 0x2f3   : > { %3260 = vmatmul.bf16.gmra.mxu2 %v6777_v23  ;;  %3582 = vmatmul.bf16.gmra.mxu0 %v6573_v37  ;;  %v2588_v28 = vsel %vm5607_vm2, %v6623_v51, 0 }
 0x2f4   : > { %v2189_v6 = vadd.f32 %v2188_v11, %v2100_v44  ;;  %v6779_v34 = vrot.slane %v2494_v20, 7  ;;  %v2333_v56 = vpack.c.bf16 %v2301_v30, %v2301_v30  ;;  %v2664_v20 = vrot.slane %v2662_v17, 1 }
 0x2f5   : > { %v2667_v16 = vshll.u32 %v2588_v28, 16 }
 0x2f6   : > { %v2234_v50 = vadd.f32 %v2189_v6, %v1730_v61  ;;  %v6786_v32 = vpop.f32.mrf.mxu1  ;;  %3349 = vmatmul.bf16.gmra.mxu3 %v6783_v60  ;;  %v2499_v11 = vor.u32 %v2497_v47, %v6779_v34  ;;  %v2013_v2 = vpop.f32.mrf.mxu2  ;;  %v2397_v35 = vunpack.c.l.b16 %v2333_v56  ;;  %v7883_v56 = vld [vmem:[#allocation9_spill] sm:$0xff] }
 0x2f7   : > { %v2669_v17 = vrot.slane %v2667_v16, 1 }
 0x2f8   : > { %v2270_v58 = vadd.f32 %v6453_v29, %v2234_v50  ;;  %v6793_v1 = vsel %vm5607_vm2, 0, %v2499_v11  ;;  %v2193_v55 = vpop.f32.mrf.mxu0  ;;  %v2660_v50 = vshrl.u32 %v6636_v9, 16 }
 0x2f9   : > { %7881 = vst [vmem:[#allocation30_spill] sm:$0xff] %v6793_v1  ;;  %v2102_v43 = vpop.f32.mrf.mxu3  ;;  %3201 = vmatmul.bf16.gmra.mxu1 %v6793_v1 }
 0x2fa   : > { %v2302_v26 = vmax.f32 %v2270_v58, 0.0  ;;  %v2103_v24 = vadd.f32 %v2102_v43, %v2013_v2  ;;  %v2665_v58 = vor.u32 %v2664_v20, %v2660_v50  ;;  %v2854_v43 = vrot.slane %v6636_v9, 1  ;;  %v6828_v50 = vld [vmem:[%s7708_s2] ss:$0 sm:$0xff] }
 0x2fc   : > { %v2334_v44 = vpack.c.bf16 %v2302_v26, %v2302_v26  ;;  %v2192_v7 = vadd.f32 %v2191_v19, %v2103_v24  ;;  %v6809_v60 = vsel %vm515_vm3, %v2665_v58, %v2669_v17  ;;  %v2674_v58 = vshll.u32 %v6663_v15, 16 }
 0x2fe   : > { %v2398_v61 = vunpack.c.l.b16 %v2334_v44  ;;  %v2235_v6 = vadd.f32 %v2192_v7, %v7882_v0  ;;  %v6801_v47 = vpop.f32.mrf.mxu1  ;;  %v2015_v11 = vpop.f32.mrf.mxu2  ;;  %v7884_v44 = vld [vmem:[#allocation22_spill] sm:$0xff]  ;;  %v2855_v7 = vrot.slane %v2588_v28, 1 }
 0x2ff   : > { %v1735_v4 = vadd.f32 %v7884_v44, %v7883_v56  ;;  %v5304_v28 = vld [vmem:[%s7709_s3 + $0x48] sm:$0xff] }
 0x300   : > { %v2418_v30 = vpack.c.b16 %v2398_v61, %v2397_v35  ;;  %v2271_v51 = vadd.f32 %v6453_v29, %v2235_v6  ;;  %v2196_v19 = vpop.f32.mrf.mxu0  ;;  %v6815_v61 = vsel %vm766_vm4, %v2854_v43, %v2855_v7  ;;  %3649 = vmatpush.bf16.msrb.mxu1 %v5304_v28  ;;  %v2676_v7 = vrot.slane %v2674_v58, 1 }
 0x301   : > { %v2104_v2 = vpop.f32.mrf.mxu3  ;;  %7885 = vst [vmem:[#allocation15_spill] sm:$0xff] %v6815_v61 }
 0x302   : > { %v2105_v26 = vadd.f32 %v2104_v2, %v2015_v11  ;;  %v2501_v24 = vshrl.u32 %v2418_v30, 16  ;;  %v2504_v20 = vshll.u32 %v2418_v30, 16  ;;  %v2303_v29 = vmax.f32 %v2271_v51, 0.0 }
 0x303   : > { %3265 = vmatmul.bf16.gmra.mxu2 %v6809_v60  ;;  %3587 = vmatmul.bf16.gmra.mxu0 %v6616_v54  ;;  %v2857_v54 = vrot.slane %v6663_v15, 1 }
 0x304   : > { %v2194_v0 = vadd.f32 %v2193_v55, %v2105_v26  ;;  %v6811_v35 = vrot.slane %v2501_v24, 7  ;;  %v2335_v43 = vpack.c.bf16 %v2303_v29, %v2303_v29  ;;  %v2589_v24 = vsel %vm5607_vm2, %v6651_v39, 0 }
 0x306   : > { %v2236_v16 = vadd.f32 %v2194_v0, %v1735_v4  ;;  %v6818_v6 = vpop.f32.mrf.mxu1  ;;  %3354 = vmatmul.bf16.gmra.mxu3 %v6815_v61  ;;  %v2506_v55 = vor.u32 %v2504_v20, %v6811_v35  ;;  %v2018_v11 = vpop.f32.mrf.mxu2  ;;  %v2679_v0 = vshll.u32 %v2589_v24, 16  ;;  %v2399_v20 = vunpack.c.l.b16 %v2335_v43  ;;  %v7888_v43 = vld [vmem:[#allocation26_spill] sm:$0xff] }
 0x308   : > { %v2272_v30 = vadd.f32 %v6828_v50, %v2236_v16  ;;  %v6833_v4 = vsel %vm5607_vm2, 0, %v2506_v55  ;;  %v2198_v17 = vpop.f32.mrf.mxu0  ;;  %v7887_v55 = vld [vmem:[#allocation10_spill] sm:$0xff]  ;;  %v2681_v58 = vrot.slane %v2679_v0, 1 }
 0x309   : > { %7886 = vst [vmem:[#allocation34_spill] sm:$0xff] %v6833_v4  ;;  %v2107_v2 = vpop.f32.mrf.mxu3  ;;  %3206 = vmatmul.bf16.gmra.mxu1 %v6833_v4 }
 0x30a   : > { %v2304_v51 = vmax.f32 %v2272_v30, 0.0  ;;  %v2108_v26 = vadd.f32 %v2107_v2, %v2018_v11  ;;  %v2677_v11 = vor.u32 %v2676_v7, %v2672_v57 }
 0x30c   : > { %v2336_v56 = vpack.c.bf16 %v2304_v51, %v2304_v51  ;;  %v2197_v44 = vadd.f32 %v2196_v19, %v2108_v26  ;;  %v6849_v36 = vsel %vm515_vm3, %v2677_v11, %v2681_v58  ;;  %v2590_v58 = vsel %vm5607_vm2, %v6679_v8, 0 }
 0x30e   : > { %v2400_v16 = vunpack.c.l.b16 %v2336_v56  ;;  %v2237_v61 = vadd.f32 %v2197_v44, %v7887_v55  ;;  %v6841_v28 = vpop.f32.mrf.mxu1  ;;  %v2020_v30 = vpop.f32.mrf.mxu2  ;;  %v1740_v56 = vadd.f32 %v7888_v43, %v6423_v18  ;;  %v2858_v44 = vrot.slane %v2589_v24, 1 }
 0x310   : > { %v2419_v29 = vpack.c.b16 %v2400_v16, %v2399_v20  ;;  %v2273_v39 = vadd.f32 %v6828_v50, %v2237_v61  ;;  %v2201_v19 = vpop.f32.mrf.mxu0  ;;  %v6855_v7 = vsel %vm766_vm4, %v2857_v54, %v2858_v44  ;;  %v2686_v54 = vshll.u32 %v6694_v31, 16 }
 0x311   : > { %v2109_v2 = vpop.f32.mrf.mxu3  ;;  %7889 = vst [vmem:[#allocation16_spill] sm:$0xff] %v6855_v7  ;;  %v2691_v44 = vshll.u32 %v2590_v58, 16 }
 0x312   : > { %v2110_v51 = vadd.f32 %v2109_v2, %v2020_v30  ;;  %v2508_v26 = vshrl.u32 %v2419_v29, 16  ;;  %v2511_v57 = vshll.u32 %v2419_v29, 16  ;;  %v2305_v61 = vmax.f32 %v2273_v39, 0.0 }
 0x313   : > { %3270 = vmatmul.bf16.gmra.mxu2 %v6849_v36  ;;  %3592 = vmatmul.bf16.gmra.mxu0 %v6636_v9  ;;  %v2863_v9 = vrot.slane %v6726_v40, 1 }
 0x314   : > { %v2199_v55 = vadd.f32 %v2198_v17, %v2110_v51  ;;  %v6851_v20 = vrot.slane %v2508_v26, 7  ;;  %v2337_v11 = vpack.c.bf16 %v2305_v61, %v2305_v61 }
 0x316   : > { %v2238_v0 = vadd.f32 %v2199_v55, %v1740_v56  ;;  %v6858_v16 = vpop.f32.mrf.mxu1  ;;  %3359 = vmatmul.bf16.gmra.mxu3 %v6855_v7  ;;  %v2513_v18 = vor.u32 %v2511_v57, %v6851_v20  ;;  %v2023_v24 = vpop.f32.mrf.mxu2  ;;  %v2688_v56 = vrot.slane %v2686_v54, 1  ;;  %v2401_v55 = vunpack.c.l.b16 %v2337_v11 }
 0x317   : > { %v2684_v7 = vshrl.u32 %v6694_v31, 16 }
 0x318   : > { %v2274_v17 = vadd.f32 %v6828_v50, %v2238_v0  ;;  %v6865_v29 = vsel %vm5607_vm2, 0, %v2513_v18  ;;  %v2203_v51 = vpop.f32.mrf.mxu0 }
 0x319   : > { %7890 = vst [vmem:[#allocation32_spill] sm:$0xff] %v6865_v29  ;;  %v2112_v30 = vpop.f32.mrf.mxu3  ;;  %3211 = vmatmul.bf16.gmra.mxu1 %v6865_v29 }
 0x31a   : > { %v2306_v2 = vmax.f32 %v2274_v17, 0.0  ;;  %v2113_v39 = vadd.f32 %v2112_v30, %v2023_v24  ;;  %v2689_v24 = vor.u32 %v2688_v56, %v2684_v7  ;;  %v5303_v30 = vld [vmem:[%s7709_s3 + $0x40] sm:$0xff] }
 0x31b   : > { %3650 = vmatpush.bf16.msrb.mxu1 %v5303_v30 }
 0x31c   : > { %v2338_v26 = vpack.c.bf16 %v2306_v2, %v2306_v2  ;;  %v2202_v43 = vadd.f32 %v2201_v19, %v2113_v39  ;;  %v2860_v19 = vrot.slane %v6694_v31, 1  ;;  %v2693_v39 = vrot.slane %v2691_v44, 1 }
 0x31e   : > { %v2402_v57 = vunpack.c.l.b16 %v2338_v26  ;;  %v2239_v0 = vadd.f32 %v2202_v43, %v6427_v48  ;;  %v6873_v18 = vpop.f32.mrf.mxu1  ;;  %v2025_v17 = vpop.f32.mrf.mxu2  ;;  %v1745_v26 = vadd.f32 %v6430_v52, %v6434_v46  ;;  %v2861_v43 = vrot.slane %v2590_v58, 1 }
 0x31f   : > { %v6884_v7 = vsel %vm515_vm3, %v2689_v24, %v2693_v39  ;;  %v2591_v39 = vsel %vm5607_vm2, %v6712_v14, 0 }
 0x320   : > { %v2420_v61 = vpack.c.b16 %v2402_v57, %v2401_v55  ;;  %v2275_v54 = vadd.f32 %v6828_v50, %v2239_v0  ;;  %v2206_v2 = vpop.f32.mrf.mxu0  ;;  %v6890_v0 = vsel %vm766_vm4, %v2860_v19, %v2861_v43 }
 0x321   : > { %v2114_v8 = vpop.f32.mrf.mxu3  ;;  %7891 = vst [vmem:[#allocation33_spill] sm:$0xff] %v6890_v0 }
 0x322   : > { %v2115_v11 = vadd.f32 %v2114_v8, %v2025_v17  ;;  %v2515_v48 = vshrl.u32 %v2420_v61, 16  ;;  %v2518_v57 = vshll.u32 %v2420_v61, 16  ;;  %v2307_v44 = vmax.f32 %v2275_v54, 0.0 }
 0x323   : > { %3275 = vmatmul.bf16.gmra.mxu2 %v6884_v7  ;;  %3597 = vmatmul.bf16.gmra.mxu0 %v6663_v15  ;;  %v2698_v61 = vshll.u32 %v6726_v40, 16  ;;  %v2696_v15 = vshrl.u32 %v6726_v40, 16 }
 0x324   : > { %v2204_v55 = vadd.f32 %v2203_v51, %v2115_v11  ;;  %v6886_v56 = vrot.slane %v2515_v48, 7  ;;  %v2339_v8 = vpack.c.bf16 %v2307_v44, %v2307_v44 }
 0x325   : > { %v2700_v43 = vrot.slane %v2698_v61, 1 }
 0x326   : > { %v2240_v17 = vadd.f32 %v2204_v55, %v1745_v26  ;;  %v6893_v30 = vpop.f32.mrf.mxu1  ;;  %3364 = vmatmul.bf16.gmra.mxu3 %v6890_v0  ;;  %v2520_v52 = vor.u32 %v2518_v57, %v6886_v56  ;;  %v2028_v51 = vpop.f32.mrf.mxu2  ;;  %v2703_v55 = vshll.u32 %v2591_v39, 16  ;;  %v2403_v57 = vunpack.c.l.b16 %v2339_v8 }
 0x327   : > { %v1750_v8 = vadd.f32 %v6701_v12, %v6446_v27 }
 0x328   : > { %v2276_v46 = vadd.f32 %v6828_v50, %v2240_v17  ;;  %v6900_v58 = vsel %vm5607_vm2, 0, %v2520_v52  ;;  %v2208_v11 = vpop.f32.mrf.mxu0  ;;  %v2705_v61 = vrot.slane %v2703_v55, 1 }
 0x329   : > { %7892 = vst [vmem:[#allocation35_spill] sm:$0xff] %v6900_v58  ;;  %v2117_v24 = vpop.f32.mrf.mxu3  ;;  %3216 = vmatmul.bf16.gmra.mxu1 %v6900_v58 }
 0x32a   : > { %v2308_v19 = vmax.f32 %v2276_v46, 0.0  ;;  %v2118_v54 = vadd.f32 %v2117_v24, %v2028_v51  ;;  %v2701_v51 = vor.u32 %v2700_v43, %v2696_v15  ;;  %v5318_v15 = vld [vmem:[%s7709_s3 + $0xb8] sm:$0xff] }
 0x32b   : > { %3732 = vmatpush.bf16.msra.mxu2 %v5318_v15 }
 0x32c   : > { %v2340_v48 = vpack.c.bf16 %v2308_v19, %v2308_v19  ;;  %v2207_v26 = vadd.f32 %v2206_v2, %v2118_v54  ;;  %v6922_v43 = vsel %vm515_vm3, %v2701_v51, %v2705_v61  ;;  %v2710_v51 = vshll.u32 %v6761_v45, 16 }
 0x32e   : > { %v2404_v17 = vunpack.c.l.b16 %v2340_v48  ;;  %v2241_v52 = vadd.f32 %v2207_v26, %v6441_v22  ;;  %v6908_v0 = vpop.f32.mrf.mxu1  ;;  %v2030_v46 = vpop.f32.mrf.mxu2  ;;  %v2864_v22 = vrot.slane %v2591_v39, 1  ;;  %v5350_v48 = vld [vmem:[%s7709_s3 + $0x1b8] sm:$0xff]  ;;  %v2712_v15 = vrot.slane %v2710_v51, 1 }
 0x32f   : > { %4013 = vmatpush.bf16.msra.mxu3 %v5350_v48 }
 0x330   : > { %v2421_v44 = vpack.c.b16 %v2404_v17, %v2403_v57  ;;  %v2277_v14 = vadd.f32 %v6828_v50, %v2241_v52  ;;  %v3563_v2 = vpop.f32.mrf.mxu0  ;;  %v6928_v27 = vsel %vm766_vm4, %v2863_v9, %v2864_v22  ;;  %v5358_v52 = vld [vmem:[%s7709_s3 + $0x1f8] sm:$0xff] }
 0x331   : > { %v2119_v24 = vpop.f32.mrf.mxu3  ;;  %7893 = vst [vmem:[#allocation36_spill] sm:$0xff] %v6928_v27  ;;  %4102 = vmatpush.bf16.msra.mxu0 %v5358_v52  ;;  %v5366_v22 = vld [vmem:[%s7709_s3 + $0x238] sm:$0xff] }
 0x332   : > { %v2120_v19 = vadd.f32 %v2119_v24, %v2030_v46  ;;  %v2522_v54 = vshrl.u32 %v2421_v44, 16  ;;  %v2525_v55 = vshll.u32 %v2421_v44, 16  ;;  %v2309_v12 = vmax.f32 %v2277_v14, 0.0  ;;  %4191 = vmatpush.bf16.msra.mxu1 %v5366_v22 }
 0x333   : > { %3280 = vmatmul.bf16.gmra.mxu2 %v6922_v43  ;;  %3602 = vmatmul.bf16.gmra.mxu0 %v6694_v31 }
 0x334   : > { %v2209_v26 = vadd.f32 %v2208_v11, %v2120_v19  ;;  %v6924_v57 = vrot.slane %v2522_v54, 7  ;;  %v2341_v19 = vpack.c.bf16 %v2309_v12, %v2309_v12  ;;  %v2708_v12 = vshrl.u32 %v6761_v45, 16 }
 0x336   : > { %v2242_v39 = vadd.f32 %v2209_v26, %v1750_v8  ;;  %v6931_v17 = vpop.f32.mrf.mxu1  ;;  %3369 = vmatmul.bf16.gmra.mxu3 %v6928_v27  ;;  %v2527_v11 = vor.u32 %v2525_v55, %v6924_v57  ;;  %v3241_v46 = vpop.f32.mrf.mxu2  ;;  %v2405_v55 = vunpack.c.l.b16 %v2341_v19 }
 0x337   : > { %v3242_v24 = vadd.f32 %v3241_v46, %v6719_v10  ;;  %v2713_v46 = vor.u32 %v2712_v15, %v2708_v12 }
 0x338   : > { %v2278_v44 = vadd.f32 %v6828_v50, %v2242_v39  ;;  %v6941_v9 = vsel %vm5607_vm2, 0, %v2527_v11  ;;  %v3565_v54 = vpop.f32.mrf.mxu0  ;;  %v2592_v50 = vsel %vm5607_vm2, %v6744_v41, 0 }
 0x339   : > { %3221 = vmatmul.bf16.gmra.mxu1 %v6941_v9  ;;  %v3330_v14 = vpop.f32.mrf.mxu3  ;;  %v2715_v11 = vshll.u32 %v2592_v50, 16 }
 0x33a   : > { %v2310_v61 = vmax.f32 %v2278_v44, 0.0  ;;  %v3331_v8 = vadd.f32 %v3330_v14, %v3242_v24  ;;  %v2866_v14 = vrot.slane %v6761_v45, 1 }
 0x33b   : > { %v2717_v51 = vrot.slane %v2715_v11, 1  ;;  %v2722_v11 = vshll.u32 %v6793_v1, 16 }
 0x33c   : > { %v2342_v48 = vpack.c.bf16 %v2310_v61, %v2310_v61  ;;  %v6952_v26 = vadd.f32 %v3563_v2, %v3331_v8  ;;  %v2867_v8 = vrot.slane %v2592_v50, 1 }
 0x33d   : > { %v6960_v19 = vsel %vm515_vm3, %v2713_v46, %v2717_v51  ;;  %v2720_v51 = vshrl.u32 %v6793_v1, 16 }
 0x33e   : > { %v2406_v10 = vunpack.c.l.b16 %v2342_v48  ;;  %v6954_v39 = vpop.f32.mrf.mxu1  ;;  %v3243_v44 = vpop.f32.mrf.mxu2  ;;  %v6966_v15 = vsel %vm766_vm4, %v2866_v14, %v2867_v8 }
 0x33f   : > { %v3244_v41 = vadd.f32 %v3243_v44, %v6734_v53  ;;  %7894 = vst [vmem:[#allocation5_spill] sm:$0xff] %v6966_v15 }
 0x340   : > { %v2422_v52 = vpack.c.b16 %v2406_v10, %v2405_v55  ;;  %v3568_v61 = vpop.f32.mrf.mxu0 }
 0x341   : > { %v3332_v24 = vpop.f32.mrf.mxu3 }
 0x342   : > { %v2529_v22 = vshrl.u32 %v2422_v52, 16  ;;  %v3333_v2 = vadd.f32 %v3332_v24, %v3244_v41  ;;  %v2532_v27 = vshll.u32 %v2422_v52, 16  ;;  %v2593_v41 = vsel %vm5607_vm2, %v6779_v34, 0  ;;  %v5349_v34 = vld [vmem:[%s7709_s3 + $0x1b0] sm:$0xff] }
 0x343   : > { %3285 = vmatmul.bf16.gmra.mxu2 %v6960_v19  ;;  %3607 = vmatmul.bf16.gmra.mxu0 %v6726_v40  ;;  %v2724_v24 = vrot.slane %v2722_v11, 1  ;;  %v2870_v40 = vrot.slane %v2593_v41, 1 }
 0x344   : > { %v6962_v48 = vrot.slane %v2529_v22, 7  ;;  %v6969_v53 = vadd.f32 %v3565_v54, %v3333_v2  ;;  %v2727_v22 = vshll.u32 %v2593_v41, 16  ;;  %4014 = vmatpush.bf16.msra.mxu3 %v5349_v34 }
 0x345   : > { %v2725_v8 = vor.u32 %v2724_v24, %v2720_v51  ;;  %v5357_v24 = vld [vmem:[%s7709_s3 + $0x1f0] sm:$0xff] }
 0x346   : > { %v6971_v55 = vpop.f32.mrf.mxu1  ;;  %3374 = vmatmul.bf16.gmra.mxu3 %v6966_v15  ;;  %v2534_v50 = vor.u32 %v2532_v27, %v6962_v48  ;;  %v3246_v12 = vpop.f32.mrf.mxu2  ;;  %4103 = vmatpush.bf16.msra.mxu0 %v5357_v24 }
 0x347   : > { %v3247_v52 = vadd.f32 %v3246_v12, %v6751_v49  ;;  %v2869_v12 = vrot.slane %v6793_v1, 1 }
 0x348   : > { %v6977_v10 = vsel %vm5607_vm2, 0, %v2534_v50  ;;  %v3570_v54 = vpop.f32.mrf.mxu0 }
 0x349   : > { %3226 = vmatmul.bf16.gmra.mxu1 %v6977_v10  ;;  %v3335_v44 = vpop.f32.mrf.mxu3  ;;  %v2884_v63 = vrot.slane %v6977_v10, 1 }
 0x34a   : > { %v3336_v46 = vadd.f32 %v3335_v44, %v3247_v52  ;;  %v2729_v44 = vrot.slane %v2727_v22, 1  ;;  %v2734_v22 = vshll.u32 %v6833_v4, 16 }
 0x34c   : > { %v6985_v27 = vadd.f32 %v3568_v61, %v3336_v46  ;;  %v5317_v61 = vld [vmem:[%s7709_s3 + $0xb0] sm:$0xff]  ;;  %v6999_v11 = vsel %vm515_vm3, %v2725_v8, %v2729_v44  ;;  %v2594_v8 = vsel %vm5607_vm2, %v6811_v35, 0  ;;  %v2872_v35 = vrot.slane %v6833_v4, 1 }
 0x34d   : > { %3733 = vmatpush.bf16.msra.mxu2 %v5317_v61  ;;  %v2739_v34 = vshll.u32 %v2594_v8, 16  ;;  %v2873_v31 = vrot.slane %v2594_v8, 1 }
 0x34e   : > { %v6987_v14 = vpop.f32.mrf.mxu1  ;;  %v3248_v2 = vpop.f32.mrf.mxu2 }
 0x34f   : > { %v3249_v50 = vadd.f32 %v3248_v2, %v6769_v38  ;;  %v7003_v38 = vsel %vm766_vm4, %v2869_v12, %v2870_v40 }
 0x350   : > { %v3573_v52 = vpop.f32.mrf.mxu0  ;;  %7895 = vst [vmem:[#allocation37_spill] sm:$0xff] %v7003_v38 }
 0x351   : > { %v3337_v49 = vpop.f32.mrf.mxu3 }
 0x352   : > { %v3338_v15 = vadd.f32 %v3337_v49, %v3249_v50  ;;  %v5365_v50 = vld [vmem:[%s7709_s3 + $0x230] sm:$0xff]  ;;  %v2736_v49 = vrot.slane %v2734_v22, 1 }
 0x353   : > { %3290 = vmatmul.bf16.gmra.mxu2 %v6999_v11  ;;  %3612 = vmatmul.bf16.gmra.mxu0 %v6761_v45 }
 0x354   : > { %v7006_v46 = vadd.f32 %v3570_v54, %v3338_v15  ;;  %4192 = vmatpush.bf16.msra.mxu1 %v5365_v50 }
 0x356   : > { %v7008_v41 = vpop.f32.mrf.mxu1  ;;  %3379 = vmatmul.bf16.gmra.mxu3 %v7003_v38  ;;  %v3251_v51 = vpop.f32.mrf.mxu2  ;;  %v2741_v38 = vrot.slane %v2739_v34, 1 }
 0x357   : > { %v3252_v40 = vadd.f32 %v3251_v51, %v6786_v32  ;;  %v2732_v32 = vshrl.u32 %v6833_v4, 16 }
 0x358   : > { %v3575_v15 = vpop.f32.mrf.mxu0 }
 0x359   : > { %v3340_v2 = vpop.f32.mrf.mxu3  ;;  %3651 = vmatmul.bf16.vlgmr.msrb.gmra.mxu1 %v7864_v5  ;;  %v2737_v24 = vor.u32 %v2736_v49, %v2732_v32  ;;  %v2746_v49 = vshll.u32 %v6865_v29, 16 }
 0x35a   : > { %v3341_v54 = vadd.f32 %v3340_v2, %v3252_v40 }
 0x35b   : > { %v7031_v22 = vsel %vm515_vm3, %v2737_v24, %v2741_v38  ;;  %v2744_v24 = vshrl.u32 %v6865_v29, 16 }
 0x35c   : > { %v7023_v12 = vadd.f32 %v3573_v52, %v3341_v54  ;;  %v7035_v52 = vsel %vm766_vm4, %v2872_v35, %v2873_v31  ;;  %v2595_v31 = vsel %vm5607_vm2, %v6851_v20, 0  ;;  %v5348_v20 = vld [vmem:[%s7709_s3 + $0x1a8] sm:$0xff] }
 0x35d   : > { %7896 = vst [vmem:[#allocation17_spill] sm:$0xff] %v7035_v52  ;;  %4015 = vmatpush.bf16.msra.mxu3 %v5348_v20 }
 0x35e   : > { %v7025_v44 = vpop.f32.mrf.mxu1  ;;  %v3253_v61 = vpop.f32.mrf.mxu2 }
 0x35f   : > { %v3254_v51 = vadd.f32 %v3253_v61, %v6801_v47 }
 0x360   : > { %v3578_v2 = vpop.f32.mrf.mxu0 }
 0x361   : > { %v3342_v40 = vpop.f32.mrf.mxu3 }
 0x362   : > { %v3343_v45 = vadd.f32 %v3342_v40, %v3254_v51  ;;  %v2751_v51 = vshll.u32 %v2595_v31, 16 }
 0x363   : > { %3295 = vmatmul.bf16.gmra.mxu2 %v7031_v22  ;;  %3617 = vmatmul.bf16.gmra.mxu0 %v6793_v1  ;;  %v2876_v1 = vrot.slane %v2595_v31, 1 }
 0x364   : > { %v7038_v54 = vadd.f32 %v3575_v15, %v3343_v45  ;;  %v2748_v45 = vrot.slane %v2746_v49, 1 }
 0x366   : > { %v7040_v47 = vpop.f32.mrf.mxu1  ;;  %3384 = vmatmul.bf16.gmra.mxu3 %v7035_v52  ;;  %v3256_v50 = vpop.f32.mrf.mxu2  ;;  %v2749_v35 = vor.u32 %v2748_v45, %v2744_v24  ;;  %v5356_v45 = vld [vmem:[%s7709_s3 + $0x1e8] sm:$0xff] }
 0x367   : > { %v3257_v8 = vadd.f32 %v3256_v50, %v6818_v6  ;;  %4104 = vmatpush.bf16.msra.mxu0 %v5356_v45 }
 0x368   : > { %v3580_v32 = vpop.f32.mrf.mxu0 }
 0x369   : > { %v3345_v38 = vpop.f32.mrf.mxu3  ;;  %3656 = vmatmul.bf16.gmra.mxu1 %v6649_v62  ;;  %v2875_v62 = vrot.slane %v6865_v29, 1 }
 0x36a   : > { %v3346_v34 = vadd.f32 %v3345_v38, %v3257_v8  ;;  %v2753_v38 = vrot.slane %v2751_v51, 1  ;;  %v2758_v51 = vshll.u32 %v6900_v58, 16 }
 0x36c   : > { %v7049_v15 = vadd.f32 %v3578_v2, %v3346_v34  ;;  %v5316_v2 = vld [vmem:[%s7709_s3 + $0xa8] sm:$0xff]  ;;  %v7063_v49 = vsel %vm515_vm3, %v2749_v35, %v2753_v38  ;;  %v2596_v35 = vsel %vm5607_vm2, %v6886_v56, 0  ;;  %v2878_v56 = vrot.slane %v6900_v58, 1 }
 0x36d   : > { %3734 = vmatpush.bf16.msra.mxu2 %v5316_v2  ;;  %v2763_v20 = vshll.u32 %v2596_v35, 16 }
 0x36e   : > { %v7051_v61 = vpop.f32.mrf.mxu1  ;;  %v3258_v40 = vpop.f32.mrf.mxu2 }
 0x36f   : > { %v3259_v6 = vadd.f32 %v3258_v40, %v6841_v28  ;;  %v7067_v28 = vsel %vm766_vm4, %v2875_v62, %v2876_v1 }
 0x370   : > { %v3583_v8 = vpop.f32.mrf.mxu0  ;;  %7897 = vst [vmem:[#allocation38_spill] sm:$0xff] %v7067_v28 }
 0x371   : > { %v3347_v50 = vpop.f32.mrf.mxu3 }
 0x372   : > { %v3348_v52 = vadd.f32 %v3347_v50, %v3259_v6  ;;  %v5364_v6 = vld [vmem:[%s7709_s3 + $0x228] sm:$0xff]  ;;  %v2760_v50 = vrot.slane %v2758_v51, 1  ;;  %v5315_v51 = vld [vmem:[%s7709_s3 + $0xa0] sm:$0xff] }
 0x373   : > { %3300 = vmatmul.bf16.gmra.mxu2 %v7063_v49  ;;  %3622 = vmatmul.bf16.gmra.mxu0 %v6833_v4  ;;  %v5311_v4 = vld [vmem:[%s7709_s3 + $0x80] sm:$0xff] }
 0x374   : > { %v7070_v34 = vadd.f32 %v3580_v32, %v3348_v52  ;;  %4193 = vmatpush.bf16.msra.mxu1 %v5364_v6  ;;  %3735 = vmatpush.bf16.msra.mxu2 %v5315_v51 }
 0x376   : > { %v7072_v31 = vpop.f32.mrf.mxu1  ;;  %3389 = vmatmul.bf16.gmra.mxu3 %v7067_v28  ;;  %v3261_v24 = vpop.f32.mrf.mxu2  ;;  %v2765_v28 = vrot.slane %v2763_v20, 1 }
 0x377   : > { %v3262_v1 = vadd.f32 %v3261_v24, %v6858_v16  ;;  %v2756_v16 = vshrl.u32 %v6900_v58, 16 }
 0x378   : > { %v3585_v52 = vpop.f32.mrf.mxu0 }
 0x379   : > { %v3350_v40 = vpop.f32.mrf.mxu3  ;;  %3661 = vmatmul.bf16.gmra.mxu1 %v6677_v13  ;;  %v2761_v45 = vor.u32 %v2760_v50, %v2756_v16  ;;  %v2879_v50 = vrot.slane %v2596_v35, 1  ;;  %v5346_v35 = vld [vmem:[%s7709_s3 + $0x198] sm:$0xff] }
 0x37a   : > { %v3351_v32 = vadd.f32 %v3350_v40, %v3262_v1 }
 0x37b   : > { %v7108_v16 = vsel %vm766_vm4, %v2878_v56, %v2879_v50 }
 0x37c   : > { %v7087_v62 = vadd.f32 %v3583_v8, %v3351_v32  ;;  %v5347_v8 = vld [vmem:[%s7709_s3 + $0x1a0] sm:$0xff]  ;;  %7899 = vst [vmem:[#allocation18_spill] sm:$0xff] %v7108_v16 }
 0x37d   : > { %v5355_v32 = vld [vmem:[%s7709_s3 + $0x1e0] sm:$0xff]  ;;  %4016 = vmatpush.bf16.msra.mxu3 %v5347_v8  ;;  %v5313_v8 = vld [vmem:[%s7709_s3 + $0x90] sm:$0xff] }
 0x37e   : > { %v7089_v38 = vpop.f32.mrf.mxu1  ;;  %v3263_v2 = vpop.f32.mrf.mxu2  ;;  %4105 = vmatpush.bf16.msra.mxu0 %v5355_v32  ;;  %v5345_v32 = vld [vmem:[%s7709_s3 + $0x190] sm:$0xff] }
 0x37f   : > { %v3264_v24 = vadd.f32 %v3263_v2, %v6873_v18  ;;  %v7104_v18 = vsel %vm515_vm3, %v2761_v45, %v2765_v28  ;;  %v5314_v28 = vld [vmem:[%s7709_s3 + $0x98] sm:$0xff] }
 0x380   : > { %v3588_v40 = vpop.f32.mrf.mxu0  ;;  %7898 = vst [vmem:[#allocation12_spill] sm:$0xff] %v7104_v18  ;;  %v5354_v45 = vld [vmem:[%s7709_s3 + $0x1d8] sm:$0xff]  ;;  %3736 = vmatpush.bf16.msra.mxu2 %v5314_v28 }
 0x381   : > { %v3352_v1 = vpop.f32.mrf.mxu3  ;;  %4017 = vmatpush.bf16.msra.mxu3 %v5346_v35 }
 0x382   : > { %v3353_v6 = vadd.f32 %v3352_v1, %v3264_v24  ;;  %4106 = vmatpush.bf16.msra.mxu0 %v5354_v45 }
 0x383   : > { %3305 = vmatmul.bf16.gmra.mxu2 %v7104_v18  ;;  %3627 = vmatmul.bf16.gmra.mxu0 %v6865_v29  ;;  %v5312_v29 = vld [vmem:[%s7709_s3 + $0x88] sm:$0xff]  ;;  %v5343_v18 = vld [vmem:[%s7709_s3 + $0x180] sm:$0xff] }
 0x384   : > { %v7111_v20 = vadd.f32 %v3585_v52, %v3353_v6  ;;  %v2770_v52 = vshll.u32 %v6941_v9, 16  ;;  %v5353_v6 = vld [vmem:[%s7709_s3 + $0x1d0] sm:$0xff]  ;;  %3737 = vmatpush.bf16.msra.mxu2 %v5313_v8 }
 0x385   : > { %4018 = vmatpush.bf16.msra.mxu3 %v5345_v32  ;;  %v2881_v32 = vrot.slane %v6941_v9, 1 }
 0x386   : > { %v7113_v2 = vpop.f32.mrf.mxu1  ;;  %3394 = vmatmul.bf16.gmra.mxu3 %v7108_v16  ;;  %v3266_v24 = vpop.f32.mrf.mxu2  ;;  %v2772_v28 = vrot.slane %v2770_v52, 1  ;;  %4107 = vmatpush.bf16.msra.mxu0 %v5353_v6 }
 0x387   : > { %v3267_v1 = vadd.f32 %v3266_v24, %v6893_v30  ;;  %v2597_v30 = vsel %vm5607_vm2, %v6924_v57, 0  ;;  %v2768_v24 = vshrl.u32 %v6941_v9, 16  ;;  %v5352_v57 = vld [vmem:[%s7709_s3 + $0x1c8] sm:$0xff] }
 0x388   : > { %v3590_v51 = vpop.f32.mrf.mxu0  ;;  %v2775_v16 = vshll.u32 %v2597_v30, 16  ;;  %3738 = vmatpush.bf16.msra.mxu2 %v5312_v29  ;;  %v5351_v29 = vld [vmem:[%s7709_s3 + $0x1c0] sm:$0xff] }
 0x389   : > { %v3355_v56 = vpop.f32.mrf.mxu3  ;;  %3666 = vmatmul.bf16.gmra.mxu1 %v6710_v42  ;;  %v2773_v52 = vor.u32 %v2772_v28, %v2768_v24 }
 0x38a   : > { %v3356_v50 = vadd.f32 %v3355_v56, %v3267_v1  ;;  %v5344_v1 = vld [vmem:[%s7709_s3 + $0x188] sm:$0xff]  ;;  %4108 = vmatpush.bf16.msra.mxu0 %v5352_v57 }
 0x38b   : > { %4019 = vmatpush.bf16.msra.mxu3 %v5344_v1 }
 0x38c   : > { %v7140_v35 = vadd.f32 %v3588_v40, %v3356_v50  ;;  %v2777_v50 = vrot.slane %v2775_v16, 1  ;;  %3739 = vmatpush.bf16.msra.mxu2 %v5311_v4 }
 0x38e   : > { %v7142_v45 = vpop.f32.mrf.mxu1  ;;  %v3268_v40 = vpop.f32.mrf.mxu2  ;;  %v7166_v24 = vsel %vm515_vm3, %v2773_v52, %v2777_v50  ;;  %4109 = vmatpush.bf16.msra.mxu0 %v5351_v29 }
 0x38f   : > { %v3269_v56 = vadd.f32 %v3268_v40, %v6908_v0  ;;  %v2882_v0 = vrot.slane %v2597_v30, 1  ;;  %7900 = vst [vmem:[#allocation40_spill] sm:$0xff] %v7166_v24  ;;  %4020 = vmatpush.bf16.msra.mxu3 %v5343_v18  ;;  %v2782_v40 = vshll.u32 %v6977_v10, 16 }
 0x390   : > { %v3593_v6 = vpop.f32.mrf.mxu0 }
 0x391   : > { %v3357_v8 = vpop.f32.mrf.mxu3  ;;  %v7170_v16 = vsel %vm766_vm4, %v2881_v32, %v2882_v0  ;;  %v2784_v32 = vrot.slane %v2782_v40, 1 }
 0x392   : > { %v3358_v28 = vadd.f32 %v3357_v8, %v3269_v56  ;;  %7901 = vst [vmem:[#allocation39_spill] sm:$0xff] %v7170_v16  ;;  %v5363_v8 = vld [vmem:[%s7709_s3 + $0x220] sm:$0xff] }
 0x393   : > { %3310 = vmatmul.bf16.gmra.mxu2 %v7166_v24  ;;  %3632 = vmatmul.bf16.gmra.mxu0 %v6900_v58 }
 0x394   : > { %v7173_v1 = vadd.f32 %v3590_v51, %v3358_v28  ;;  %v2598_v51 = vsel %vm5607_vm2, %v6962_v48, 0  ;;  %4194 = vmatpush.bf16.msra.mxu1 %v5363_v8 }
 0x395   : > { %v2787_v28 = vshll.u32 %v2598_v51, 16  ;;  %v2885_v24 = vrot.slane %v2598_v51, 1 }
 0x396   : > { %v7175_v57 = vpop.f32.mrf.mxu1  ;;  %3399 = vmatmul.bf16.gmra.mxu3 %v7170_v16  ;;  %v3271_v30 = vpop.f32.mrf.mxu2 }
 0x397   : > { %v3272_v4 = vadd.f32 %v3271_v30, %v6931_v17  ;;  %v2780_v17 = vshrl.u32 %v6977_v10, 16  ;;  %v2789_v16 = vrot.slane %v2787_v28, 1 }
 0x398   : > { %v3595_v52 = vpop.f32.mrf.mxu0 }
 0x399   : > { %v3360_v18 = vpop.f32.mrf.mxu3  ;;  %3671 = vmatmul.bf16.gmra.mxu1 %v6742_v3  ;;  %v2785_v30 = vor.u32 %v2784_v32, %v2780_v17 }
 0x39a   : > { %v3361_v56 = vadd.f32 %v3360_v18, %v3272_v4 }
 0x39b   : > { %v7195_v40 = vsel %vm515_vm3, %v2785_v30, %v2789_v16 }
 0x39c   : > { %v7187_v50 = vadd.f32 %v3593_v6, %v3361_v56  ;;  %v7199_v6 = vsel %vm766_vm4, %v2884_v63, %v2885_v24 }
 0x39e   : > { %v7189_v29 = vpop.f32.mrf.mxu1  ;;  %v3273_v0 = vpop.f32.mrf.mxu2 }
 0x39f   : > { %v3274_v4 = vadd.f32 %v3273_v0, %v6954_v39 }
 0x3a0   : > { %v3598_v48 = vpop.f32.mrf.mxu0 }
 0x3a1   : > { %v3362_v18 = vpop.f32.mrf.mxu3 }
 0x3a2   : > { %v3363_v58 = vadd.f32 %v3362_v18, %v3274_v4 }
 0x3a3   : > { %3315 = vmatmul.bf16.gmra.mxu2 %v7195_v40  ;;  %3637 = vmatmul.bf16.gmra.mxu0 %v6941_v9 }
 0x3a4   : > { %v7202_v56 = vadd.f32 %v3595_v52, %v3363_v58 }
 0x3a6   : > { %v7204_v39 = vpop.f32.mrf.mxu1  ;;  %3404 = vmatmul.bf16.gmra.mxu3 %v7199_v6  ;;  %v3276_v8 = vpop.f32.mrf.mxu2 }
 0x3a7   : > { %v3277_v32 = vadd.f32 %v3276_v8, %v6971_v55 }
 0x3a8   : > { %v3600_v16 = vpop.f32.mrf.mxu0 }
 0x3a9   : > { %v3365_v51 = vpop.f32.mrf.mxu3  ;;  %3676 = vmatmul.bf16.gmra.mxu1 %v6777_v23 }
 0x3aa   : > { %v3366_v17 = vadd.f32 %v3365_v51, %v3277_v32  ;;  %v5362_v51 = vld [vmem:[%s7709_s3 + $0x218] sm:$0xff] }
 0x3ab   : > { %4195 = vmatpush.bf16.msra.mxu1 %v5362_v51 }
 0x3ac   : > { %v7209_v28 = vadd.f32 %v3598_v48, %v3366_v17 }
 0x3ae   : > { %v7211_v24 = vpop.f32.mrf.mxu1  ;;  %v3278_v0 = vpop.f32.mrf.mxu2 }
 0x3af   : > { %v3279_v58 = vadd.f32 %v3278_v0, %v6987_v14 }
 0x3b0   : > { %v3603_v30 = vpop.f32.mrf.mxu0 }
 0x3b1   : > { %v3367_v52 = vpop.f32.mrf.mxu3 }
 0x3b2   : > { %v3368_v4 = vadd.f32 %v3367_v52, %v3279_v58 }
 0x3b3   : > { %3740 = vmatmul.bf16.vlgmr.msra.gmra.mxu2 %v7864_v5  ;;  %4110 = vmatmul.bf16.vlgmr.msra.gmra.mxu0 %v6677_v13 }
 0x3b4   : > { %v7216_v55 = vadd.f32 %v3600_v16, %v3368_v4 }
 0x3b6   : > { %v7218_v18 = vpop.f32.mrf.mxu1  ;;  %4021 = vmatmul.bf16.vlgmr.msra.gmra.mxu3 %v6512_v59  ;;  %v3281_v63 = vpop.f32.mrf.mxu2 }
 0x3b7   : > { %v3282_v48 = vadd.f32 %v3281_v63, %v7008_v41 }
 0x3b8   : > { %v3605_v14 = vpop.f32.mrf.mxu0 }
 0x3b9   : > { %v3370_v8 = vpop.f32.mrf.mxu3  ;;  %3681 = vmatmul.bf16.gmra.mxu1 %v6809_v60 }
 0x3ba   : > { %v3371_v32 = vadd.f32 %v3370_v8, %v3282_v48 }
 0x3bc   : > { %v7226_v13 = vadd.f32 %v3603_v30, %v3371_v32 }
 0x3be   : > { %v7228_v16 = vpop.f32.mrf.mxu1  ;;  %v3283_v17 = vpop.f32.mrf.mxu2 }
 0x3bf   : > { %v3284_v59 = vadd.f32 %v3283_v17, %v7025_v44 }
 0x3c0   : > { %v3608_v58 = vpop.f32.mrf.mxu0 }
 0x3c1   : > { %v3372_v0 = vpop.f32.mrf.mxu3 }
 0x3c2   : > { %v3373_v41 = vadd.f32 %v3372_v0, %v3284_v59 }
 0x3c3   : > { %3745 = vmatmul.bf16.gmra.mxu2 %v6655_v25  ;;  %4115 = vmatmul.bf16.gmra.mxu0 %v6710_v42 }
 0x3c4   : > { %v7233_v52 = vadd.f32 %v3605_v14, %v3373_v41 }
 0x3c6   : > { %v7235_v4 = vpop.f32.mrf.mxu1  ;;  %4026 = vmatmul.bf16.gmra.mxu3 %v6527_v21  ;;  %v3286_v30 = vpop.f32.mrf.mxu2 }
 0x3c7   : > { %v3287_v63 = vadd.f32 %v3286_v30, %v7040_v47 }
 0x3c8   : > { %v3610_v44 = vpop.f32.mrf.mxu0 }
 0x3c9   : > { %v3375_v48 = vpop.f32.mrf.mxu3  ;;  %3686 = vmatmul.bf16.gmra.mxu1 %v6849_v36 }
 0x3ca   : > { %v3376_v8 = vadd.f32 %v3375_v48, %v3287_v63 }
 0x3cc   : > { %v7240_v32 = vadd.f32 %v3608_v58, %v3376_v8 }
 0x3ce   : > { %v7242_v51 = vpop.f32.mrf.mxu1  ;;  %v3288_v25 = vpop.f32.mrf.mxu2 }
 0x3cf   : > { %v3289_v42 = vadd.f32 %v3288_v25, %v7051_v61 }
 0x3d0   : > { %v3613_v17 = vpop.f32.mrf.mxu0 }
 0x3d1   : > { %v3377_v14 = vpop.f32.mrf.mxu3 }
 0x3d2   : > { %v3378_v59 = vadd.f32 %v3377_v14, %v3289_v42  ;;  %v7902_v14 = vld [vmem:[#allocation28_spill] sm:$0xff] }
 0x3d3   : > { %3750 = vmatmul.bf16.gmra.mxu2 %v6683_v33  ;;  %4120 = vmatmul.bf16.gmra.mxu0 %v6742_v3  ;;  %v5361_v3 = vld [vmem:[%s7709_s3 + $0x210] sm:$0xff] }
 0x3d4   : > { %v7247_v21 = vadd.f32 %v3610_v44, %v3378_v59  ;;  %4196 = vmatpush.bf16.msra.mxu1 %v5361_v3 }
 0x3d6   : > { %v3652_v47 = vpop.f32.mrf.mxu1  ;;  %4031 = vmatmul.bf16.gmra.mxu3 %v6573_v37  ;;  %v3291_v58 = vpop.f32.mrf.mxu2 }
 0x3d7   : > { %v7251_v0 = vadd.f32 %v3652_v47, %v6952_v26  ;;  %v3292_v41 = vadd.f32 %v3291_v58, %v7072_v31  ;;  %v7903_v58 = vld [vmem:[#allocation24_spill] sm:$0xff] }
 0x3d8   : > { %v3615_v61 = vpop.f32.mrf.mxu0 }
 0x3d9   : > { %v3380_v30 = vpop.f32.mrf.mxu3  ;;  %3691 = vmatmul.bf16.gmra.mxu1 %v6884_v7 }
 0x3da   : > { %v3381_v63 = vadd.f32 %v3380_v30, %v3292_v41 }
 0x3dc   : > { %v7258_v48 = vadd.f32 %v3613_v17, %v3381_v63 }
 0x3de   : > { %v3654_v44 = vpop.f32.mrf.mxu1  ;;  %v3293_v26 = vpop.f32.mrf.mxu2 }
 0x3df   : > { %v7261_v37 = vadd.f32 %v3654_v44, %v6969_v53  ;;  %v3294_v8 = vadd.f32 %v3293_v26, %v7089_v38 }
 0x3e0   : > { %v3618_v25 = vpop.f32.mrf.mxu0 }
 0x3e1   : > { %v3382_v31 = vpop.f32.mrf.mxu3 }
 0x3e2   : > { %v3383_v42 = vadd.f32 %v3382_v31, %v3294_v8 }
 0x3e3   : > { %3755 = vmatmul.bf16.gmra.mxu2 %v7902_v14  ;;  %4125 = vmatmul.bf16.gmra.mxu0 %v6777_v23 }
 0x3e4   : > { %v7266_v59 = vadd.f32 %v3615_v61, %v3383_v42  ;;  %v7904_v42 = vld [vmem:[#allocation31_spill] sm:$0xff] }
 0x3e6   : > { %v3657_v47 = vpop.f32.mrf.mxu1  ;;  %4036 = vmatmul.bf16.gmra.mxu3 %v7903_v58  ;;  %v3296_v53 = vpop.f32.mrf.mxu2  ;;  %v7905_v58 = vld [vmem:[#allocation25_spill] sm:$0xff] }
 0x3e7   : > { %v7270_v17 = vadd.f32 %v3657_v47, %v6985_v27  ;;  %v3297_v41 = vadd.f32 %v3296_v53, %v7113_v2 }
 0x3e8   : > { %v3620_v38 = vpop.f32.mrf.mxu0 }
 0x3e9   : > { %v3385_v30 = vpop.f32.mrf.mxu3  ;;  %3696 = vmatmul.bf16.gmra.mxu1 %v6922_v43 }
 0x3ea   : > { %v3386_v63 = vadd.f32 %v3385_v30, %v3297_v41 }
 0x3ec   : > { %v7274_v3 = vadd.f32 %v3618_v25, %v3386_v63 }
 0x3ee   : > { %v3659_v44 = vpop.f32.mrf.mxu1  ;;  %v3298_v61 = vpop.f32.mrf.mxu2 }
 0x3ef   : > { %v7277_v23 = vadd.f32 %v3659_v44, %v7006_v46  ;;  %v3299_v26 = vadd.f32 %v3298_v61, %v7142_v45 }
 0x3f0   : > { %v3623_v27 = vpop.f32.mrf.mxu0 }
 0x3f1   : > { %v3387_v8 = vpop.f32.mrf.mxu3 }
 0x3f2   : > { %v3388_v31 = vadd.f32 %v3387_v8, %v3299_v26 }
 0x3f3   : > { %3760 = vmatmul.bf16.gmra.mxu2 %v7904_v42  ;;  %4130 = vmatmul.bf16.gmra.mxu0 %v6809_v60  ;;  %v5360_v60 = vld [vmem:[%s7709_s3 + $0x208] sm:$0xff] }
 0x3f4   : > { %v7282_v2 = vadd.f32 %v3620_v38, %v3388_v31  ;;  %4197 = vmatpush.bf16.msra.mxu1 %v5360_v60  ;;  %v7906_v31 = vld [vmem:[#allocation29_spill] sm:$0xff] }
 0x3f6   : > { %v3662_v47 = vpop.f32.mrf.mxu1  ;;  %4041 = vmatmul.bf16.gmra.mxu3 %v7905_v58  ;;  %v3301_v46 = vpop.f32.mrf.mxu2 }
 0x3f7   : > { %v7286_v25 = vadd.f32 %v3662_v47, %v7023_v12  ;;  %v3302_v53 = vadd.f32 %v3301_v46, %v7175_v57  ;;  %v7907_v46 = vld [vmem:[#allocation11_spill] sm:$0xff] }
 0x3f8   : > { %v3625_v45 = vpop.f32.mrf.mxu0 }
 0x3f9   : > { %v3390_v41 = vpop.f32.mrf.mxu3  ;;  %3701 = vmatmul.bf16.gmra.mxu1 %v6960_v19 }
 0x3fa   : > { %v3391_v30 = vadd.f32 %v3390_v41, %v3302_v53 }
 0x3fc   : > { %v7293_v38 = vadd.f32 %v3623_v27, %v3391_v30 }
 0x3fe   : > { %v3664_v63 = vpop.f32.mrf.mxu1  ;;  %v3303_v12 = vpop.f32.mrf.mxu2 }
 0x3ff   : > { %v7296_v44 = vadd.f32 %v3664_v63, %v7038_v54  ;;  %v3304_v61 = vadd.f32 %v3303_v12, %v7189_v29 }
 0x400   : > { %v3628_v26 = vpop.f32.mrf.mxu0 }
 0x401   : > { %v3392_v57 = vpop.f32.mrf.mxu3 }
 0x402   : > { %v3393_v8 = vadd.f32 %v3392_v57, %v3304_v61 }
 0x403   : > { %3765 = vmatmul.bf16.gmra.mxu2 %v7906_v31  ;;  %4135 = vmatmul.bf16.gmra.mxu0 %v6849_v36 }
 0x404   : > { %v7301_v47 = vadd.f32 %v3625_v45, %v3393_v8  ;;  %v7908_v8 = vld [vmem:[#allocation15_spill] sm:$0xff] }
 0x406   : > { %v3667_v58 = vpop.f32.mrf.mxu1  ;;  %4046 = vmatmul.bf16.gmra.mxu3 %v7907_v46  ;;  %v3306_v54 = vpop.f32.mrf.mxu2  ;;  %v7909_v46 = vld [vmem:[#allocation27_spill] sm:$0xff] }
 0x407   : > { %v7305_v27 = vadd.f32 %v3667_v58, %v7049_v15  ;;  %v3307_v53 = vadd.f32 %v3306_v54, %v7204_v39 }
 0x408   : > { %v3630_v29 = vpop.f32.mrf.mxu0 }
 0x409   : > { %v3395_v41 = vpop.f32.mrf.mxu3  ;;  %3706 = vmatmul.bf16.gmra.mxu1 %v6999_v11 }
 0x40a   : > { %v3396_v30 = vadd.f32 %v3395_v41, %v3307_v53  ;;  %v5359_v41 = vld [vmem:[%s7709_s3 + $0x200] sm:$0xff] }
 0x40b   : > { %4198 = vmatpush.bf16.msra.mxu1 %v5359_v41 }
 0x40c   : > { %v7309_v60 = vadd.f32 %v3628_v26, %v3396_v30 }
 0x40e   : > { %v3669_v63 = vpop.f32.mrf.mxu1  ;;  %v3308_v45 = vpop.f32.mrf.mxu2 }
 0x40f   : > { %v7312_v36 = vadd.f32 %v3669_v63, %v7070_v34  ;;  %v3309_v12 = vadd.f32 %v3308_v45, %v7211_v24 }
 0x410   : > { %v3633_v15 = vpop.f32.mrf.mxu0 }
 0x411   : > { %v3397_v61 = vpop.f32.mrf.mxu3 }
 0x412   : > { %v3398_v57 = vadd.f32 %v3397_v61, %v3309_v12 }
 0x413   : > { %3770 = vmatmul.bf16.gmra.mxu2 %v7908_v8  ;;  %4140 = vmatmul.bf16.gmra.mxu0 %v6884_v7 }
 0x414   : > { %v7317_v39 = vadd.f32 %v3630_v29, %v3398_v57  ;;  %v7910_v57 = vld [vmem:[#allocation16_spill] sm:$0xff] }
 0x416   : > { %v3672_v58 = vpop.f32.mrf.mxu1  ;;  %4051 = vmatmul.bf16.gmra.mxu3 %v7909_v46  ;;  %v3311_v34 = vpop.f32.mrf.mxu2 }
 0x417   : > { %v7321_v26 = vadd.f32 %v3672_v58, %v7087_v62  ;;  %v3312_v54 = vadd.f32 %v3311_v34, %v7218_v18  ;;  %v7911_v34 = vld [vmem:[#allocation13_spill] sm:$0xff] }
 0x418   : > { %v3635_v24 = vpop.f32.mrf.mxu0 }
 0x419   : > { %v3400_v53 = vpop.f32.mrf.mxu3  ;;  %3711 = vmatmul.bf16.gmra.mxu1 %v7031_v22 }
 0x41a   : > { %v3401_v7 = vadd.f32 %v3400_v53, %v3312_v54 }
 0x41c   : > { %v7328_v29 = vadd.f32 %v3633_v15, %v3401_v7 }
 0x41e   : > { %v3674_v30 = vpop.f32.mrf.mxu1  ;;  %v3313_v62 = vpop.f32.mrf.mxu2 }
 0x41f   : > { %v7331_v63 = vadd.f32 %v3674_v30, %v7111_v20  ;;  %v3314_v45 = vadd.f32 %v3313_v62, %v7228_v16 }
 0x420   : > { %v3638_v12 = vpop.f32.mrf.mxu0 }
 0x421   : > { %v3402_v18 = vpop.f32.mrf.mxu3 }
 0x422   : > { %v3403_v61 = vadd.f32 %v3402_v18, %v3314_v45 }
 0x423   : > { %3775 = vmatmul.bf16.gmra.mxu2 %v7910_v57  ;;  %4145 = vmatmul.bf16.gmra.mxu0 %v6922_v43 }
 0x424   : > { %v7336_v58 = vadd.f32 %v3635_v24, %v3403_v61  ;;  %v7912_v61 = vld [vmem:[#allocation33_spill] sm:$0xff] }
 0x426   : > { %v3677_v46 = vpop.f32.mrf.mxu1  ;;  %4056 = vmatmul.bf16.gmra.mxu3 %v7911_v34  ;;  %v3316_v20 = vpop.f32.mrf.mxu2  ;;  %v7913_v34 = vld [vmem:[#allocation14_spill] sm:$0xff] }
 0x427   : > { %v7340_v15 = vadd.f32 %v3677_v46, %v7140_v35  ;;  %v3317_v54 = vadd.f32 %v3316_v20, %v7235_v4  ;;  %v7914_v20 = vld [vmem:[#allocation12_spill] sm:$0xff] }
 0x428   : > { %v3640_v16 = vpop.f32.mrf.mxu0 }
 0x429   : > { %v3405_v53 = vpop.f32.mrf.mxu3  ;;  %3716 = vmatmul.bf16.gmra.mxu1 %v7063_v49 }
 0x42a   : > { %v3406_v41 = vadd.f32 %v3405_v53, %v3317_v54 }
 0x42c   : > { %v7344_v7 = vadd.f32 %v3638_v12, %v3406_v41 }
 0x42e   : > { %v3679_v30 = vpop.f32.mrf.mxu1  ;;  %v3318_v24 = vpop.f32.mrf.mxu2 }
 0x42f   : > { %v7347_v43 = vadd.f32 %v3679_v30, %v7173_v1  ;;  %v3319_v62 = vadd.f32 %v3318_v24, %v7242_v51 }
 0x430   : > { %v4111_v35 = vpop.f32.mrf.mxu0 }
 0x431   : > { %v3407_v45 = vpop.f32.mrf.mxu3 }
 0x432   : > { %v3408_v18 = vadd.f32 %v3407_v45, %v3319_v62 }
 0x433   : > { %3780 = vmatmul.bf16.gmra.mxu2 %v7912_v61  ;;  %4150 = vmatmul.bf16.gmra.mxu0 %v6960_v19 }
 0x434   : > { %v7352_v4 = vadd.f32 %v3640_v16, %v3408_v18  ;;  %v7915_v18 = vld [vmem:[#allocation36_spill] sm:$0xff] }
 0x436   : > { %v3682_v46 = vpop.f32.mrf.mxu1  ;;  %4061 = vmatmul.bf16.gmra.mxu3 %v7913_v34  ;;  %v3741_v1 = vpop.f32.mrf.mxu2  ;;  %v7918_v34 = vld [vmem:[#allocation40_spill] sm:$0xff] }
 0x437   : > { %v7356_v12 = vadd.f32 %v3682_v46, %v7187_v50  ;;  %v7360_v51 = vadd.f32 %v3741_v1, %v7251_v0 }
 0x438   : > { %v4113_v41 = vpop.f32.mrf.mxu0 }
 0x439   : > { %3721 = vmatmul.bf16.gmra.mxu1 %v7914_v20  ;;  %v4022_v54 = vpop.f32.mrf.mxu3 }
 0x43a   : > { %v7362_v53 = vadd.f32 %v4111_v35, %v4022_v54  ;;  %v7916_v35 = vld [vmem:[#allocation30_spill] sm:$0xff] }
 0x43e   : > { %v3684_v30 = vpop.f32.mrf.mxu1  ;;  %v3743_v16 = vpop.f32.mrf.mxu2 }
 0x43f   : > { %v7365_v19 = vadd.f32 %v3684_v30, %v7202_v56  ;;  %v7368_v24 = vadd.f32 %v3743_v16, %v7261_v37 }
 0x440   : > { %v4116_v45 = vpop.f32.mrf.mxu0 }
 0x441   : > { %v4024_v50 = vpop.f32.mrf.mxu3 }
 0x442   : > { %v7370_v62 = vadd.f32 %v4113_v41, %v4024_v50 }
 0x443   : > { %3785 = vmatmul.bf16.gmra.mxu2 %v7915_v18  ;;  %4155 = vmatmul.bf16.gmra.mxu0 %v6999_v11 }
 0x446   : > { %v3687_v0 = vpop.f32.mrf.mxu1  ;;  %4066 = vmatmul.bf16.gmra.mxu3 %v7916_v35  ;;  %v3746_v56 = vpop.f32.mrf.mxu2 }
 0x447   : > { %v7376_v46 = vadd.f32 %v3687_v0, %v7209_v28  ;;  %v7380_v37 = vadd.f32 %v3746_v56, %v7270_v17 }
 0x448   : > { %v4118_v41 = vpop.f32.mrf.mxu0 }
 0x449   : > { %7917 = vst [vmem:[#allocation21_spill] sm:$0xff] %v7376_v46  ;;  %3726 = vmatmul.bf16.gmra.mxu1 %v7918_v34  ;;  %v4027_v1 = vpop.f32.mrf.mxu3  ;;  %v7919_v46 = vld [vmem:[#allocation5_spill] sm:$0xff] }
 0x44a   : > { %v7382_v54 = vadd.f32 %v4116_v45, %v4027_v1  ;;  %v7920_v45 = vld [vmem:[#allocation34_spill] sm:$0xff] }
 0x44e   : > { %v3689_v30 = vpop.f32.mrf.mxu1  ;;  %v3748_v11 = vpop.f32.mrf.mxu2 }
 0x44f   : > { %v7385_v16 = vadd.f32 %v3689_v30, %v7216_v55  ;;  %v7388_v50 = vadd.f32 %v3748_v11, %v7277_v23 }
 0x450   : > { %v4121_v35 = vpop.f32.mrf.mxu0 }
 0x451   : > { %v4029_v28 = vpop.f32.mrf.mxu3 }
 0x452   : > { %v7390_v0 = vadd.f32 %v4118_v41, %v4029_v28 }
 0x453   : > { %3790 = vmatmul.bf16.gmra.mxu2 %v7919_v46  ;;  %4160 = vmatmul.bf16.gmra.mxu0 %v7031_v22 }
 0x456   : > { %v3692_v17 = vpop.f32.mrf.mxu1  ;;  %4071 = vmatmul.bf16.gmra.mxu3 %v7920_v45  ;;  %v3751_v55 = vpop.f32.mrf.mxu2 }
 0x457   : > { %v7396_v56 = vadd.f32 %v3692_v17, %v7226_v13  ;;  %v7399_v1 = vadd.f32 %v3751_v55, %v7286_v25 }
 0x458   : > { %v4123_v30 = vpop.f32.mrf.mxu0 }
 0x459   : > { %7921 = vst [vmem:[#allocation6_spill] sm:$0xff] %v7396_v56  ;;  %v4032_v23 = vpop.f32.mrf.mxu3  ;;  %4199 = vmatmul.bf16.vlgmr.msra.gmra.mxu1 %v6683_v33  ;;  %v7922_v56 = vld [vmem:[#allocation37_spill] sm:$0xff]  ;;  %v7923_v33 = vld [vmem:[#allocation32_spill] sm:$0xff] }
 0x45a   : > { %v7402_v41 = vadd.f32 %v4121_v35, %v4032_v23 }
 0x45e   : > { %v3694_v11 = vpop.f32.mrf.mxu1  ;;  %v3753_v22 = vpop.f32.mrf.mxu2 }
 0x45f   : > { %v7405_v28 = vadd.f32 %v3694_v11, %v7233_v52  ;;  %v7408_v45 = vadd.f32 %v3753_v22, %v7296_v44 }
 0x460   : > { %v4126_v35 = vpop.f32.mrf.mxu0 }
 0x461   : > { %v4034_v13 = vpop.f32.mrf.mxu3 }
 0x462   : > { %v7410_v17 = vadd.f32 %v4123_v30, %v4034_v13 }
 0x463   : > { %3795 = vmatmul.bf16.gmra.mxu2 %v7922_v56  ;;  %4165 = vmatmul.bf16.gmra.mxu0 %v7063_v49 }
 0x466   : > { %v3697_v25 = vpop.f32.mrf.mxu1  ;;  %4076 = vmatmul.bf16.gmra.mxu3 %v7923_v33  ;;  %v3756_v52 = vpop.f32.mrf.mxu2 }
 0x467   : > { %v7416_v55 = vadd.f32 %v3697_v25, %v7240_v32  ;;  %v7419_v23 = vadd.f32 %v3756_v52, %v7305_v27 }
 0x468   : > { %v4128_v13 = vpop.f32.mrf.mxu0 }
 0x469   : > { %7924 = vst [vmem:[#allocation19_spill] sm:$0xff] %v7416_v55  ;;  %v4037_v44 = vpop.f32.mrf.mxu3  ;;  %4204 = vmatmul.bf16.gmra.mxu1 %v7902_v14  ;;  %v7925_v55 = vld [vmem:[#allocation17_spill] sm:$0xff]  ;;  %v7926_v14 = vld [vmem:[#allocation35_spill] sm:$0xff] }
 0x46a   : > { %v7422_v30 = vadd.f32 %v4126_v35, %v4037_v44 }
 0x46e   : > { %v3699_v11 = vpop.f32.mrf.mxu1  ;;  %v3758_v49 = vpop.f32.mrf.mxu2 }
 0x46f   : > { %v7425_v22 = vadd.f32 %v3699_v11, %v7247_v21  ;;  %v7428_v33 = vadd.f32 %v3758_v49, %v7312_v36  ;;  %v7927_v36 = vld [vmem:[#allocation38_spill] sm:$0xff]  ;;  %v7930_v49 = vmov 0  }
 0x471   : > { %v4039_v32 = vpop.f32.mrf.mxu3 }
 0x472   : > { %v7430_v25 = vadd.f32 %v4128_v13, %v4039_v32 }
 0x473   : > { %3800 = vmatmul.bf16.gmra.mxu2 %v7925_v55  ;;  %4170 = vmatmul.bf16.gmra.mxu0 %v7914_v20 }
 0x476   : > { %v3702_v27 = vpop.f32.mrf.mxu1  ;;  %4081 = vmatmul.bf16.gmra.mxu3 %v7926_v14  ;;  %v224_v14 = vld [vmem:[%s5591_s17] sm:$0xff]  }
 0x477   : > { %v7436_v35 = vadd.f32 %v3702_v27, %v7258_v48 }
 0x479   : > { %4209 = vmatmul.bf16.gmra.mxu1 %v7904_v42  ;;  %v7928_v42 = vld [vmem:[#allocation18_spill] sm:$0xff] }
 0x47e   : > { %v3704_v21 = vpop.f32.mrf.mxu1 }
 0x47f   : > { %v7440_v52 = vadd.f32 %v3704_v21, %v7266_v59 }
 0x483   : > { %3805 = vmatmul.bf16.gmra.mxu2 %v7927_v36  ;;  %4175 = vmatmul.bf16.gmra.mxu0 %v7918_v34 }
 0x486   : > { %v3707_v44 = vpop.f32.mrf.mxu1  ;;  %4086 = vmatmul.bf16.gmra.mxu3 %v6941_v9 }
 0x487   : > { %v7446_v20 = vadd.f32 %v3707_v44, %v7274_v3 }
 0x489   : > { %4214 = vmatmul.bf16.gmra.mxu1 %v7906_v31  ;;  %v7929_v31 = vld [vmem:[#allocation39_spill] sm:$0xff] }
 0x48e   : > { %v3709_v48 = vpop.f32.mrf.mxu1 }
 0x48f   : > { %v7450_v11 = vadd.f32 %v3709_v48, %v7282_v2 }
 0x493   : > { %3810 = vmatmul.bf16.gmra.mxu2 %v7928_v42  ;;  %4180 = vmatmul.bf16.gmra.mxu0 %v7195_v40 }
 0x496   : > { %v3712_v59 = vpop.f32.mrf.mxu1  ;;  %4091 = vmatmul.bf16.gmra.mxu3 %v6977_v10 }
 0x497   : > { %v7456_v34 = vadd.f32 %v3712_v59, %v7293_v38  ;;  %v4313_v59 = vunpack.c.h.bf16 %v224_v14 }
 0x499   : > { %4219 = vmatmul.bf16.gmra.mxu1 %v7908_v8 }
 0x49e   : > { %v3714_v9 = vpop.f32.mrf.mxu1 }
 0x49f   : > { %v7460_v3 = vadd.f32 %v3714_v9, %v7301_v47  ;;  %v7505_v9 = vpop.f32.mrf.mxu0 }
 0x4a3   : > { %3815 = vmatmul.bf16.gmra.mxu2 %v7929_v31  ;;  %4185 = vmatmul.bf16.gmra.mxu0 %v7864_v5 }
 0x4a6   : > { %v3717_v2 = vpop.f32.mrf.mxu1  ;;  %4096 = vmatmul.bf16.gmra.mxu3 %v7930_v49 }
 0x4a7   : > { %v7466_v40 = vadd.f32 %v3717_v2, %v7309_v60  ;;  %v7507_v2 = vpop.f32.mrf.mxu2 }
 0x4a9   : > { %4224 = vmatmul.bf16.gmra.mxu1 %v7910_v57 }
 0x4ae   : > { %v3719_v10 = vpop.f32.mrf.mxu1 }
 0x4af   : > { %v7470_v38 = vadd.f32 %v3719_v10, %v7317_v39  ;;  %v7509_v10 = vpop.f32.mrf.mxu3 }
 0x4b6   : > { %v3722_v47 = vpop.f32.mrf.mxu1 }
 0x4b7   : > { %v7473_v8 = vadd.f32 %v3722_v47, %v7328_v29  ;;  %v226_v47 = vld [vmem:[%s5591_s17 + $0x8] sm:$0xff]  }
 0x4b9   : > { %4229 = vmatmul.bf16.gmra.mxu1 %v7912_v61  ;;  %v7491_v61 = vld [vmem:[%s7710_s4] ss:$0 sm:$0xff] }
 0x4be   : > { %v3724_v13 = vpop.f32.mrf.mxu1 }
 0x4bf   : > { %v7477_v32 = vadd.f32 %v3724_v13, %v7336_v58 }
 0x4c6   : > { %v3727_v60 = vpop.f32.mrf.mxu1 }
 0x4c7   : > { %v7480_v27 = vadd.f32 %v3727_v60, %v7344_v7  ;;  %v4312_v7 = vunpack.c.l.bf16 %v224_v14 }
 0x4c9   : > { %4234 = vmatmul.bf16.gmra.mxu1 %v7915_v18 }
 0x4ce   : > { %v3729_v57 = vpop.f32.mrf.mxu1 }
 0x4cf   : > { %v7484_v39 = vadd.f32 %v3729_v57, %v7352_v4 }
 0x4d6   : > { %v4200_v29 = vpop.f32.mrf.mxu1 }
 0x4d7   : > { %v4201_v21 = vadd.f32 %v4200_v29, %v7362_v53 }
 0x4d9   : > { %v4280_v58 = vadd.f32 %v4201_v21, %v7360_v51  ;;  %4239 = vmatmul.bf16.gmra.mxu1 %v7919_v46 }
 0x4db   : > { %v4348_v4 = vadd.f32 %v7491_v61, %v4280_v58  ;;  %v7517_v58 = vpop.f32.mrf.mxu0 }
 0x4dd   : > { %v4380_v18 = vadd.f32 %v4348_v4, %v4312_v7  ;;  %v7519_v7 = vpop.f32.mrf.mxu2 }
 0x4de   : > { %v4202_v44 = vpop.f32.mrf.mxu1 }
 0x4df   : > { %v4412_v48 = vmax.f32 %v4380_v18, 0.0  ;;  %v4203_v53 = vadd.f32 %v4202_v44, %v7370_v62  ;;  %v4315_v44 = vunpack.c.h.bf16 %v226_v47 }
 0x4e1   : > { %4444 = vst [vmem:[%s7500_s30] sm:$0xff] %v4412_v48  ;;  %v4281_v51 = vadd.f32 %v4203_v53, %v7368_v24  ;;  %v4314_v24 = vunpack.c.l.bf16 %v226_v47  ;;  %v228_v53 = vld [vmem:[%s5591_s17 + $0x10] sm:$0xff]  }
 0x4e3   : > { %v4349_v46 = vadd.f32 %v7491_v61, %v4281_v51 }
 0x4e5   : > { %v4381_v49 = vadd.f32 %v4349_v46, %v4313_v59 }
 0x4e6   : > { %v4205_v62 = vpop.f32.mrf.mxu1 }
 0x4e7   : > { %v4413_v13 = vmax.f32 %v4381_v49, 0.0  ;;  %v4206_v60 = vadd.f32 %v4205_v62, %v7382_v54  ;;  %v7522_v54 = vpop.f32.mrf.mxu3  ;;  %v7529_v49 = vpop.f32.mrf.mxu0 }
 0x4e8   : > { %v7531_v62 = vpop.f32.mrf.mxu2 }
 0x4e9   : > { %4445 = vst [vmem:[%s7500_s30 + $0x8] sm:$0xff] %v4413_v13  ;;  %v4282_v57 = vadd.f32 %v4206_v60, %v7380_v37  ;;  %4244 = vmatmul.bf16.gmra.mxu1 %v7922_v56  ;;  %v4316_v13 = vunpack.c.l.bf16 %v228_v53 }
 0x4eb   : > { %v4350_v14 = vadd.f32 %v7491_v61, %v4282_v57 }
 0x4ed   : > { %v4382_v29 = vadd.f32 %v4350_v14, %v4314_v24 }
 0x4ee   : > { %v4207_v21 = vpop.f32.mrf.mxu1 }
 0x4ef   : > { %v4414_v4 = vmax.f32 %v4382_v29, 0.0  ;;  %v4208_v18 = vadd.f32 %v4207_v21, %v7390_v0  ;;  %v4317_v29 = vunpack.c.h.bf16 %v228_v53  ;;  %v7540_v21 = vpop.f32.mrf.mxu0 }
 0x4f1   : > { %4446 = vst [vmem:[%s7500_s30 + $0x10] sm:$0xff] %v4414_v4  ;;  %v4283_v37 = vadd.f32 %v4208_v18, %v7388_v50  ;;  %v4047_v50 = vpop.f32.mrf.mxu3 }
 0x4f3   : > { %v4351_v56 = vadd.f32 %v7491_v61, %v4283_v37  ;;  %v230_v37 = vld [vmem:[%s5591_s17 + $0x18] sm:$0xff]  }
 0x4f5   : > { %v4383_v48 = vadd.f32 %v4351_v56, %v4315_v44 }
 0x4f6   : > { %v4210_v51 = vpop.f32.mrf.mxu1 }
 0x4f7   : > { %v4415_v59 = vmax.f32 %v4383_v48, 0.0  ;;  %v4211_v46 = vadd.f32 %v4210_v51, %v7402_v41  ;;  %v7553_v51 = vpop.f32.mrf.mxu0 }
 0x4f9   : > { %4447 = vst [vmem:[%s7500_s30 + $0x18] sm:$0xff] %v4415_v59  ;;  %v4284_v0 = vadd.f32 %v4211_v46, %v7399_v1  ;;  %4249 = vmatmul.bf16.gmra.mxu1 %v7925_v55  ;;  %v7542_v1 = vpop.f32.mrf.mxu2  ;;  %v7545_v55 = vpop.f32.mrf.mxu3 }
 0x4fb   : > { %v4352_v47 = vadd.f32 %v7491_v61, %v4284_v0 }
 0x4fd   : > { %v4384_v60 = vadd.f32 %v4352_v47, %v4316_v13 }
 0x4fe   : > { %v4212_v57 = vpop.f32.mrf.mxu1 }
 0x4ff   : > { %v4416_v24 = vmax.f32 %v4384_v60, 0.0  ;;  %v4213_v41 = vadd.f32 %v4212_v57, %v7410_v17  ;;  %v4319_v60 = vunpack.c.h.bf16 %v230_v37 }
 0x501   : > { %4448 = vst [vmem:[%s7500_s30 + $0x20] sm:$0xff] %v4416_v24  ;;  %v4285_v14 = vadd.f32 %v4213_v41, %v7408_v45  ;;  %v4318_v45 = vunpack.c.l.bf16 %v230_v37  ;;  %v7555_v59 = vpop.f32.mrf.mxu2  ;;  %v4052_v0 = vpop.f32.mrf.mxu3  ;;  %v232_v41 = vld [vmem:[%s5591_s17 + $0x20] sm:$0xff]  }
 0x503   : > { %v4353_v4 = vadd.f32 %v7491_v61, %v4285_v14 }
 0x505   : > { %v4385_v18 = vadd.f32 %v4353_v4, %v4317_v29  ;;  %v3762_v29 = vadd.f32 %v7507_v2, %v7321_v26  ;;  %v7566_v4 = vpop.f32.mrf.mxu0 }
 0x506   : > { %v4215_v44 = vpop.f32.mrf.mxu1 }
 0x507   : > { %v4417_v56 = vmax.f32 %v4385_v18, 0.0  ;;  %v4216_v48 = vadd.f32 %v4215_v44, %v7422_v30 }
 0x509   : > { %4449 = vst [vmem:[%s7500_s30 + $0x28] sm:$0xff] %v4417_v56  ;;  %v4286_v17 = vadd.f32 %v4216_v48, %v7419_v23  ;;  %4254 = vmatmul.bf16.gmra.mxu1 %v7927_v36  ;;  %v4132_v36 = vadd.f32 %v7505_v9, %v7509_v10  ;;  %v7568_v18 = vpop.f32.mrf.mxu2  ;;  %v4320_v56 = vunpack.c.l.bf16 %v232_v41  ;;  %v4134_v10 = vadd.f32 %v7517_v58, %v7522_v54  ;;  %v234_v54 = vld [vmem:[%s5591_s17 + $0x28] sm:$0xff]  }
 0x50a   : > { %v3764_v48 = vadd.f32 %v7519_v7, %v7331_v63  ;;  %v3767_v63 = vadd.f32 %v7531_v62, %v7340_v15  ;;  %v3769_v15 = vadd.f32 %v7542_v1, %v7347_v43 }
 0x50b   : > { %v4354_v53 = vadd.f32 %v7491_v61, %v4286_v17 }
 0x50d   : > { %v4386_v46 = vadd.f32 %v4354_v53, %v4318_v45  ;;  %v4146_v53 = vpop.f32.mrf.mxu0 }
 0x50e   : > { %v4217_v13 = vpop.f32.mrf.mxu1 }
 0x50f   : > { %v4418_v47 = vmax.f32 %v4386_v46, 0.0  ;;  %v4218_v30 = vadd.f32 %v4217_v13, %v7430_v25 }
 0x511   : > { %4450 = vst [vmem:[%s7500_s30 + $0x30] sm:$0xff] %v4418_v47  ;;  %v4287_v23 = vadd.f32 %v4218_v30, %v7428_v33  ;;  %v4054_v33 = vpop.f32.mrf.mxu3  ;;  %v7577_v46 = vpop.f32.mrf.mxu2 }
 0x513   : > { %v4355_v57 = vadd.f32 %v7491_v61, %v4287_v23  ;;  %v4137_v23 = vadd.f32 %v7529_v49, %v4047_v50  ;;  %v4139_v49 = vadd.f32 %v7540_v21, %v7545_v55  ;;  %v236_v21 = vld [vmem:[%s5591_s17 + $0x30] sm:$0xff]  }
 0x515   : > { %v4387_v24 = vadd.f32 %v4355_v57, %v4319_v60 }
 0x516   : > { %v4220_v14 = vpop.f32.mrf.mxu1 }
 0x517   : > { %v4419_v25 = vmax.f32 %v4387_v24, 0.0  ;;  %v4221_v44 = vadd.f32 %v4220_v14, %v4132_v36  ;;  %v4322_v24 = vunpack.c.l.bf16 %v234_v54 }
 0x519   : > { %4451 = vst [vmem:[%s7500_s30 + $0x38] sm:$0xff] %v4419_v25  ;;  %v4288_v37 = vadd.f32 %v4221_v44, %v3762_v29  ;;  %4259 = vmatmul.bf16.gmra.mxu1 %v7928_v42  ;;  %v4321_v42 = vunpack.c.h.bf16 %v232_v41  ;;  %v4057_v47 = vpop.f32.mrf.mxu3  ;;  %v4148_v41 = vpop.f32.mrf.mxu0 }
 0x51a   : > { %v3778_v14 = vpop.f32.mrf.mxu2 }
 0x51b   : > { %v4356_v9 = vadd.f32 %v7491_v61, %v4288_v37 }
 0x51d   : > { %v4388_v26 = vadd.f32 %v4356_v9, %v4320_v56 }
 0x51e   : > { %v4222_v2 = vpop.f32.mrf.mxu1 }
 0x51f   : > { %v4420_v17 = vmax.f32 %v4388_v26, 0.0  ;;  %v4223_v45 = vadd.f32 %v4222_v2, %v4134_v10  ;;  %v4142_v10 = vadd.f32 %v7553_v51, %v4052_v0  ;;  %v4144_v51 = vadd.f32 %v7566_v4, %v4054_v33  ;;  %v7931_v33 = vld [vmem:[#allocation21_spill] sm:$0xff] }
 0x521   : > { %4452 = vst [vmem:[%s7500_s30 + $0x40] sm:$0xff] %v4420_v17  ;;  %v4289_v13 = vadd.f32 %v4223_v45, %v3764_v48  ;;  %v4059_v25 = vpop.f32.mrf.mxu3  ;;  %v4151_v26 = vpop.f32.mrf.mxu0  ;;  %v3772_v45 = vadd.f32 %v7555_v59, %v7356_v12 }
 0x522   : > { %v3781_v2 = vpop.f32.mrf.mxu2 }
 0x523   : > { %v4357_v30 = vadd.f32 %v7491_v61, %v4289_v13 }
 0x525   : > { %v4389_v58 = vadd.f32 %v4357_v30, %v4321_v42  ;;  %v4324_v42 = vunpack.c.l.bf16 %v236_v21 }
 0x526   : > { %v4225_v60 = vpop.f32.mrf.mxu1 }
 0x527   : > { %v4421_v7 = vmax.f32 %v4389_v58, 0.0  ;;  %v4226_v57 = vadd.f32 %v4225_v60, %v4137_v23  ;;  %v3774_v58 = vadd.f32 %v7568_v18, %v7365_v19 }
 0x529   : > { %4453 = vst [vmem:[%s7500_s30 + $0x48] sm:$0xff] %v4421_v7  ;;  %v4290_v36 = vadd.f32 %v4226_v57, %v3767_v63  ;;  %4264 = vmatmul.bf16.gmra.mxu1 %v7929_v31  ;;  %v4323_v31 = vunpack.c.h.bf16 %v234_v54  ;;  %v4062_v17 = vpop.f32.mrf.mxu3  ;;  %v4153_v54 = vpop.f32.mrf.mxu0  ;;  %v4325_v57 = vunpack.c.h.bf16 %v236_v21 }
 0x52a   : > { %v3783_v12 = vpop.f32.mrf.mxu2 }
 0x52b   : > { %v4358_v29 = vadd.f32 %v7491_v61, %v4290_v36  ;;  %v4147_v36 = vadd.f32 %v4146_v53, %v4057_v47  ;;  %v4149_v53 = vadd.f32 %v4148_v41, %v4059_v25  ;;  %v7932_v41 = vld [vmem:[#allocation6_spill] sm:$0xff] }
 0x52c   : > { %v3782_v25 = vadd.f32 %v3781_v2, %v7932_v41  ;;  %v244_v41 = vld [vmem:[%s5591_s17 + $0x50] sm:$0xff]  }
 0x52d   : > { %v4390_v50 = vadd.f32 %v4358_v29, %v4322_v24  ;;  %v238_v29 = vld [vmem:[%s5591_s17 + $0x38] sm:$0xff]  }
 0x52e   : > { %v4227_v44 = vpop.f32.mrf.mxu1  ;;  %v4327_v21 = vunpack.c.h.bf16 %v238_v29 }
 0x52f   : > { %v4422_v62 = vmax.f32 %v4390_v50, 0.0  ;;  %v4228_v37 = vadd.f32 %v4227_v44, %v4139_v49  ;;  %v3777_v49 = vadd.f32 %v7577_v46, %v7931_v33 }
 0x531   : > { %4454 = vst [vmem:[%s7500_s30 + $0x50] sm:$0xff] %v4422_v62  ;;  %v4291_v56 = vadd.f32 %v4228_v37, %v3769_v15  ;;  %v4064_v63 = vpop.f32.mrf.mxu3  ;;  %v4156_v18 = vpop.f32.mrf.mxu0  ;;  %v4326_v62 = vunpack.c.l.bf16 %v238_v29 }
 0x532   : > { %v3786_v44 = vpop.f32.mrf.mxu2 }
 0x533   : > { %v4359_v9 = vadd.f32 %v7491_v61, %v4291_v56 }
 0x535   : > { %v4391_v48 = vadd.f32 %v4359_v9, %v4323_v31  ;;  %v3779_v9 = vadd.f32 %v3778_v14, %v7385_v16 }
 0x536   : > { %v4230_v55 = vpop.f32.mrf.mxu1 }
 0x537   : > { %v4423_v43 = vmax.f32 %v4391_v48, 0.0  ;;  %v4231_v1 = vadd.f32 %v4230_v55, %v4142_v10 }
 0x539   : > { %4455 = vst [vmem:[%s7500_s30 + $0x58] sm:$0xff] %v4423_v43  ;;  %v4292_v13 = vadd.f32 %v4231_v1, %v3772_v45  ;;  %4269 = vmatmul.bf16.gmra.mxu1 %v7199_v6  ;;  %v4067_v37 = vpop.f32.mrf.mxu3  ;;  %v4158_v55 = vpop.f32.mrf.mxu0  ;;  %v4152_v1 = vadd.f32 %v4151_v26, %v4062_v17  ;;  %v3784_v17 = vadd.f32 %v3783_v12, %v7405_v28 }
 0x53a   : > { %v3788_v45 = vpop.f32.mrf.mxu2 }
 0x53b   : > { %v4360_v30 = vadd.f32 %v7491_v61, %v4292_v13 }
 0x53d   : > { %v4392_v0 = vadd.f32 %v4360_v30, %v4324_v42  ;;  %v240_v42 = vld [vmem:[%s5591_s17 + $0x40] sm:$0xff]  }
 0x53e   : > { %v4232_v23 = vpop.f32.mrf.mxu1 }
 0x53f   : > { %v4424_v59 = vmax.f32 %v4392_v0, 0.0  ;;  %v4233_v60 = vadd.f32 %v4232_v23, %v4144_v51  ;;  %v4328_v0 = vunpack.c.l.bf16 %v240_v42 }
 0x541   : > { %4456 = vst [vmem:[%s7500_s30 + $0x60] sm:$0xff] %v4424_v59  ;;  %v4293_v7 = vadd.f32 %v4233_v60, %v3774_v58  ;;  %v4154_v58 = vadd.f32 %v4153_v54, %v4064_v63  ;;  %v4161_v59 = vpop.f32.mrf.mxu0  ;;  %v7933_v54 = vld [vmem:[#allocation19_spill] sm:$0xff] }
 0x542   : > { %v3791_v60 = vpop.f32.mrf.mxu2  ;;  %v3787_v63 = vadd.f32 %v3786_v44, %v7933_v54 }
 0x543   : > { %v4361_v6 = vadd.f32 %v7491_v61, %v4293_v7 }
 0x545   : > { %v4393_v24 = vadd.f32 %v4361_v6, %v4325_v57 }
 0x546   : > { %v4235_v4 = vpop.f32.mrf.mxu1 }
 0x547   : > { %v4425_v50 = vmax.f32 %v4393_v24, 0.0  ;;  %v4236_v19 = vadd.f32 %v4235_v4, %v4147_v36  ;;  %v4329_v24 = vunpack.c.h.bf16 %v240_v42  ;;  %v4157_v4 = vadd.f32 %v4156_v18, %v4067_v37 }
 0x548   : > { %v3789_v37 = vadd.f32 %v3788_v45, %v7425_v22 }
 0x549   : > { %4457 = vst [vmem:[%s7500_s30 + $0x68] sm:$0xff] %v4425_v50  ;;  %v4294_v15 = vadd.f32 %v4236_v19, %v3777_v49  ;;  %4274 = vmatmul.bf16.gmra.mxu1 %v7864_v5  ;;  %v4069_v5 = vpop.f32.mrf.mxu3  ;;  %v242_v49 = vld [vmem:[%s5591_s17 + $0x48] sm:$0xff]   ;;  %v4163_v19 = vpop.f32.mrf.mxu0 }
 0x54b   : > { %v4362_v56 = vadd.f32 %v7491_v61, %v4294_v15  ;;  %v3793_v15 = vpop.f32.mrf.mxu2 }
 0x54d   : > { %v4394_v47 = vadd.f32 %v4362_v56, %v4326_v62 }
 0x54e   : > { %v4237_v31 = vpop.f32.mrf.mxu1 }
 0x54f   : > { %v4426_v46 = vmax.f32 %v4394_v47, 0.0  ;;  %v4238_v10 = vadd.f32 %v4237_v31, %v4149_v53  ;;  %v4330_v53 = vunpack.c.l.bf16 %v242_v49  ;;  %v4159_v31 = vadd.f32 %v4158_v55, %v4069_v5 }
 0x550   : > { %v3792_v55 = vadd.f32 %v3791_v60, %v7436_v35 }
 0x551   : > { %4458 = vst [vmem:[%s7500_s30 + $0x70] sm:$0xff] %v4426_v46  ;;  %v4295_v48 = vadd.f32 %v4238_v10, %v3779_v9  ;;  %v4072_v57 = vpop.f32.mrf.mxu3  ;;  %v4166_v10 = vpop.f32.mrf.mxu0 }
 0x552   : > { %v4162_v42 = vadd.f32 %v4161_v59, %v4072_v57  ;;  %v3794_v57 = vadd.f32 %v3793_v15, %v7440_v52 }
 0x553   : > { %v4363_v43 = vadd.f32 %v7491_v61, %v4295_v48  ;;  %v3796_v48 = vpop.f32.mrf.mxu2 }
 0x555   : > { %v4395_v13 = vadd.f32 %v4363_v43, %v4327_v21  ;;  %v4331_v43 = vunpack.c.h.bf16 %v242_v49 }
 0x556   : > { %v4240_v30 = vpop.f32.mrf.mxu1 }
 0x557   : > { %v4427_v51 = vmax.f32 %v4395_v13, 0.0  ;;  %v4241_v16 = vadd.f32 %v4240_v30, %v4152_v1 }
 0x559   : > { %4459 = vst [vmem:[%s7500_s30 + $0x78] sm:$0xff] %v4427_v51  ;;  %v4296_v14 = vadd.f32 %v4241_v16, %v3782_v25  ;;  %v4074_v28 = vpop.f32.mrf.mxu3  ;;  %v4332_v51 = vunpack.c.l.bf16 %v244_v41  ;;  %v4168_v16 = vpop.f32.mrf.mxu0 }
 0x55b   : > { %v4364_v23 = vadd.f32 %v7491_v61, %v4296_v14  ;;  %v3798_v14 = vpop.f32.mrf.mxu2 }
 0x55d   : > { %v4396_v7 = vadd.f32 %v4364_v23, %v4328_v0 }
 0x55e   : > { %v4242_v26 = vpop.f32.mrf.mxu1 }
 0x55f   : > { %v4428_v6 = vmax.f32 %v4396_v7, 0.0  ;;  %v4243_v2 = vadd.f32 %v4242_v26, %v4154_v58  ;;  %v4164_v58 = vadd.f32 %v4163_v19, %v4074_v28 }
 0x561   : > { %4460 = vst [vmem:[%s7500_s30 + $0x80] sm:$0xff] %v4428_v6  ;;  %v4297_v36 = vadd.f32 %v4243_v2, %v3784_v17  ;;  %v4077_v1 = vpop.f32.mrf.mxu3  ;;  %v4333_v17 = vunpack.c.h.bf16 %v244_v41 }
 0x562   : > { %v4167_v2 = vadd.f32 %v4166_v10, %v4077_v1 }
 0x563   : > { %v4365_v29 = vadd.f32 %v7491_v61, %v4297_v36  ;;  %v4171_v36 = vpop.f32.mrf.mxu0 }
 0x565   : > { %v4397_v33 = vadd.f32 %v4365_v29, %v4329_v24  ;;  %v3801_v24 = vpop.f32.mrf.mxu2 }
 0x566   : > { %v4245_v50 = vpop.f32.mrf.mxu1 }
 0x567   : > { %v4429_v62 = vmax.f32 %v4397_v33, 0.0  ;;  %v4246_v56 = vadd.f32 %v4245_v50, %v4157_v4  ;;  %v246_v33 = vld [vmem:[%s5591_s17 + $0x58] sm:$0xff]   ;;  %v3797_v50 = vadd.f32 %v3796_v48, %v7446_v20  ;;  %v248_v48 = vld [vmem:[%s5591_s17 + $0x60] sm:$0xff]  }
 0x568   : > { %v4334_v19 = vunpack.c.l.bf16 %v246_v33  ;;  %v4336_v41 = vunpack.c.l.bf16 %v248_v48 }
 0x569   : > { %4461 = vst [vmem:[%s7500_s30 + $0x88] sm:$0xff] %v4429_v62  ;;  %v4298_v12 = vadd.f32 %v4246_v56, %v3787_v63  ;;  %v4079_v23 = vpop.f32.mrf.mxu3 }
 0x56a   : > { %v4169_v62 = vadd.f32 %v4168_v16, %v4079_v23 }
 0x56b   : > { %v4366_v47 = vadd.f32 %v7491_v61, %v4298_v12  ;;  %v3799_v12 = vadd.f32 %v3798_v14, %v7450_v11 }
 0x56d   : > { %v4398_v9 = vadd.f32 %v4366_v47, %v4330_v53  ;;  %v4173_v53 = vpop.f32.mrf.mxu0  ;;  %v3803_v47 = vpop.f32.mrf.mxu2 }
 0x56e   : > { %v4247_v18 = vpop.f32.mrf.mxu1 }
 0x56f   : > { %v4430_v46 = vmax.f32 %v4398_v9, 0.0  ;;  %v4248_v44 = vadd.f32 %v4247_v18, %v4159_v31 }
 0x571   : > { %4462 = vst [vmem:[%s7500_s30 + $0x90] sm:$0xff] %v4430_v46  ;;  %v4299_v21 = vadd.f32 %v4248_v44, %v3789_v37  ;;  %v4082_v4 = vpop.f32.mrf.mxu3  ;;  %v4335_v37 = vunpack.c.h.bf16 %v246_v33 }
 0x572   : > { %v4172_v44 = vadd.f32 %v4171_v36, %v4082_v4 }
 0x573   : > { %v4367_v13 = vadd.f32 %v7491_v61, %v4299_v21 }
 0x575   : > { %v4399_v30 = vadd.f32 %v4367_v13, %v4331_v43  ;;  %v3802_v43 = vadd.f32 %v3801_v24, %v7456_v34  ;;  %v4176_v13 = vpop.f32.mrf.mxu0 }
 0x576   : > { %v4250_v25 = vpop.f32.mrf.mxu1 }
 0x577   : > { %v4431_v5 = vmax.f32 %v4399_v30, 0.0  ;;  %v4251_v22 = vadd.f32 %v4250_v25, %v4162_v42  ;;  %v3806_v42 = vpop.f32.mrf.mxu2 }
 0x579   : > { %4463 = vst [vmem:[%s7500_s30 + $0x98] sm:$0xff] %v4431_v5  ;;  %v4300_v45 = vadd.f32 %v4251_v22, %v3792_v55  ;;  %v4084_v20 = vpop.f32.mrf.mxu3 }
 0x57a   : > { %v4174_v5 = vadd.f32 %v4173_v53, %v4084_v20 }
 0x57b   : > { %v4368_v0 = vadd.f32 %v7491_v61, %v4300_v45 }
 0x57d   : > { %v4400_v7 = vadd.f32 %v4368_v0, %v4332_v51  ;;  %v3804_v51 = vadd.f32 %v3803_v47, %v7460_v3  ;;  %v4337_v0 = vunpack.c.h.bf16 %v248_v48  ;;  %v4178_v23 = vpop.f32.mrf.mxu0 }
 0x57e   : > { %v4252_v59 = vpop.f32.mrf.mxu1 }
 0x57f   : > { %v4432_v26 = vmax.f32 %v4400_v7, 0.0  ;;  %v4253_v35 = vadd.f32 %v4252_v59, %v4164_v58  ;;  %v3808_v58 = vpop.f32.mrf.mxu2 }
 0x581   : > { %4464 = vst [vmem:[%s7500_s30 + $0xa0] sm:$0xff] %v4432_v26  ;;  %v4301_v60 = vadd.f32 %v4253_v35, %v3794_v57  ;;  %v4087_v25 = vpop.f32.mrf.mxu3  ;;  %v250_v35 = vld [vmem:[%s5591_s17 + $0x68] sm:$0xff]  }
 0x582   : > { %v4177_v57 = vadd.f32 %v4176_v13, %v4087_v25  ;;  %v4338_v36 = vunpack.c.l.bf16 %v250_v35 }
 0x583   : > { %v4369_v6 = vadd.f32 %v7491_v61, %v4301_v60 }
 0x585   : > { %v4401_v29 = vadd.f32 %v4369_v6, %v4333_v17  ;;  %v3807_v17 = vadd.f32 %v3806_v42, %v7466_v40  ;;  %v4181_v4 = vpop.f32.mrf.mxu0 }
 0x586   : > { %v4255_v49 = vpop.f32.mrf.mxu1 }
 0x587   : > { %v4433_v54 = vmax.f32 %v4401_v29, 0.0  ;;  %v4256_v52 = vadd.f32 %v4255_v49, %v4167_v2  ;;  %v3811_v33 = vpop.f32.mrf.mxu2 }
 0x588   : > { %v3812_v47 = vadd.f32 %v3811_v33, %v7473_v8 }
 0x589   : > { %4465 = vst [vmem:[%s7500_s30 + $0xa8] sm:$0xff] %v4433_v54  ;;  %v4302_v63 = vadd.f32 %v4256_v52, %v3797_v50  ;;  %v4089_v59 = vpop.f32.mrf.mxu3  ;;  %v3809_v52 = vadd.f32 %v3808_v58, %v7470_v38 }
 0x58a   : > { %v4179_v29 = vadd.f32 %v4178_v23, %v4089_v59 }
 0x58b   : > { %v4370_v15 = vadd.f32 %v7491_v61, %v4302_v63 }
 0x58d   : > { %v4402_v56 = vadd.f32 %v4370_v15, %v4334_v19  ;;  %v4339_v15 = vunpack.c.h.bf16 %v250_v35 }
 0x58e   : > { %v4257_v28 = vpop.f32.mrf.mxu1 }
 0x58f   : > { %v4434_v31 = vmax.f32 %v4402_v56, 0.0  ;;  %v4258_v9 = vadd.f32 %v4257_v28, %v4169_v62 }
 0x591   : > { %4466 = vst [vmem:[%s7500_s30 + $0xb0] sm:$0xff] %v4434_v31  ;;  %v4303_v18 = vadd.f32 %v4258_v9, %v3799_v12  ;;  %v4092_v50 = vpop.f32.mrf.mxu3  ;;  %v252_v12 = vld [vmem:[%s5591_s17 + $0x70] sm:$0xff]   ;;  %v4183_v31 = vpop.f32.mrf.mxu0 }
 0x592   : > { %v4182_v56 = vadd.f32 %v4181_v4, %v4092_v50 }
 0x593   : > { %v4371_v46 = vadd.f32 %v7491_v61, %v4303_v18  ;;  %v3813_v18 = vpop.f32.mrf.mxu2 }
 0x595   : > { %v4403_v10 = vadd.f32 %v4371_v46, %v4335_v37  ;;  %v4340_v46 = vunpack.c.l.bf16 %v252_v12 }
 0x596   : > { %v4260_v21 = vpop.f32.mrf.mxu1 }
 0x597   : > { %v4435_v1 = vmax.f32 %v4403_v10, 0.0  ;;  %v4261_v11 = vadd.f32 %v4260_v21, %v4172_v44 }
 0x599   : > { %4467 = vst [vmem:[%s7500_s30 + $0xb8] sm:$0xff] %v4435_v1  ;;  %v4304_v30 = vadd.f32 %v4261_v11, %v3802_v43  ;;  %v4094_v38 = vpop.f32.mrf.mxu3  ;;  %v3814_v43 = vadd.f32 %v3813_v18, %v7477_v32  ;;  %v4186_v13 = vpop.f32.mrf.mxu0 }
 0x59a   : > { %v4184_v10 = vadd.f32 %v4183_v31, %v4094_v38 }
 0x59b   : > { %v4372_v55 = vadd.f32 %v7491_v61, %v4304_v30  ;;  %v4341_v30 = vunpack.c.h.bf16 %v252_v12 }
 0x59d   : > { %v4404_v22 = vadd.f32 %v4372_v55, %v4336_v41  ;;  %v3816_v41 = vpop.f32.mrf.mxu2 }
 0x59e   : > { %v4262_v45 = vpop.f32.mrf.mxu1 }
 0x59f   : > { %v4436_v16 = vmax.f32 %v4404_v22, 0.0  ;;  %v4263_v34 = vadd.f32 %v4262_v45, %v4174_v5  ;;  %v254_v22 = vld [vmem:[%s5591_s17 + $0x78] sm:$0xff]  }
 0x5a1   : > { %4468 = vst [vmem:[%s7500_s30 + $0xc0] sm:$0xff] %v4436_v16  ;;  %v4305_v14 = vadd.f32 %v4263_v34, %v3804_v51  ;;  %v4097_v11 = vpop.f32.mrf.mxu3  ;;  %v3817_v51 = vadd.f32 %v3816_v41, %v7480_v27  ;;  %v4188_v23 = vpop.f32.mrf.mxu0 }
 0x5a2   : > { %v4187_v25 = vadd.f32 %v4186_v13, %v4097_v11 }
 0x5a3   : > { %v4373_v7 = vadd.f32 %v7491_v61, %v4305_v14  ;;  %v4342_v14 = vunpack.c.l.bf16 %v254_v22 }
 0x5a5   : > { %v4405_v26 = vadd.f32 %v4373_v7, %v4337_v0  ;;  %v3818_v7 = vpop.f32.mrf.mxu2 }
 0x5a6   : > { %v4265_v60 = vpop.f32.mrf.mxu1  ;;  %v3819_v27 = vadd.f32 %v3818_v7, %v7484_v39 }
 0x5a7   : > { %v4437_v6 = vmax.f32 %v4405_v26, 0.0  ;;  %v4266_v3 = vadd.f32 %v4265_v60, %v4177_v57 }
 0x5a9   : > { %4469 = vst [vmem:[%s7500_s30 + $0xc8] sm:$0xff] %v4437_v6  ;;  %v4306_v2 = vadd.f32 %v4266_v3, %v3807_v17  ;;  %v4099_v0 = vpop.f32.mrf.mxu3  ;;  %v4343_v6 = vunpack.c.h.bf16 %v254_v22 }
 0x5aa   : > { %v4189_v59 = vadd.f32 %v4188_v23, %v4099_v0 }
 0x5ab   : > { %v4374_v24 = vadd.f32 %v7491_v61, %v4306_v2 }
 0x5ad   : > { %v4406_v49 = vadd.f32 %v4374_v24, %v4338_v36 }
 0x5ae   : > { %v4267_v54 = vpop.f32.mrf.mxu1 }
 0x5af   : > { %v4438_v63 = vmax.f32 %v4406_v49, 0.0  ;;  %v4268_v40 = vadd.f32 %v4267_v54, %v4179_v29 }
 0x5b1   : > { %4470 = vst [vmem:[%s7500_s30 + $0xd0] sm:$0xff] %v4438_v63  ;;  %v4307_v19 = vadd.f32 %v4268_v40, %v3809_v52 }
 0x5b3   : > { %v4375_v62 = vadd.f32 %v7491_v61, %v4307_v19 }
 0x5b5   : > { %v4407_v28 = vadd.f32 %v4375_v62, %v4339_v15 }
 0x5b6   : > { %v4270_v53 = vpop.f32.mrf.mxu1 }
 0x5b7   : > { %v4439_v9 = vmax.f32 %v4407_v28, 0.0  ;;  %v4271_v20 = vadd.f32 %v4270_v53, %v4182_v56 }
 0x5b9   : > { %4471 = vst [vmem:[%s7500_s30 + $0xd8] sm:$0xff] %v4439_v9  ;;  %v4308_v37 = vadd.f32 %v4271_v20, %v3812_v47 }
 0x5bb   : > { %v4376_v44 = vadd.f32 %v7491_v61, %v4308_v37 }
 0x5bd   : > { %v4408_v48 = vadd.f32 %v4376_v44, %v4340_v46 }
 0x5be   : > { %v4272_v21 = vpop.f32.mrf.mxu1 }
 0x5bf   : > { %v4440_v1 = vmax.f32 %v4408_v48, 0.0  ;;  %v4273_v8 = vadd.f32 %v4272_v21, %v4184_v10 }
 0x5c1   : > { %4472 = vst [vmem:[%s7500_s30 + $0xe0] sm:$0xff] %v4440_v1  ;;  %v4309_v42 = vadd.f32 %v4273_v8, %v3814_v43 }
 0x5c3   : > { %v4377_v55 = vadd.f32 %v7491_v61, %v4309_v42 }
 0x5c5   : > { %v4409_v5 = vadd.f32 %v4377_v55, %v4341_v30 }
 0x5c6   : > { %v4275_v45 = vpop.f32.mrf.mxu1 }
 0x5c7   : > { %v4441_v16 = vmax.f32 %v4409_v5, 0.0  ;;  %v4276_v32 = vadd.f32 %v4275_v45, %v4187_v25 }
 0x5c9   : > { %4473 = vst [vmem:[%s7500_s30 + $0xe8] sm:$0xff] %v4441_v16  ;;  %v4310_v34 = vadd.f32 %v4276_v32, %v3817_v51 }
 0x5cb   : > { %v4378_v58 = vadd.f32 %v7491_v61, %v4310_v34 }
 0x5cd   : > { %v4410_v57 = vadd.f32 %v4378_v58, %v4342_v14 }
 0x5ce   : > { %v4277_v26 = vpop.f32.mrf.mxu1 }
 0x5cf   : > { %v4442_v35 = vmax.f32 %v4410_v57, 0.0  ;;  %v4278_v60 = vadd.f32 %v4277_v26, %v4189_v59 }
 0x5d1   : > { %4474 = vst [vmem:[%s7500_s30 + $0xf0] sm:$0xff] %v4442_v35  ;;  %v4311_v17 = vadd.f32 %v4278_v60, %v3819_v27 }
 0x5d3   : > { %v4379_v3 = vadd.f32 %v7491_v61, %v4311_v17 }
 0x5d5   : > { %v4411_v2 = vadd.f32 %v4379_v3, %v4343_v6 }
 0x5d7   : > { %v4443_v36 = vmax.f32 %v4411_v2, 0.0 }
 0x5d9   : > { %4475 = vst [vmem:[%s7500_s30 + $0xf8] sm:$0xff] %v4443_v36 }
 0x5da   : > { %5456 = shalt.err (!%p5453_p3)
}
 0x5db   : > { %s5494_s25 = smov 128   ;;  %s5495_s26 = smov 8  }
 0x5dc   : > { %5384 = dma.vmem_to_hbm [thread:$0]  (%p5564_p5), %s4490_s9, 4096, %s4492_s10, %s4477_s22, %s5494_s25, %s5494_s25, %s5495_s26  }
 0x5dd PF: > { %p5390_p4 = scmp.ge.s32.totalorder %s5491_s21, 2  ;;  %s4506_s30 = sand.u32 1, %s5479_s18  }
 0x5de   : > { %s4507_s6 = scalar_lea.sflag [#allocation3], %s4506_s30 }
 0x5df   : > { %p5387_p7 = pnand %p5390_p4, %p5568_p6 }
 0x5e1   : > { %p5388_p8 = pneg %p5387_p7 }
 0x5e3   : > { %5474 = dma.done.wait (%p5388_p8), %s4507_s6, 4096  }
 0x5e4   : > { %5476 = vsyncadd (%p5388_p8), %s4507_s6, 4294963200  ;;  %p15_p9 = scmp.ge.s32.totalorder %s5551_s24, 6   ;;  %s7934_s18 = smov %s5483_s19 }
 0x5e5   : > { %s7935_s19 = smov %s5487_s20  ;;  %s7936_s20 = smov %s5562_s27 }
 0x5e6   : > { %s7937_s21 = smov %s5551_s24  ;;  %17 = sbr.rel (!%p15_p9) target bundleno = 3 (0x3), region = 75 }
 0x5eb   :  { %4513 = vsyncpa [#allocation3], 1 }
 0x5ec   :  { %4515 = vsyncpa [#allocation3 + $0x1], 1 }

</bundles_post_ra>
